<compile_context>
chip_gen: v7x
topology: tpu7x:2x2x1
jax: 0.10.0
libtpu: 0.0.40
codegen_flags: <defaults>
</compile_context>

<pallas_src>
import jax
import jax.numpy as jnp
from jax.experimental import pallas as pl
from jax.experimental.pallas import tpu as pltpu

C = 32           # output_channel_count
CIN = 3          # input channels
NBLK = 3         # block_count
G = 4            # pixel groups packed along the lane axis
LW = 2 * C * G   # merged lane width: 2 branches x 32 ch x G groups = 256
TM_MAX = 4096    # max pixel-group rows per grid step


def fwd_kernel(x_ref, ws_ref, bs_ref, s0_ref, t0_ref, W_ref, B_ref, out_ref):
    x = x_ref[...].astype(jnp.bfloat16)                               # (TM, 3G)
    # Stem: both branch 1x1 convs, all G pixel groups, one bf16 MXU matmul.
    v = jnp.dot(x, ws_ref[...], preferred_element_type=jnp.float32) + bs_ref[...]

    # Residual blocks: the SAME block params apply to both branches and all
    # pixel groups via block-diagonal (LW, LW) weights.  BN2 is pre-folded
    # into W_ref[i, 1] / B_ref[i, 1].
    for i in range(NBLK):
        h = v * s0_ref[i] + t0_ref[i]                 # BN1 (eval-mode affine)
        h = jnp.maximum(h, 0.0)
        h = jnp.dot(h.astype(jnp.bfloat16), W_ref[i, 0],
                    preferred_element_type=jnp.float32) + B_ref[i, 0]
        h = jnp.maximum(h, 0.0)
        h = jnp.dot(h.astype(jnp.bfloat16), W_ref[i, 1],
                    preferred_element_type=jnp.float32) + B_ref[i, 1]
        h = jnp.maximum(h, 0.0)                       # BN2 folded into conv above
        h = jnp.dot(h.astype(jnp.bfloat16), W_ref[i, 2],
                    preferred_element_type=jnp.float32) + B_ref[i, 2]
        v = v + h

    # Final v1 + v2: sum of the two branch halves -> lane-dense (TM, C*G) store.
    half = C * G
    out_ref[...] = (v[:, :half] + v[:, half:]).astype(out_ref.dtype)


def _full_spec(*shape):
    return pl.BlockSpec(shape, lambda i, _s=shape: (0,) * len(_s))


def _round_up(a, b):
    return pl.cdiv(a, b) * b


def _pick_tm(rows):
    # Largest tile that fits comfortably; sublane count kept a multiple of 8.
    # TODO(synk): on v7x keep an even step count >= 2 so both TCs are used.
    return min(TM_MAX, _round_up(rows, 8))


def run_pallas(pix, kparams):
    P = pix.shape[0]
    rows = pl.cdiv(P, G)
    tm = _pick_tm(rows)
    grid = (pl.cdiv(rows, tm),)
    rows_pad = grid[0] * tm
    Ppad = rows_pad * G
    pix = jnp.pad(pix, ((0, Ppad - P), (0, 0)))
    xin = pix.reshape(rows_pad, CIN * G)               # (rows, 3G) lane-packed

    flops = 2 * Ppad * (CIN * 2 * C + NBLK * 3 * (2 * C) * (2 * C))
    bytes_accessed = Ppad * (CIN + C) * 4 + NBLK * 3 * LW * LW * 2

    out = pl.pallas_call(
        fwd_kernel,
        out_shape=jax.ShapeDtypeStruct((rows_pad, C * G), jnp.float32),
        grid_spec=pltpu.PrefetchScalarGridSpec(
            num_scalar_prefetch=0,
            grid=grid,
            in_specs=[
                pl.BlockSpec((tm, CIN * G), lambda i: (i, 0)),  # pixel rows
                _full_spec(CIN * G, LW),                        # merged stem weight
                _full_spec(1, LW),                              # merged stem bias
                _full_spec(NBLK, 1, LW),                        # BN1 scales
                _full_spec(NBLK, 1, LW),                        # BN1 shifts
                _full_spec(NBLK, 3, LW, LW),                    # block conv weights
                _full_spec(NBLK, 3, 1, LW),                     # block conv biases
            ],
            out_specs=pl.BlockSpec((tm, C * G), lambda i: (i, 0)),
        ),
        compiler_params=pltpu.CompilerParams(
            dimension_semantics=("parallel",),
            vmem_limit_bytes=48 * 1024 * 1024),
        cost_estimate=pl.CostEstimate(
            flops=flops, transcendentals=0, bytes_accessed=bytes_accessed),
    )(xin, *kparams)
    return out.reshape(rows_pad * G, C)[:P]


def prepare_params(params):
    """Merge/fold per-branch params into the kernel's packed lane layout.

    - stem weights become block-diag over pixel groups and branch-concatenated,
    - shared block conv weights are replicated block-diagonally to LW lanes,
    - post-conv BatchNorm affine is folded into the preceding conv,
    - matmul weights are pre-cast to bf16 (biases/affines stay f32).
    """
    w1, b1, w2, b2, bns, bnb, bw, bb = params
    eye_g = jnp.eye(G, dtype=jnp.float32)
    eye_2g = jnp.eye(2 * G, dtype=jnp.float32)

    def kron_stem(w):                                      # (3,C) -> (3G, C*G)
        return jnp.einsum('ab,cd->acbd', eye_g, w).reshape(CIN * G, C * G)

    ws = jnp.concatenate([kron_stem(w1), kron_stem(w2)], axis=1)          # (3G, LW)
    bs = jnp.concatenate([jnp.tile(b1, (1, G)), jnp.tile(b2, (1, G))], axis=1)

    s0 = jnp.tile(bns[:, 0], (1, 1, 2 * G))                               # (NBLK,1,LW)
    t0 = jnp.tile(bnb[:, 0], (1, 1, 2 * G))

    # Fold BN2 (applied right after the second in-block conv) into that conv.
    wb_f = bw[:, 1] * bns[:, 1]                                           # (NBLK,C,C)
    bb_f = bb[:, 1] * bns[:, 1] + bnb[:, 1]                               # (NBLK,1,C)

    def kron_blk(w):                                       # (NBLK,C,C)->(NBLK,LW,LW)
        return jnp.einsum('ab,ncd->nacbd', eye_2g, w).reshape(NBLK, LW, LW)

    W = jnp.stack([kron_blk(bw[:, 0]), kron_blk(wb_f), kron_blk(bw[:, 2])],
                  axis=1)                                                 # (NBLK,3,LW,LW)
    B = jnp.stack([jnp.tile(bb[:, 0], (1, 1, 2 * G)),
                   jnp.tile(bb_f, (1, 1, 2 * G)),
                   jnp.tile(bb[:, 2], (1, 1, 2 * G))], axis=1)            # (NBLK,3,1,LW)
    return (ws.astype(jnp.bfloat16), bs, s0, t0, W.astype(jnp.bfloat16), B)


def model_forward(x, params, channels_last=False):
    # x: (N, 3, H, W) NCHW, as in PyTorch.
    N, Cin, H, W = x.shape
    xp = jnp.pad(x, ((0, 0), (0, 0), (1, 1), (1, 1)))        # stem padding=1
    Ho, Wo = H + 2, W + 2
    pix = jnp.transpose(xp, (0, 2, 3, 1)).reshape(-1, Cin)   # (P, 3)
    out = run_pallas(pix, prepare_params(params))
    out = out.reshape(N, Ho, Wo, C)
    if channels_last:
        return out                        # NHWC: avoids an extra full relayout
    return out.transpose(0, 3, 1, 2)      # NCHW to match the PyTorch module


def init_params(key):
    ks = jax.random.split(key, 6)
    s = 0.1
    w1 = jax.random.normal(ks[0], (CIN, C), jnp.float32) * s
    b1 = jax.random.normal(ks[1], (1, C), jnp.float32) * s
    w2 = jax.random.normal(ks[2], (CIN, C), jnp.float32) * s
    b2 = jax.random.normal(ks[3], (1, C), jnp.float32) * s
    bw = jax.random.normal(ks[4], (NBLK, 3, C, C), jnp.float32) * s
    bb = jax.random.normal(ks[5], (NBLK, 3, 1, C), jnp.float32) * s
    # BatchNorm (PyTorch defaults): gamma=1, beta=0, running_mean=0, running_var=1
    eps = 1e-5
    gamma = jnp.ones((NBLK, 2, 1, C), jnp.float32)
    beta = jnp.zeros((NBLK, 2, 1, C), jnp.float32)
    mean = jnp.zeros((NBLK, 2, 1, C), jnp.float32)
    var = jnp.ones((NBLK, 2, 1, C), jnp.float32)
    bns = gamma / jnp.sqrt(var + eps)
    bnb = beta - mean * bns
    return (w1, b1, w2, b2, bns, bnb, bw, bb)


def reference(x, params):
    # Pure-JAX reference with the same numerics as the kernel (bf16 matmul
    # operands, f32 accumulation, BN2 folded into the second in-block conv).
    w1, b1, w2, b2, bns, bnb, bw, bb = params
    N, Cin, H, W = x.shape
    xp = jnp.pad(x, ((0, 0), (0, 0), (1, 1), (1, 1)))
    pix = jnp.transpose(xp, (0, 2, 3, 1)).reshape(-1, Cin)

    def bdot(a, b):
        return jnp.dot(a.astype(jnp.bfloat16), b.astype(jnp.bfloat16),
                       preferred_element_type=jnp.float32)

    v1 = bdot(pix, w1) + b1
    v2 = bdot(pix, w2) + b2

    def block(v, i):
        h = v * bns[i, 0] + bnb[i, 0]
        h = jnp.maximum(h, 0.0)
        h = bdot(h, bw[i, 0]) + bb[i, 0]
        h = jnp.maximum(h, 0.0)
        h = bdot(h, bw[i, 1] * bns[i, 1]) + (bb[i, 1] * bns[i, 1] + bnb[i, 1])
        h = jnp.maximum(h, 0.0)
        h = bdot(h, bw[i, 2]) + bb[i, 2]
        return h

    for i in range(NBLK):
        v1 = v1 + block(v1, i)
        v2 = v2 + block(v2, i)
    out = v1 + v2
    return out.reshape(N, H + 2, W + 2, C).transpose(0, 3, 1, 2)


if __name__ == "__main__":
    key = jax.random.PRNGKey(0)
    kx, kp = jax.random.split(key)
    x = jax.random.normal(kx, (2, 3, 16, 16), jnp.float32)
    params = init_params(kp)

    out = jax.jit(model_forward)(x, params)
    out = jax.block_until_ready(out)

    ref = reference(x, params)
    assert out.shape == (2, C, 18, 18), out.shape
    err = float(jnp.max(jnp.abs(out - ref)))
    assert jnp.allclose(out, ref, atol=2e-3, rtol=2e-3), f"mismatch vs reference: {err}"
    print("KERNEL_OK")
</pallas_src>

<mosaic_0001>
module attributes {stable_mosaic.version = 11 : i64} {
  func.func @fwd_kernel(%arg0: i32, %arg1: memref<168x12xf32, #tpu.memory_space<vmem>>, %arg2: memref<12x256xbf16, #tpu.memory_space<vmem>>, %arg3: memref<1x256xf32, #tpu.memory_space<vmem>>, %arg4: memref<3x1x256xf32, #tpu.memory_space<vmem>>, %arg5: memref<3x1x256xf32, #tpu.memory_space<vmem>>, %arg6: memref<3x3x256x256xbf16, #tpu.memory_space<vmem>>, %arg7: memref<3x3x1x256xf32, #tpu.memory_space<vmem>>, %arg8: memref<168x128xf32, #tpu.memory_space<vmem>>) attributes {dimension_semantics = [#tpu.dimension_semantics<parallel>], iteration_bounds = array<i64: 1>, scalar_prefetch = 0 : i64, scratch_operands = 0 : i64, tpu.core_type = #tpu.core_type<tc>, window_params = [{transform_indices = @transform_0, window_bounds = array<i64: 168, 12>}, {pipeline_mode = #tpu.pipeline_mode<synchronous>, transform_indices = @transform_1, window_bounds = array<i64: 12, 256>}, {pipeline_mode = #tpu.pipeline_mode<synchronous>, transform_indices = @transform_2, window_bounds = array<i64: 1, 256>}, {pipeline_mode = #tpu.pipeline_mode<synchronous>, transform_indices = @transform_3, window_bounds = array<i64: 3, 1, 256>}, {pipeline_mode = #tpu.pipeline_mode<synchronous>, transform_indices = @transform_4, window_bounds = array<i64: 3, 1, 256>}, {pipeline_mode = #tpu.pipeline_mode<synchronous>, transform_indices = @transform_5, window_bounds = array<i64: 3, 3, 256, 256>}, {pipeline_mode = #tpu.pipeline_mode<synchronous>, transform_indices = @transform_6, window_bounds = array<i64: 3, 3, 1, 256>}, {transform_indices = @transform_7, window_bounds = array<i64: 168, 128>}]} {
    %c0 = arith.constant 0 : index
    %c0_0 = arith.constant 0 : index
    %0 = vector.load %arg1[%c0, %c0_0] : memref<168x12xf32, #tpu.memory_space<vmem>>, vector<168x12xf32>
    %1 = arith.truncf %0 : vector<168x12xf32> to vector<168x12xbf16>
    %c0_1 = arith.constant 0 : index
    %c0_2 = arith.constant 0 : index
    %2 = vector.load %arg2[%c0_1, %c0_2] : memref<12x256xbf16, #tpu.memory_space<vmem>>, vector<12x256xbf16>
    %cst = arith.constant dense<0.000000e+00> : vector<168x256xf32>
    %3 = tpu.matmul %1, %2, %cst {dimension_numbers = #tpu.dot_dimension_numbers<[1], [0], [0], [1], [0, 0, 1, 1], [], []>} : vector<168x12xbf16>, vector<12x256xbf16>, vector<168x256xf32> -> vector<168x256xf32>
    %c0_3 = arith.constant 0 : index
    %c0_4 = arith.constant 0 : index
    %4 = vector.load %arg3[%c0_3, %c0_4] : memref<1x256xf32, #tpu.memory_space<vmem>>, vector<1x256xf32>
    %5 = vector.broadcast %4 : vector<1x256xf32> to vector<168x256xf32>
    %6 = arith.addf %3, %5 : vector<168x256xf32>
    %c0_5 = arith.constant 0 : index
    %c0_6 = arith.constant 0 : index
    %c0_7 = arith.constant 0 : index
    %7 = vector.load %arg4[%c0_5, %c0_6, %c0_7] : memref<3x1x256xf32, #tpu.memory_space<vmem>>, vector<1x1x256xf32>
    %8 = vector.shape_cast %7 : vector<1x1x256xf32> to vector<1x256xf32>
    %9 = vector.broadcast %8 : vector<1x256xf32> to vector<168x256xf32>
    %10 = arith.mulf %6, %9 : vector<168x256xf32>
    %c0_8 = arith.constant 0 : index
    %c0_9 = arith.constant 0 : index
    %c0_10 = arith.constant 0 : index
    %11 = vector.load %arg5[%c0_8, %c0_9, %c0_10] : memref<3x1x256xf32, #tpu.memory_space<vmem>>, vector<1x1x256xf32>
    %12 = vector.shape_cast %11 : vector<1x1x256xf32> to vector<1x256xf32>
    %13 = vector.broadcast %12 : vector<1x256xf32> to vector<168x256xf32>
    %14 = arith.addf %10, %13 : vector<168x256xf32>
    %cst_11 = arith.constant 0.000000e+00 : f32
    %15 = vector.broadcast %cst_11 : f32 to vector<168x256xf32>
    %16 = arith.maximumf %14, %15 : vector<168x256xf32>
    %17 = arith.truncf %16 : vector<168x256xf32> to vector<168x256xbf16>
    %c0_12 = arith.constant 0 : index
    %c0_13 = arith.constant 0 : index
    %c0_14 = arith.constant 0 : index
    %c0_15 = arith.constant 0 : index
    %18 = vector.load %arg6[%c0_12, %c0_13, %c0_14, %c0_15] : memref<3x3x256x256xbf16, #tpu.memory_space<vmem>>, vector<1x1x256x256xbf16>
    %19 = vector.shape_cast %18 : vector<1x1x256x256xbf16> to vector<256x256xbf16>
    %cst_16 = arith.constant dense<0.000000e+00> : vector<168x256xf32>
    %20 = tpu.matmul %17, %19, %cst_16 {dimension_numbers = #tpu.dot_dimension_numbers<[1], [0], [0], [1], [0, 0, 1, 1], [], []>} : vector<168x256xbf16>, vector<256x256xbf16>, vector<168x256xf32> -> vector<168x256xf32>
    %c0_17 = arith.constant 0 : index
    %c0_18 = arith.constant 0 : index
    %c0_19 = arith.constant 0 : index
    %c0_20 = arith.constant 0 : index
    %21 = vector.load %arg7[%c0_17, %c0_18, %c0_19, %c0_20] : memref<3x3x1x256xf32, #tpu.memory_space<vmem>>, vector<1x1x1x256xf32>
    %22 = vector.shape_cast %21 : vector<1x1x1x256xf32> to vector<1x256xf32>
    %23 = vector.broadcast %22 : vector<1x256xf32> to vector<168x256xf32>
    %24 = arith.addf %20, %23 : vector<168x256xf32>
    %cst_21 = arith.constant 0.000000e+00 : f32
    %25 = vector.broadcast %cst_21 : f32 to vector<168x256xf32>
    %26 = arith.maximumf %24, %25 : vector<168x256xf32>
    %27 = arith.truncf %26 : vector<168x256xf32> to vector<168x256xbf16>
    %c0_22 = arith.constant 0 : index
    %c1 = arith.constant 1 : index
    %c0_23 = arith.constant 0 : index
    %c0_24 = arith.constant 0 : index
    %28 = vector.load %arg6[%c0_22, %c1, %c0_23, %c0_24] : memref<3x3x256x256xbf16, #tpu.memory_space<vmem>>, vector<1x1x256x256xbf16>
    %29 = vector.shape_cast %28 : vector<1x1x256x256xbf16> to vector<256x256xbf16>
    %cst_25 = arith.constant dense<0.000000e+00> : vector<168x256xf32>
    %30 = tpu.matmul %27, %29, %cst_25 {dimension_numbers = #tpu.dot_dimension_numbers<[1], [0], [0], [1], [0, 0, 1, 1], [], []>} : vector<168x256xbf16>, vector<256x256xbf16>, vector<168x256xf32> -> vector<168x256xf32>
    %c0_26 = arith.constant 0 : index
    %c1_27 = arith.constant 1 : index
    %c0_28 = arith.constant 0 : index
    %c0_29 = arith.constant 0 : index
    %31 = vector.load %arg7[%c0_26, %c1_27, %c0_28, %c0_29] : memref<3x3x1x256xf32, #tpu.memory_space<vmem>>, vector<1x1x1x256xf32>
    %32 = vector.shape_cast %31 : vector<1x1x1x256xf32> to vector<1x256xf32>
    %33 = vector.broadcast %32 : vector<1x256xf32> to vector<168x256xf32>
    %34 = arith.addf %30, %33 : vector<168x256xf32>
    %cst_30 = arith.constant 0.000000e+00 : f32
    %35 = vector.broadcast %cst_30 : f32 to vector<168x256xf32>
    %36 = arith.maximumf %34, %35 : vector<168x256xf32>
    %37 = arith.truncf %36 : vector<168x256xf32> to vector<168x256xbf16>
    %c0_31 = arith.constant 0 : index
    %c2 = arith.constant 2 : index
    %c0_32 = arith.constant 0 : index
    %c0_33 = arith.constant 0 : index
    %38 = vector.load %arg6[%c0_31, %c2, %c0_32, %c0_33] : memref<3x3x256x256xbf16, #tpu.memory_space<vmem>>, vector<1x1x256x256xbf16>
    %39 = vector.shape_cast %38 : vector<1x1x256x256xbf16> to vector<256x256xbf16>
    %cst_34 = arith.constant dense<0.000000e+00> : vector<168x256xf32>
    %40 = tpu.matmul %37, %39, %cst_34 {dimension_numbers = #tpu.dot_dimension_numbers<[1], [0], [0], [1], [0, 0, 1, 1], [], []>} : vector<168x256xbf16>, vector<256x256xbf16>, vector<168x256xf32> -> vector<168x256xf32>
    %c0_35 = arith.constant 0 : index
    %c2_36 = arith.constant 2 : index
    %c0_37 = arith.constant 0 : index
    %c0_38 = arith.constant 0 : index
    %41 = vector.load %arg7[%c0_35, %c2_36, %c0_37, %c0_38] : memref<3x3x1x256xf32, #tpu.memory_space<vmem>>, vector<1x1x1x256xf32>
    %42 = vector.shape_cast %41 : vector<1x1x1x256xf32> to vector<1x256xf32>
    %43 = vector.broadcast %42 : vector<1x256xf32> to vector<168x256xf32>
    %44 = arith.addf %40, %43 : vector<168x256xf32>
    %45 = arith.addf %6, %44 : vector<168x256xf32>
    %c1_39 = arith.constant 1 : index
    %c0_40 = arith.constant 0 : index
    %c0_41 = arith.constant 0 : index
    %46 = vector.load %arg4[%c1_39, %c0_40, %c0_41] : memref<3x1x256xf32, #tpu.memory_space<vmem>>, vector<1x1x256xf32>
    %47 = vector.shape_cast %46 : vector<1x1x256xf32> to vector<1x256xf32>
    %48 = vector.broadcast %47 : vector<1x256xf32> to vector<168x256xf32>
    %49 = arith.mulf %45, %48 : vector<168x256xf32>
    %c1_42 = arith.constant 1 : index
    %c0_43 = arith.constant 0 : index
    %c0_44 = arith.constant 0 : index
    %50 = vector.load %arg5[%c1_42, %c0_43, %c0_44] : memref<3x1x256xf32, #tpu.memory_space<vmem>>, vector<1x1x256xf32>
    %51 = vector.shape_cast %50 : vector<1x1x256xf32> to vector<1x256xf32>
    %52 = vector.broadcast %51 : vector<1x256xf32> to vector<168x256xf32>
    %53 = arith.addf %49, %52 : vector<168x256xf32>
    %cst_45 = arith.constant 0.000000e+00 : f32
    %54 = vector.broadcast %cst_45 : f32 to vector<168x256xf32>
    %55 = arith.maximumf %53, %54 : vector<168x256xf32>
    %56 = arith.truncf %55 : vector<168x256xf32> to vector<168x256xbf16>
    %c1_46 = arith.constant 1 : index
    %c0_47 = arith.constant 0 : index
    %c0_48 = arith.constant 0 : index
    %c0_49 = arith.constant 0 : index
    %57 = vector.load %arg6[%c1_46, %c0_47, %c0_48, %c0_49] : memref<3x3x256x256xbf16, #tpu.memory_space<vmem>>, vector<1x1x256x256xbf16>
    %58 = vector.shape_cast %57 : vector<1x1x256x256xbf16> to vector<256x256xbf16>
    %cst_50 = arith.constant dense<0.000000e+00> : vector<168x256xf32>
    %59 = tpu.matmul %56, %58, %cst_50 {dimension_numbers = #tpu.dot_dimension_numbers<[1], [0], [0], [1], [0, 0, 1, 1], [], []>} : vector<168x256xbf16>, vector<256x256xbf16>, vector<168x256xf32> -> vector<168x256xf32>
    %c1_51 = arith.constant 1 : index
    %c0_52 = arith.constant 0 : index
    %c0_53 = arith.constant 0 : index
    %c0_54 = arith.constant 0 : index
    %60 = vector.load %arg7[%c1_51, %c0_52, %c0_53, %c0_54] : memref<3x3x1x256xf32, #tpu.memory_space<vmem>>, vector<1x1x1x256xf32>
    %61 = vector.shape_cast %60 : vector<1x1x1x256xf32> to vector<1x256xf32>
    %62 = vector.broadcast %61 : vector<1x256xf32> to vector<168x256xf32>
    %63 = arith.addf %59, %62 : vector<168x256xf32>
    %cst_55 = arith.constant 0.000000e+00 : f32
    %64 = vector.broadcast %cst_55 : f32 to vector<168x256xf32>
    %65 = arith.maximumf %63, %64 : vector<168x256xf32>
    %66 = arith.truncf %65 : vector<168x256xf32> to vector<168x256xbf16>
    %c1_56 = arith.constant 1 : index
    %c1_57 = arith.constant 1 : index
    %c0_58 = arith.constant 0 : index
    %c0_59 = arith.constant 0 : index
    %67 = vector.load %arg6[%c1_56, %c1_57, %c0_58, %c0_59] : memref<3x3x256x256xbf16, #tpu.memory_space<vmem>>, vector<1x1x256x256xbf16>
    %68 = vector.shape_cast %67 : vector<1x1x256x256xbf16> to vector<256x256xbf16>
    %cst_60 = arith.constant dense<0.000000e+00> : vector<168x256xf32>
    %69 = tpu.matmul %66, %68, %cst_60 {dimension_numbers = #tpu.dot_dimension_numbers<[1], [0], [0], [1], [0, 0, 1, 1], [], []>} : vector<168x256xbf16>, vector<256x256xbf16>, vector<168x256xf32> -> vector<168x256xf32>
    %c1_61 = arith.constant 1 : index
    %c1_62 = arith.constant 1 : index
    %c0_63 = arith.constant 0 : index
    %c0_64 = arith.constant 0 : index
    %70 = vector.load %arg7[%c1_61, %c1_62, %c0_63, %c0_64] : memref<3x3x1x256xf32, #tpu.memory_space<vmem>>, vector<1x1x1x256xf32>
    %71 = vector.shape_cast %70 : vector<1x1x1x256xf32> to vector<1x256xf32>
    %72 = vector.broadcast %71 : vector<1x256xf32> to vector<168x256xf32>
    %73 = arith.addf %69, %72 : vector<168x256xf32>
    %cst_65 = arith.constant 0.000000e+00 : f32
    %74 = vector.broadcast %cst_65 : f32 to vector<168x256xf32>
    %75 = arith.maximumf %73, %74 : vector<168x256xf32>
    %76 = arith.truncf %75 : vector<168x256xf32> to vector<168x256xbf16>
    %c1_66 = arith.constant 1 : index
    %c2_67 = arith.constant 2 : index
    %c0_68 = arith.constant 0 : index
    %c0_69 = arith.constant 0 : index
    %77 = vector.load %arg6[%c1_66, %c2_67, %c0_68, %c0_69] : memref<3x3x256x256xbf16, #tpu.memory_space<vmem>>, vector<1x1x256x256xbf16>
    %78 = vector.shape_cast %77 : vector<1x1x256x256xbf16> to vector<256x256xbf16>
    %cst_70 = arith.constant dense<0.000000e+00> : vector<168x256xf32>
    %79 = tpu.matmul %76, %78, %cst_70 {dimension_numbers = #tpu.dot_dimension_numbers<[1], [0], [0], [1], [0, 0, 1, 1], [], []>} : vector<168x256xbf16>, vector<256x256xbf16>, vector<168x256xf32> -> vector<168x256xf32>
    %c1_71 = arith.constant 1 : index
    %c2_72 = arith.constant 2 : index
    %c0_73 = arith.constant 0 : index
    %c0_74 = arith.constant 0 : index
    %80 = vector.load %arg7[%c1_71, %c2_72, %c0_73, %c0_74] : memref<3x3x1x256xf32, #tpu.memory_space<vmem>>, vector<1x1x1x256xf32>
    %81 = vector.shape_cast %80 : vector<1x1x1x256xf32> to vector<1x256xf32>
    %82 = vector.broadcast %81 : vector<1x256xf32> to vector<168x256xf32>
    %83 = arith.addf %79, %82 : vector<168x256xf32>
    %84 = arith.addf %45, %83 : vector<168x256xf32>
    %c2_75 = arith.constant 2 : index
    %c0_76 = arith.constant 0 : index
    %c0_77 = arith.constant 0 : index
    %85 = vector.load %arg4[%c2_75, %c0_76, %c0_77] : memref<3x1x256xf32, #tpu.memory_space<vmem>>, vector<1x1x256xf32>
    %86 = vector.shape_cast %85 : vector<1x1x256xf32> to vector<1x256xf32>
    %87 = vector.broadcast %86 : vector<1x256xf32> to vector<168x256xf32>
    %88 = arith.mulf %84, %87 : vector<168x256xf32>
    %c2_78 = arith.constant 2 : index
    %c0_79 = arith.constant 0 : index
    %c0_80 = arith.constant 0 : index
    %89 = vector.load %arg5[%c2_78, %c0_79, %c0_80] : memref<3x1x256xf32, #tpu.memory_space<vmem>>, vector<1x1x256xf32>
    %90 = vector.shape_cast %89 : vector<1x1x256xf32> to vector<1x256xf32>
    %91 = vector.broadcast %90 : vector<1x256xf32> to vector<168x256xf32>
    %92 = arith.addf %88, %91 : vector<168x256xf32>
    %cst_81 = arith.constant 0.000000e+00 : f32
    %93 = vector.broadcast %cst_81 : f32 to vector<168x256xf32>
    %94 = arith.maximumf %92, %93 : vector<168x256xf32>
    %95 = arith.truncf %94 : vector<168x256xf32> to vector<168x256xbf16>
    %c2_82 = arith.constant 2 : index
    %c0_83 = arith.constant 0 : index
    %c0_84 = arith.constant 0 : index
    %c0_85 = arith.constant 0 : index
    %96 = vector.load %arg6[%c2_82, %c0_83, %c0_84, %c0_85] : memref<3x3x256x256xbf16, #tpu.memory_space<vmem>>, vector<1x1x256x256xbf16>
    %97 = vector.shape_cast %96 : vector<1x1x256x256xbf16> to vector<256x256xbf16>
    %cst_86 = arith.constant dense<0.000000e+00> : vector<168x256xf32>
    %98 = tpu.matmul %95, %97, %cst_86 {dimension_numbers = #tpu.dot_dimension_numbers<[1], [0], [0], [1], [0, 0, 1, 1], [], []>} : vector<168x256xbf16>, vector<256x256xbf16>, vector<168x256xf32> -> vector<168x256xf32>
    %c2_87 = arith.constant 2 : index
    %c0_88 = arith.constant 0 : index
    %c0_89 = arith.constant 0 : index
    %c0_90 = arith.constant 0 : index
    %99 = vector.load %arg7[%c2_87, %c0_88, %c0_89, %c0_90] : memref<3x3x1x256xf32, #tpu.memory_space<vmem>>, vector<1x1x1x256xf32>
    %100 = vector.shape_cast %99 : vector<1x1x1x256xf32> to vector<1x256xf32>
    %101 = vector.broadcast %100 : vector<1x256xf32> to vector<168x256xf32>
    %102 = arith.addf %98, %101 : vector<168x256xf32>
    %cst_91 = arith.constant 0.000000e+00 : f32
    %103 = vector.broadcast %cst_91 : f32 to vector<168x256xf32>
    %104 = arith.maximumf %102, %103 : vector<168x256xf32>
    %105 = arith.truncf %104 : vector<168x256xf32> to vector<168x256xbf16>
    %c2_92 = arith.constant 2 : index
    %c1_93 = arith.constant 1 : index
    %c0_94 = arith.constant 0 : index
    %c0_95 = arith.constant 0 : index
    %106 = vector.load %arg6[%c2_92, %c1_93, %c0_94, %c0_95] : memref<3x3x256x256xbf16, #tpu.memory_space<vmem>>, vector<1x1x256x256xbf16>
    %107 = vector.shape_cast %106 : vector<1x1x256x256xbf16> to vector<256x256xbf16>
    %cst_96 = arith.constant dense<0.000000e+00> : vector<168x256xf32>
    %108 = tpu.matmul %105, %107, %cst_96 {dimension_numbers = #tpu.dot_dimension_numbers<[1], [0], [0], [1], [0, 0, 1, 1], [], []>} : vector<168x256xbf16>, vector<256x256xbf16>, vector<168x256xf32> -> vector<168x256xf32>
    %c2_97 = arith.constant 2 : index
    %c1_98 = arith.constant 1 : index
    %c0_99 = arith.constant 0 : index
    %c0_100 = arith.constant 0 : index
    %109 = vector.load %arg7[%c2_97, %c1_98, %c0_99, %c0_100] : memref<3x3x1x256xf32, #tpu.memory_space<vmem>>, vector<1x1x1x256xf32>
    %110 = vector.shape_cast %109 : vector<1x1x1x256xf32> to vector<1x256xf32>
    %111 = vector.broadcast %110 : vector<1x256xf32> to vector<168x256xf32>
    %112 = arith.addf %108, %111 : vector<168x256xf32>
    %cst_101 = arith.constant 0.000000e+00 : f32
    %113 = vector.broadcast %cst_101 : f32 to vector<168x256xf32>
    %114 = arith.maximumf %112, %113 : vector<168x256xf32>
    %115 = arith.truncf %114 : vector<168x256xf32> to vector<168x256xbf16>
    %c2_102 = arith.constant 2 : index
    %c2_103 = arith.constant 2 : index
    %c0_104 = arith.constant 0 : index
    %c0_105 = arith.constant 0 : index
    %116 = vector.load %arg6[%c2_102, %c2_103, %c0_104, %c0_105] : memref<3x3x256x256xbf16, #tpu.memory_space<vmem>>, vector<1x1x256x256xbf16>
    %117 = vector.shape_cast %116 : vector<1x1x256x256xbf16> to vector<256x256xbf16>
    %cst_106 = arith.constant dense<0.000000e+00> : vector<168x256xf32>
    %118 = tpu.matmul %115, %117, %cst_106 {dimension_numbers = #tpu.dot_dimension_numbers<[1], [0], [0], [1], [0, 0, 1, 1], [], []>} : vector<168x256xbf16>, vector<256x256xbf16>, vector<168x256xf32> -> vector<168x256xf32>
    %c2_107 = arith.constant 2 : index
    %c2_108 = arith.constant 2 : index
    %c0_109 = arith.constant 0 : index
    %c0_110 = arith.constant 0 : index
    %119 = vector.load %arg7[%c2_107, %c2_108, %c0_109, %c0_110] : memref<3x3x1x256xf32, #tpu.memory_space<vmem>>, vector<1x1x1x256xf32>
    %120 = vector.shape_cast %119 : vector<1x1x1x256xf32> to vector<1x256xf32>
    %121 = vector.broadcast %120 : vector<1x256xf32> to vector<168x256xf32>
    %122 = arith.addf %118, %121 : vector<168x256xf32>
    %123 = arith.addf %84, %122 : vector<168x256xf32>
    %124 = vector.extract_strided_slice %123 {offsets = [0, 0], sizes = [168, 128], strides = [1, 1]} : vector<168x256xf32> to vector<168x128xf32>
    %125 = vector.extract_strided_slice %123 {offsets = [0, 128], sizes = [168, 128], strides = [1, 1]} : vector<168x256xf32> to vector<168x128xf32>
    %126 = arith.addf %124, %125 : vector<168x128xf32>
    %c0_111 = arith.constant 0 : index
    %c0_112 = arith.constant 0 : index
    %127 = vector.load %arg8[%c0_111, %c0_112] : memref<168x128xf32, #tpu.memory_space<vmem>>, vector<168x128xf32>
    tpu.vector_store %arg8[%c0_111, %c0_112], %126 {strides = array<i32>} : memref<168x128xf32, #tpu.memory_space<vmem>>, vector<168x128xf32>,
    return
  }
  func.func @transform_0(%arg0: i32) -> (i32, i32) {
    %c0_i32 = arith.constant 0 : i32
    %c0_i32_0 = arith.constant 0 : i32
    return %arg0, %c0_i32 : i32, i32
  }
  func.func @transform_1(%arg0: i32) -> (i32, i32) {
    %c0_i32 = arith.constant 0 : i32
    %c0_i32_0 = arith.constant 0 : i32
    %c0_i32_1 = arith.constant 0 : i32
    return %c0_i32, %c0_i32_0 : i32, i32
  }
  func.func @transform_2(%arg0: i32) -> (i32, i32) {
    %c0_i32 = arith.constant 0 : i32
    %c0_i32_0 = arith.constant 0 : i32
    %c0_i32_1 = arith.constant 0 : i32
    return %c0_i32, %c0_i32_0 : i32, i32
  }
  func.func @transform_3(%arg0: i32) -> (i32, i32, i32) {
    %c0_i32 = arith.constant 0 : i32
    %c0_i32_0 = arith.constant 0 : i32
    %c0_i32_1 = arith.constant 0 : i32
    %c0_i32_2 = arith.constant 0 : i32
    return %c0_i32, %c0_i32_0, %c0_i32_1 : i32, i32, i32
  }
  func.func @transform_4(%arg0: i32) -> (i32, i32, i32) {
    %c0_i32 = arith.constant 0 : i32
    %c0_i32_0 = arith.constant 0 : i32
    %c0_i32_1 = arith.constant 0 : i32
    %c0_i32_2 = arith.constant 0 : i32
    return %c0_i32, %c0_i32_0, %c0_i32_1 : i32, i32, i32
  }
  func.func @transform_5(%arg0: i32) -> (i32, i32, i32, i32) {
    %c0_i32 = arith.constant 0 : i32
    %c0_i32_0 = arith.constant 0 : i32
    %c0_i32_1 = arith.constant 0 : i32
    %c0_i32_2 = arith.constant 0 : i32
    %c0_i32_3 = arith.constant 0 : i32
    return %c0_i32, %c0_i32_0, %c0_i32_1, %c0_i32_2 : i32, i32, i32, i32
  }
  func.func @transform_6(%arg0: i32) -> (i32, i32, i32, i32) {
    %c0_i32 = arith.constant 0 : i32
    %c0_i32_0 = arith.constant 0 : i32
    %c0_i32_1 = arith.constant 0 : i32
    %c0_i32_2 = arith.constant 0 : i32
    %c0_i32_3 = arith.constant 0 : i32
    return %c0_i32, %c0_i32_0, %c0_i32_1, %c0_i32_2 : i32, i32, i32, i32
  }
  func.func @transform_7(%arg0: i32) -> (i32, i32) {
    %c0_i32 = arith.constant 0 : i32
    %c0_i32_0 = arith.constant 0 : i32
    return %arg0, %c0_i32 : i32, i32
  }
}

</mosaic_0001>

<bundles_post_ra>
// kernel: model_forward.1
= control target key start
LH: loop header
LB: loop body
LE: loop exit
PB: predicated region body
PF: predicated region fallthrough
CT: control target
= control target key end

     0   :  { %vm115_vm0 = vcmask 1045504   ;;  %v5498_v1 = vmov 0   ;;  %vm81_vm1 = vcmask 97280   ;;  %s7989_s1 = inlined_call_operand.vmem [shape: bf16[12,256], index: 1, kind: input, shape index: {}]   ;;  %s7990_s0 = inlined_call_operand.vmem [shape: f32[168,12], index: 0, kind: input, shape index: {}]   ;;  %s7991_s5 = inlined_call_operand.vmem [shape: bf16[3,3,256,256], index: 5, kind: input, shape index: {}]   ;;  %s7992_s2 = inlined_call_operand.vmem [shape: f32[1,256], index: 2, kind: input, shape index: {}]   ;;  %s7993_s3 = inlined_call_operand.vmem [shape: f32[3,1,256], index: 3, kind: input, shape index: {}]   ;;  %s7994_s4 = inlined_call_operand.vmem [shape: f32[3,1,256], index: 4, kind: input, shape index: {}]   ;;  %s7995_s6 = inlined_call_operand.vmem [shape: f32[3,3,1,256], index: 6, kind: input, shape index: {}]   ;;  %s7996_s7 = inlined_call_operand.vmem [shape: f32[168,128], index: 7, kind: output, shape index: {}]  }
   0x1   :  { %v5063_v0 = vld [vmem:[%s7989_s1 + $0x4] ss:$8 sps:$4 sm:$0x3f]   ;;  %154 = vmatprep.mubr.bf16.mxu0 %v5498_v1  ;;  %v5065_v2 = vld [vmem:[%s7989_s1] ss:$8 sps:$4 sm:$0x3f]  }
   0x2   :  { %v27_v3 = vld [vmem:[%s7990_s0] sm:$0xff]  ;;  %v28_v4 = vld [vmem:[%s7990_s0 + $0x8] sm:$0xff]  ;;  %4462 = vmatprep.subr.msk.bf16.mxu0 %vm115_vm0, %v5063_v0  ;;  %v117_v5 = vsel %vm115_vm0, %v5065_v2, 0  ;;  %v29_v7 = vld [vmem:[%s7990_s0 + $0x10] sm:$0xff] }
   0x3   :  { %v48_v6 = vpack.c.bf16 %v28_v4, %v27_v3  ;;  %123 = vmatpush1.bf16.msra.mxu0 %v117_v5  ;;  %v30_v8 = vld [vmem:[%s7990_s0 + $0x18] sm:$0xff]  ;;  %v5066_v9 = vld [vmem:[%s7991_s5 + $0x4] ss:$8 sps:$4 sm:$0xff]   ;;  %v5068_v10 = vld [vmem:[%s7991_s5] ss:$8 sps:$4 sm:$0xff]  }
   0x4   :  { %v5069_v11 = vld [vmem:[%s7991_s5 + $0x14] ss:$8 sps:$4 sm:$0xff]   ;;  %v49_v12 = vpack.c.bf16 %v30_v8, %v29_v7  ;;  %639 = vmatprep.subr.bf16.mxu1 %v5066_v9  ;;  %v5071_v13 = vld [vmem:[%s7991_s5 + $0x10] ss:$8 sps:$4 sm:$0xff]   ;;  %v5072_v14 = vld [vmem:[%s7991_s5 + $0x24] ss:$8 sps:$4 sm:$0xff]  }
   0x5   :  { %640 = vmatpush1.bf16.msra.mxu1 %v5068_v10  ;;  %v31_v15 = vld [vmem:[%s7990_s0 + $0x20] sm:$0xff]  ;;  %v32_v16 = vld [vmem:[%s7990_s0 + $0x28] sm:$0xff]  ;;  %v5075_v18 = vld [vmem:[%s7991_s5 + $0x34] ss:$8 sps:$4 sm:$0xff]  }
   0x6   :  { %4463 = vmatmul.mubr.msk.bf16.vlgmr.msra.gmra.mrb[0].mxu0 %vm81_vm1, %v48_v6  ;;  %641 = vmatprep.subr.bf16.mxu1 %v5069_v11  ;;  %v5074_v17 = vld [vmem:[%s7991_s5 + $0x20] ss:$8 sps:$4 sm:$0xff]   ;;  %v50_v19 = vpack.c.bf16 %v32_v16, %v31_v15  ;;  %v5077_v20 = vld [vmem:[%s7991_s5 + $0x30] ss:$8 sps:$4 sm:$0xff]   ;;  %v5078_v21 = vld [vmem:[%s7991_s5 + $0x44] ss:$8 sps:$4 sm:$0xff]   ;;  %v63_v15 = vlaneseq }
   0x7   :  { %164 = vmatprep.mubr.bf16.mxu0 %v5498_v1  ;;  %v33_v22 = vld [vmem:[%s7990_s0 + $0x30] sm:$0xff]  ;;  %v34_v23 = vld [vmem:[%s7990_s0 + $0x38] sm:$0xff]  ;;  %v5080_v24 = vld [vmem:[%s7991_s5 + $0x40] ss:$8 sps:$4 sm:$0xff]  }
   0x8   :  { %v5081_v25 = vld [vmem:[%s7991_s5 + $0x54] ss:$8 sps:$4 sm:$0xff]   ;;  %v5083_v26 = vld [vmem:[%s7991_s5 + $0x50] ss:$8 sps:$4 sm:$0xff]   ;;  %v51_v27 = vpack.c.bf16 %v34_v23, %v33_v22  ;;  %v5084_v28 = vld [vmem:[%s7991_s5 + $0x64] ss:$8 sps:$4 sm:$0xff]  }
   0x9   :  { %642 = vmatpush1.bf16.msra.mxu1 %v5071_v13  ;;  %v35_v29 = vld [vmem:[%s7990_s0 + $0x40] sm:$0xff]  ;;  %v36_v30 = vld [vmem:[%s7990_s0 + $0x48] sm:$0xff]  ;;  %v5087_v32 = vld [vmem:[%s7991_s5 + $0x74] ss:$8 sps:$4 sm:$0xff]  }
   0xa   :  { %643 = vmatprep.subr.bf16.mxu1 %v5072_v14  ;;  %v5086_v31 = vld [vmem:[%s7991_s5 + $0x60] ss:$8 sps:$4 sm:$0xff]   ;;  %v5089_v33 = vld [vmem:[%s7991_s5 + $0x70] ss:$8 sps:$4 sm:$0xff]   ;;  %v52_v34 = vpack.c.bf16 %v36_v30, %v35_v29  ;;  %v5090_v35 = vld [vmem:[%s7991_s5 + $0x84] ss:$8 sps:$4 sm:$0xff]  }
   0xb   :  { %v37_v36 = vld [vmem:[%s7990_s0 + $0x50] sm:$0xff]  ;;  %v38_v37 = vld [vmem:[%s7990_s0 + $0x58] sm:$0xff]  ;;  %v5092_v38 = vld [vmem:[%s7991_s5 + $0x80] ss:$8 sps:$4 sm:$0xff]  }
   0xc   :  { %v5093_v39 = vld [vmem:[%s7991_s5 + $0x94] ss:$8 sps:$4 sm:$0xff]   ;;  %v5095_v40 = vld [vmem:[%s7991_s5 + $0x90] ss:$8 sps:$4 sm:$0xff]   ;;  %v53_v41 = vpack.c.bf16 %v38_v37, %v37_v36  ;;  %v5096_v42 = vld [vmem:[%s7991_s5 + $0xa4] ss:$8 sps:$4 sm:$0xff]  }
   0xd   :  { %644 = vmatpush1.bf16.msra.mxu1 %v5074_v17  ;;  %v39_v43 = vld [vmem:[%s7990_s0 + $0x60] sm:$0xff]  ;;  %v40_v44 = vld [vmem:[%s7990_s0 + $0x68] sm:$0xff]  ;;  %v5099_v46 = vld [vmem:[%s7991_s5 + $0xb4] ss:$8 sps:$4 sm:$0xff]  }
   0xe   :  { %4464 = vmatmul.mubr.msk.bf16.gmra.mrb[4].mxu0 %vm81_vm1, %v49_v12  ;;  %645 = vmatprep.subr.bf16.mxu1 %v5075_v18  ;;  %v5098_v45 = vld [vmem:[%s7991_s5 + $0xa0] ss:$8 sps:$4 sm:$0xff]   ;;  %v5101_v47 = vld [vmem:[%s7991_s5 + $0xb0] ss:$8 sps:$4 sm:$0xff]   ;;  %v54_v48 = vpack.c.bf16 %v40_v44, %v39_v43  ;;  %v5102_v49 = vld [vmem:[%s7991_s5 + $0xc4] ss:$8 sps:$4 sm:$0xff]  }
   0xf   :  { %174 = vmatprep.mubr.bf16.mxu0 %v5498_v1  ;;  %v41_v50 = vld [vmem:[%s7990_s0 + $0x70] sm:$0xff]  ;;  %v42_v51 = vld [vmem:[%s7990_s0 + $0x78] sm:$0xff]  ;;  %v43_v53 = vld [vmem:[%s7990_s0 + $0x80] sm:$0xff]  ;;  %v64_v18 = vshrl.u32 %v63_v15, 7 }
  0x10   :  { %v55_v52 = vpack.c.bf16 %v42_v51, %v41_v50  ;;  %v44_v54 = vld [vmem:[%s7990_s0 + $0x88] sm:$0xff]  ;;  %v45_v56 = vld [vmem:[%s7990_s0 + $0x90] sm:$0xff]  ;;  %v46_v57 = vld [vmem:[%s7990_s0 + $0x98] sm:$0xff] }
  0x11   :  { %646 = vmatpush1.bf16.msra.mxu1 %v5077_v20  ;;  %v56_v55 = vpack.c.bf16 %v44_v54, %v43_v53  ;;  %v57_v58 = vpack.c.bf16 %v46_v57, %v45_v56  ;;  %v47_v59 = vld [vmem:[%s7990_s0 + $0xa0] sm:$0xff]  ;;  %v5105_v62 = vld [vmem:[%s7991_s5 + $0xd4] ss:$8 sps:$4 sm:$0xff]   ;;  %v5107_v63 = vld [vmem:[%s7991_s5 + $0xd0] ss:$8 sps:$4 sm:$0xff]   ;;  %v5776_v23 = vsub.s32 1, %v64_v18 }
  0x12   :  { %647 = vmatprep.subr.bf16.mxu1 %v5078_v21  ;;  %v58_v60 = vpack.c.bf16 %v47_v59, %v47_v59  ;;  %v5104_v61 = vld [vmem:[%s7991_s5 + $0xc0] ss:$8 sps:$4 sm:$0xff]   ;;  %v5108_v0 = vld [vmem:[%s7991_s5 + $0xe4] ss:$8 sps:$4 sm:$0xff]   ;;  %v5111_v2 = vld [vmem:[%s7991_s5 + $0xf4] ss:$8 sps:$4 sm:$0xff]  }
  0x13   :  { %v5113_v3 = vld [vmem:[%s7991_s5 + $0xf0] ss:$8 sps:$4 sm:$0xff]   ;;  %v5114_v4 = vld [vmem:[%s7991_s5 + $0x100] ss:$8 sps:$4 sm:$0xff]   ;;  %v5116_v5 = vld [vmem:[%s7991_s5 + $0x104] ss:$8 sps:$4 sm:$0xff]  }
  0x14   :  { %v5119_v6 = vld [vmem:[%s7991_s5 + $0x114] ss:$8 sps:$4 sm:$0xff]   ;;  %1050 = vmatprep.subr.bf16.mxu0 %v5116_v5  ;;  %v5117_v7 = vld [vmem:[%s7991_s5 + $0x110] ss:$8 sps:$4 sm:$0xff]   ;;  %v5122_v8 = vld [vmem:[%s7991_s5 + $0x124] ss:$8 sps:$4 sm:$0xff]  }
  0x15   :  { %648 = vmatpush1.bf16.msra.mxu1 %v5080_v24  ;;  %1051 = vmatpush1.bf16.msra.mxu0 %v5114_v4  ;;  %v5120_v9 = vld [vmem:[%s7991_s5 + $0x120] ss:$8 sps:$4 sm:$0xff]   ;;  %v5125_v10 = vld [vmem:[%s7991_s5 + $0x134] ss:$8 sps:$4 sm:$0xff]   ;;  %v5123_v11 = vld [vmem:[%s7991_s5 + $0x130] ss:$8 sps:$4 sm:$0xff]  }
  0x16   :  { %4465 = vmatmul.mubr.msk.bf16.gmra.mrb[8].mxu0 %vm81_vm1, %v50_v19  ;;  %649 = vmatprep.subr.bf16.mxu1 %v5081_v25  ;;  %v5128_v12 = vld [vmem:[%s7991_s5 + $0x144] ss:$8 sps:$4 sm:$0xff]   ;;  %v5126_v13 = vld [vmem:[%s7991_s5 + $0x140] ss:$8 sps:$4 sm:$0xff]   ;;  %v5131_v14 = vld [vmem:[%s7991_s5 + $0x154] ss:$8 sps:$4 sm:$0xff]  }
  0x17   :  { %184 = vmatprep.mubr.bf16.mxu0 %v5498_v1  ;;  %1052 = vmatprep.subr.bf16.mxu0 %v5119_v6  ;;  %v5129_v16 = vld [vmem:[%s7991_s5 + $0x150] ss:$8 sps:$4 sm:$0xff]   ;;  %v5134_v17 = vld [vmem:[%s7991_s5 + $0x164] ss:$8 sps:$4 sm:$0xff]   ;;  %v5132_v19 = vld [vmem:[%s7991_s5 + $0x160] ss:$8 sps:$4 sm:$0xff]  }
  0x18   :  { %v5137_v20 = vld [vmem:[%s7991_s5 + $0x174] ss:$8 sps:$4 sm:$0xff]   ;;  %v5771_v21 = vsub.s32 0, %v64_v18  ;;  %v61_v22 = vld [vmem:[%s7992_s2] sm:$0x3]  ;;  %8024 = vst [vmem:[#allocation2_spill] sm:$0xff] %v5776_v23 }
  0x19   :  { %650 = vmatpush1.bf16.msra.mxu1 %v5083_v26  ;;  %1053 = vmatpush1.bf16.msra.mxu0 %v5117_v7  ;;  %v5135_v24 = vld [vmem:[%s7991_s5 + $0x170] ss:$8 sps:$4 sm:$0xff]   ;;  %v5140_v25 = vld [vmem:[%s7991_s5 + $0x184] ss:$8 sps:$4 sm:$0xff]   ;;  %v263_v26 = vld [vmem:[%s7993_s3] sm:$0x3] }
  0x1a   :  { %651 = vmatprep.subr.bf16.mxu1 %v5084_v28  ;;  %1054 = vmatprep.subr.bf16.mxu0 %v5122_v8  ;;  %v5791_v28 = vrot.slane %v61_v22, %v5776_v23  ;;  %v5138_v29 = vld [vmem:[%s7991_s5 + $0x180] ss:$8 sps:$4 sm:$0xff]   ;;  %v5797_v30 = vrot.slane %v263_v26, %v5771_v21  ;;  %v5149_v54 = vld [vmem:[%s7991_s5 + $0x1b4] ss:$8 sps:$4 sm:$0xff]   ;;  %v5152_v5 = vld [vmem:[%s7991_s5 + $0x1c4] ss:$8 sps:$4 sm:$0xff]  }
  0x1b   :  { %v5144_v51 = vld [vmem:[%s7991_s5 + $0x1a0] ss:$8 sps:$4 sm:$0xff]  }
  0x1d   :  { %652 = vmatpush1.bf16.msra.mxu1 %v5086_v31  ;;  %1055 = vmatpush1.bf16.msra.mxu0 %v5120_v9  ;;  %v317_v31 = vld [vmem:[%s7994_s4] sm:$0x3] }
  0x1e   :  { %4466 = vmatmul.mubr.msk.bf16.gmra.mrb[12].mxu0 %vm81_vm1, %v51_v27  ;;  %653 = vmatprep.subr.bf16.mxu1 %v5087_v32  ;;  %v5788_v27 = vrot.slane %v61_v22, %v5771_v21  ;;  %v5143_v32 = vld [vmem:[%s7991_s5 + $0x194] ss:$8 sps:$4 sm:$0xff]  }
  0x1f   :  { %194 = vmatprep.mubr.bf16.mxu0 %v5498_v1  ;;  %1056 = vmatprep.subr.bf16.mxu0 %v5125_v10 }
  0x21   :  { %654 = vmatpush1.bf16.msra.mxu1 %v5089_v33  ;;  %1057 = vmatpush1.bf16.msra.mxu0 %v5123_v11 }
  0x22   :  { %655 = vmatprep.subr.bf16.mxu1 %v5090_v35  ;;  %1058 = vmatprep.subr.bf16.mxu0 %v5128_v12 }
  0x25   :  { %656 = vmatpush1.bf16.msra.mxu1 %v5092_v38  ;;  %1059 = vmatpush1.bf16.msra.mxu0 %v5126_v13  ;;  %v5150_v13 = vld [vmem:[%s7991_s5 + $0x1c0] ss:$8 sps:$4 sm:$0xff]  }
  0x26   :  { %4467 = vmatmul.mubr.msk.bf16.gmra.mrb[16].mxu0 %vm81_vm1, %v52_v34  ;;  %657 = vmatprep.subr.bf16.mxu1 %v5093_v39  ;;  %v5806_v34 = vrot.slane %v263_v26, %v5776_v23  ;;  %v5815_v39 = vrot.slane %v317_v31, %v5776_v23 }
  0x27   :  { %204 = vmatprep.mubr.bf16.mxu0 %v5498_v1  ;;  %1060 = vmatprep.subr.bf16.mxu0 %v5131_v14 }
  0x29   :  { %658 = vmatpush1.bf16.msra.mxu1 %v5095_v40  ;;  %1061 = vmatpush1.bf16.msra.mxu0 %v5129_v16  ;;  %v5141_v40 = vld [vmem:[%s7991_s5 + $0x190] ss:$8 sps:$4 sm:$0xff]   ;;  %v5155_v16 = vld [vmem:[%s7991_s5 + $0x1d4] ss:$8 sps:$4 sm:$0xff]  }
  0x2a   :  { %659 = vmatprep.subr.bf16.mxu1 %v5096_v42  ;;  %1062 = vmatprep.subr.bf16.mxu0 %v5134_v17  ;;  %v5823_v42 = vrot.slane %v317_v31, %v5771_v21  ;;  %v5153_v31 = vld [vmem:[%s7991_s5 + $0x1d0] ss:$8 sps:$4 sm:$0xff]  }
  0x2d   :  { %660 = vmatpush1.bf16.msra.mxu1 %v5098_v45  ;;  %1063 = vmatpush1.bf16.msra.mxu0 %v5132_v19  ;;  %v5146_v45 = vld [vmem:[%s7991_s5 + $0x1a4] ss:$8 sps:$4 sm:$0xff]  }
  0x2e   :  { %4468 = vmatmul.mubr.msk.bf16.gmra.mrb[20].mxu0 %vm81_vm1, %v53_v41  ;;  %661 = vmatprep.subr.bf16.mxu1 %v5099_v46 }
  0x2f   :  { %214 = vmatprep.mubr.bf16.mxu0 %v5498_v1  ;;  %1064 = vmatprep.subr.bf16.mxu0 %v5137_v20 }
  0x31   :  { %662 = vmatpush1.bf16.msra.mxu1 %v5101_v47  ;;  %1065 = vmatpush1.bf16.msra.mxu0 %v5135_v24 }
  0x32   :  { %663 = vmatprep.subr.bf16.mxu1 %v5102_v49  ;;  %1066 = vmatprep.subr.bf16.mxu0 %v5140_v25 }
  0x35   :  { %664 = vmatpush1.bf16.msra.mxu1 %v5104_v61  ;;  %1067 = vmatpush1.bf16.msra.mxu0 %v5138_v29 }
  0x36   :  { %4469 = vmatmul.mubr.msk.bf16.gmra.mrb[24].mxu0 %vm81_vm1, %v54_v48  ;;  %665 = vmatprep.subr.bf16.mxu1 %v5105_v62 }
  0x37   :  { %224 = vmatprep.mubr.bf16.mxu0 %v5498_v1  ;;  %1068 = vmatprep.subr.bf16.mxu0 %v5143_v32 }
  0x39   :  { %666 = vmatpush1.bf16.msra.mxu1 %v5107_v63  ;;  %1069 = vmatpush1.bf16.msra.mxu0 %v5141_v40  ;;  %v5158_v40 = vld [vmem:[%s7991_s5 + $0x1e4] ss:$8 sps:$4 sm:$0xff]  }
  0x3a   :  { %667 = vmatprep.subr.bf16.mxu1 %v5108_v0  ;;  %1070 = vmatprep.subr.bf16.mxu0 %v5146_v45  ;;  %v5147_v0 = vld [vmem:[%s7991_s5 + $0x1b0] ss:$8 sps:$4 sm:$0xff]  }
  0x3d   :  { %1071 = vmatpush1.bf16.msra.mxu0 %v5144_v51  ;;  %v5156_v51 = vld [vmem:[%s7991_s5 + $0x1e0] ss:$8 sps:$4 sm:$0xff]  }
  0x3e   :  { %4470 = vmatmul.mubr.msk.bf16.gmra.mrb[28].mxu0 %vm81_vm1, %v55_v52  ;;  %1072 = vmatprep.subr.bf16.mxu0 %v5149_v54 }
  0x3f   :  { %234 = vmatprep.mubr.bf16.mxu0 %v5498_v1 }
  0x41   :  { %1073 = vmatpush1.bf16.msra.mxu0 %v5147_v0 }
  0x42   :  { %1074 = vmatprep.subr.bf16.mxu0 %v5152_v5 }
  0x45   :  { %1075 = vmatpush1.bf16.msra.mxu0 %v5150_v13 }
  0x46   :  { %4471 = vmatmul.mubr.msk.bf16.gmra.mrb[32].mxu0 %vm81_vm1, %v56_v55  ;;  %1076 = vmatprep.subr.bf16.mxu0 %v5155_v16 }
  0x47   :  { %244 = vmatprep.mubr.bf16.mxu0 %v5498_v1 }
  0x49   :  { %1077 = vmatpush1.bf16.msra.mxu0 %v5153_v31 }
  0x4a   :  { %1078 = vmatprep.subr.bf16.mxu0 %v5158_v40 }
  0x4d   :  { %1079 = vmatpush1.bf16.msra.mxu0 %v5156_v51 }
  0x4e   :  { %4472 = vmatmul.mubr.msk.bf16.gmra.mrb[36].mxu0 %vm81_vm1, %v57_v58 }
  0x4f   :  { %254 = vmatprep.mubr.bf16.mxu0 %v5498_v1  ;;  %v5110_v1 = vld [vmem:[%s7991_s5 + $0xe0] ss:$8 sps:$4 sm:$0xff]  }
  0x50   :  { %668 = vmatpush1.bf16.msra.mxu1 %v5110_v1 }
  0x51   :  { %669 = vmatprep.subr.bf16.mxu1 %v5111_v2 }
  0x54   :  { %670 = vmatpush1.bf16.msra.mxu1 %v5113_v3 }
  0x56   :  { %4473 = vmatmul.mubr.msk.bf16.gmra.mrb[40].mxu0 %vm81_vm1, %v58_v60 }
  0xd9   :  { %v156_v33 = vpop.f32.mrb[0].mxu0 }
  0xda   :  { %v5809_v35 = vadd.f32 %v156_v33, %v5788_v27  ;;  %v158_v36 = vpop.f32.mrb[1].mxu0 }
  0xdb   :  { %v5812_v37 = vadd.f32 %v158_v36, %v5791_v28  ;;  %v160_v38 = vpop.f32.mrb[2].mxu0 }
  0xdc   :  { %v275_v41 = vmul.f32 %v5797_v30, %v5809_v35  ;;  %v5826_v43 = vadd.f32 %v160_v38, %v5788_v27  ;;  %v162_v44 = vpop.f32.mrb[3].mxu0 }
  0xdd   :  { %v276_v46 = vmul.f32 %v5806_v34, %v5812_v37  ;;  %v5834_v47 = vadd.f32 %v162_v44, %v5791_v28 }
  0xde   :  { %v277_v48 = vmul.f32 %v5797_v30, %v5826_v43  ;;  %v329_v52 = vadd.f32 %v5823_v42, %v275_v41 }
  0xdf   :  { %v278_v49 = vmul.f32 %v5806_v34, %v5834_v47  ;;  %v330_v50 = vadd.f32 %v5815_v39, %v276_v46 }
  0xe0   :  { %v331_v53 = vadd.f32 %v5823_v42, %v277_v48  ;;  %v371_v1 = vmax.f32 %v329_v52, 0.0 }
  0xe1   :  { %v166_v55 = vpop.f32.mrb[4].mxu0  ;;  %v332_v56 = vadd.f32 %v5815_v39, %v278_v49  ;;  %v372_v62 = vmax.f32 %v330_v50, 0.0 }
  0xe2   :  { %v373_v57 = vmax.f32 %v331_v53, 0.0  ;;  %v5851_v58 = vadd.f32 %v166_v55, %v5788_v27  ;;  %v168_v59 = vpop.f32.mrb[5].mxu0 }
  0xe3   :  { %v5854_v60 = vadd.f32 %v168_v59, %v5791_v28  ;;  %v170_v61 = vpop.f32.mrb[6].mxu0  ;;  %v374_v63 = vmax.f32 %v332_v56, 0.0 }
  0xe4   :  { %v279_v2 = vmul.f32 %v5797_v30, %v5851_v58  ;;  %v5862_v3 = vadd.f32 %v170_v61, %v5788_v27  ;;  %v172_v4 = vpop.f32.mrb[7].mxu0  ;;  %v413_v10 = vpack.c.bf16 %v373_v57, %v371_v1 }
  0xe5   :  { %v280_v6 = vmul.f32 %v5806_v34, %v5854_v60  ;;  %v5870_v7 = vadd.f32 %v172_v4, %v5791_v28  ;;  %v414_v8 = vpack.c.bf16 %v374_v63, %v372_v62 }
  0xe6   :  { %v281_v9 = vmul.f32 %v5797_v30, %v5862_v3  ;;  %v333_v14 = vadd.f32 %v5823_v42, %v279_v2 }
  0xe7   :  { %v334_v11 = vadd.f32 %v5815_v39, %v280_v6  ;;  %v282_v12 = vmul.f32 %v5806_v34, %v5870_v7  ;;  %671 = vmatprep.mubr.bf16.mxu1 %v414_v8 }
  0xe8   :  { %v335_v15 = vadd.f32 %v5823_v42, %v281_v9  ;;  %672 = vmatmul.mubr.bf16.vlgmr.msra.gmra.mrb[0].mxu1 %v413_v10  ;;  %v375_v32 = vmax.f32 %v333_v14, 0.0 }
  0xe9   :  { %v336_v17 = vadd.f32 %v5815_v39, %v282_v12  ;;  %v176_v18 = vpop.f32.mrb[8].mxu0  ;;  %v376_v24 = vmax.f32 %v334_v11, 0.0 }
  0xea   :  { %v377_v19 = vmax.f32 %v335_v15, 0.0  ;;  %v5887_v20 = vadd.f32 %v176_v18, %v5788_v27  ;;  %v178_v22 = vpop.f32.mrb[9].mxu0 }
  0xeb   :  { %v378_v25 = vmax.f32 %v336_v17, 0.0  ;;  %v5890_v26 = vadd.f32 %v178_v22, %v5791_v28  ;;  %v180_v29 = vpop.f32.mrb[10].mxu0 }
  0xec   :  { %v283_v33 = vmul.f32 %v5797_v30, %v5887_v20  ;;  %v5898_v36 = vadd.f32 %v180_v29, %v5788_v27  ;;  %v182_v38 = vpop.f32.mrb[11].mxu0  ;;  %v415_v48 = vpack.c.bf16 %v377_v19, %v375_v32 }
  0xed   :  { %v284_v41 = vmul.f32 %v5806_v34, %v5890_v26  ;;  %v5906_v44 = vadd.f32 %v182_v38, %v5791_v28  ;;  %v416_v45 = vpack.c.bf16 %v378_v25, %v376_v24 }
  0xee   :  { %v285_v46 = vmul.f32 %v5797_v30, %v5898_v36  ;;  %v337_v52 = vadd.f32 %v5823_v42, %v283_v33 }
  0xef   :  { %v338_v49 = vadd.f32 %v5815_v39, %v284_v41  ;;  %v286_v50 = vmul.f32 %v5806_v34, %v5906_v44  ;;  %681 = vmatprep.mubr.bf16.mxu1 %v416_v45 }
  0xf0   :  { %v339_v53 = vadd.f32 %v5823_v42, %v285_v46  ;;  %682 = vmatmul.mubr.bf16.gmra.mrb[4].mxu1 %v415_v48  ;;  %v379_v1 = vmax.f32 %v337_v52, 0.0 }
  0xf1   :  { %v340_v54 = vadd.f32 %v5815_v39, %v286_v50  ;;  %v186_v55 = vpop.f32.mrb[12].mxu0  ;;  %v380_v61 = vmax.f32 %v338_v49, 0.0 }
  0xf2   :  { %v381_v56 = vmax.f32 %v339_v53, 0.0  ;;  %v5920_v57 = vadd.f32 %v186_v55, %v5788_v27  ;;  %v188_v59 = vpop.f32.mrb[13].mxu0 }
  0xf3   :  { %v382_v62 = vmax.f32 %v340_v54, 0.0  ;;  %v5923_v63 = vadd.f32 %v188_v59, %v5791_v28  ;;  %v190_v0 = vpop.f32.mrb[14].mxu0 }
  0xf4   :  { %v287_v2 = vmul.f32 %v5797_v30, %v5920_v57  ;;  %v5928_v4 = vadd.f32 %v190_v0, %v5788_v27  ;;  %v192_v5 = vpop.f32.mrb[15].mxu0  ;;  %v417_v11 = vpack.c.bf16 %v381_v56, %v379_v1 }
  0xf5   :  { %v288_v6 = vmul.f32 %v5806_v34, %v5923_v63  ;;  %v5933_v8 = vadd.f32 %v192_v5, %v5791_v28  ;;  %v418_v9 = vpack.c.bf16 %v382_v62, %v380_v61 }
  0xf6   :  { %v289_v10 = vmul.f32 %v5797_v30, %v5928_v4  ;;  %v341_v14 = vadd.f32 %v5823_v42, %v287_v2 }
  0xf7   :  { %v342_v12 = vadd.f32 %v5815_v39, %v288_v6  ;;  %v290_v13 = vmul.f32 %v5806_v34, %v5933_v8  ;;  %691 = vmatprep.mubr.bf16.mxu1 %v418_v9 }
  0xf8   :  { %v343_v15 = vadd.f32 %v5823_v42, %v289_v10  ;;  %692 = vmatmul.mubr.bf16.gmra.mrb[8].mxu1 %v417_v11  ;;  %v383_v32 = vmax.f32 %v341_v14, 0.0 }
  0xf9   :  { %v344_v16 = vadd.f32 %v5815_v39, %v290_v13  ;;  %v196_v17 = vpop.f32.mrb[16].mxu0  ;;  %v384_v24 = vmax.f32 %v342_v12, 0.0 }
  0xfa   :  { %v385_v18 = vmax.f32 %v343_v15, 0.0  ;;  %v5944_v19 = vadd.f32 %v196_v17, %v5788_v27  ;;  %v198_v22 = vpop.f32.mrb[17].mxu0 }
  0xfb   :  { %v386_v25 = vmax.f32 %v344_v16, 0.0  ;;  %v5947_v29 = vadd.f32 %v198_v22, %v5791_v28  ;;  %v200_v31 = vpop.f32.mrb[18].mxu0 }
  0xfc   :  { %v291_v33 = vmul.f32 %v5797_v30, %v5944_v19  ;;  %v5952_v38 = vadd.f32 %v200_v31, %v5788_v27  ;;  %v202_v40 = vpop.f32.mrb[19].mxu0  ;;  %v419_v49 = vpack.c.bf16 %v385_v18, %v383_v32 }
  0xfd   :  { %v292_v41 = vmul.f32 %v5806_v34, %v5947_v29  ;;  %v5957_v45 = vadd.f32 %v202_v40, %v5791_v28  ;;  %v420_v46 = vpack.c.bf16 %v386_v25, %v384_v24 }
  0xfe   :  { %v293_v48 = vmul.f32 %v5797_v30, %v5952_v38  ;;  %v345_v52 = vadd.f32 %v5823_v42, %v291_v33 }
  0xff   :  { %v346_v50 = vadd.f32 %v5815_v39, %v292_v41  ;;  %v294_v51 = vmul.f32 %v5806_v34, %v5957_v45  ;;  %701 = vmatprep.mubr.bf16.mxu1 %v420_v46 }
 0x100   :  { %v347_v53 = vadd.f32 %v5823_v42, %v293_v48  ;;  %702 = vmatmul.mubr.bf16.gmra.mrb[12].mxu1 %v419_v49  ;;  %v387_v5 = vmax.f32 %v345_v52, 0.0 }
 0x101   :  { %v348_v54 = vadd.f32 %v5815_v39, %v294_v51  ;;  %v206_v55 = vpop.f32.mrb[20].mxu0  ;;  %v388_v62 = vmax.f32 %v346_v50, 0.0 }
 0x102   :  { %v389_v56 = vmax.f32 %v347_v53, 0.0  ;;  %v5968_v59 = vadd.f32 %v206_v55, %v5788_v27  ;;  %v208_v61 = vpop.f32.mrb[21].mxu0 }
 0x103   :  { %v390_v0 = vmax.f32 %v348_v54, 0.0  ;;  %v5971_v1 = vadd.f32 %v208_v61, %v5791_v28  ;;  %v210_v2 = vpop.f32.mrb[22].mxu0 }
 0x104   :  { %v295_v6 = vmul.f32 %v5797_v30, %v5968_v59  ;;  %v5976_v9 = vadd.f32 %v210_v2, %v5788_v27  ;;  %v212_v10 = vpop.f32.mrb[23].mxu0  ;;  %v421_v15 = vpack.c.bf16 %v389_v56, %v387_v5 }
 0x105   :  { %v296_v11 = vmul.f32 %v5806_v34, %v5971_v1  ;;  %v5981_v12 = vadd.f32 %v212_v10, %v5791_v28  ;;  %v422_v13 = vpack.c.bf16 %v390_v0, %v388_v62 }
 0x106   :  { %v297_v14 = vmul.f32 %v5797_v30, %v5976_v9  ;;  %v349_v18 = vadd.f32 %v5823_v42, %v295_v6 }
 0x107   :  { %v350_v16 = vadd.f32 %v5815_v39, %v296_v11  ;;  %v298_v17 = vmul.f32 %v5806_v34, %v5981_v12  ;;  %711 = vmatprep.mubr.bf16.mxu1 %v422_v13 }
 0x108   :  { %v351_v22 = vadd.f32 %v5823_v42, %v297_v14  ;;  %712 = vmatmul.mubr.bf16.gmra.mrb[16].mxu1 %v421_v15  ;;  %v391_v49 = vmax.f32 %v349_v18, 0.0 }
 0x109   :  { %v352_v24 = vadd.f32 %v5815_v39, %v298_v17  ;;  %v216_v25 = vpop.f32.mrb[24].mxu0  ;;  %v392_v40 = vmax.f32 %v350_v16, 0.0 }
 0x10a   :  { %v393_v31 = vmax.f32 %v351_v22, 0.0  ;;  %v5992_v32 = vadd.f32 %v216_v25, %v5788_v27  ;;  %v218_v33 = vpop.f32.mrb[25].mxu0 }
 0x10b   :  { %v394_v41 = vmax.f32 %v352_v24, 0.0  ;;  %v5995_v46 = vadd.f32 %v218_v33, %v5791_v28  ;;  %v220_v48 = vpop.f32.mrb[26].mxu0 }
 0x10c   :  { %v299_v50 = vmul.f32 %v5797_v30, %v5992_v32  ;;  %v6000_v51 = vadd.f32 %v220_v48, %v5788_v27  ;;  %v222_v52 = vpop.f32.mrb[27].mxu0  ;;  %v423_v61 = vpack.c.bf16 %v393_v31, %v391_v49 }
 0x10d   :  { %v300_v53 = vmul.f32 %v5806_v34, %v5995_v46  ;;  %v6005_v54 = vadd.f32 %v222_v52, %v5791_v28  ;;  %v424_v55 = vpack.c.bf16 %v394_v41, %v392_v40 }
 0x10e   :  { %v301_v56 = vmul.f32 %v5797_v30, %v6000_v51  ;;  %v353_v2 = vadd.f32 %v5823_v42, %v299_v50 }
 0x10f   :  { %v354_v62 = vadd.f32 %v5815_v39, %v300_v53  ;;  %v302_v0 = vmul.f32 %v5806_v34, %v6005_v54  ;;  %721 = vmatprep.mubr.bf16.mxu1 %v424_v55 }
 0x110   :  { %v355_v5 = vadd.f32 %v5823_v42, %v301_v56  ;;  %722 = vmatmul.mubr.bf16.gmra.mrb[20].mxu1 %v423_v61  ;;  %v395_v22 = vmax.f32 %v353_v2, 0.0 }
 0x111   :  { %v356_v6 = vadd.f32 %v5815_v39, %v302_v0  ;;  %v226_v10 = vpop.f32.mrb[28].mxu0  ;;  %v396_v15 = vmax.f32 %v354_v62, 0.0 }
 0x112   :  { %v397_v11 = vmax.f32 %v355_v5, 0.0  ;;  %v6016_v13 = vadd.f32 %v226_v10, %v5788_v27  ;;  %v228_v14 = vpop.f32.mrb[29].mxu0 }
 0x113   :  { %v398_v16 = vmax.f32 %v356_v6, 0.0  ;;  %v6019_v17 = vadd.f32 %v228_v14, %v5791_v28  ;;  %v230_v18 = vpop.f32.mrb[30].mxu0 }
 0x114   :  { %v303_v24 = vmul.f32 %v5797_v30, %v6016_v13  ;;  %v6024_v25 = vadd.f32 %v230_v18, %v5788_v27  ;;  %v232_v31 = vpop.f32.mrb[31].mxu0  ;;  %v425_v49 = vpack.c.bf16 %v397_v11, %v395_v22 }
 0x115   :  { %v304_v33 = vmul.f32 %v5806_v34, %v6019_v17  ;;  %v6029_v40 = vadd.f32 %v232_v31, %v5791_v28  ;;  %v426_v41 = vpack.c.bf16 %v398_v16, %v396_v15 }
 0x116   :  { %v305_v48 = vmul.f32 %v5797_v30, %v6024_v25  ;;  %v357_v53 = vadd.f32 %v5823_v42, %v303_v24 }
 0x117   :  { %v358_v50 = vadd.f32 %v5815_v39, %v304_v33  ;;  %v306_v52 = vmul.f32 %v5806_v34, %v6029_v40  ;;  %731 = vmatprep.mubr.bf16.mxu1 %v426_v41 }
 0x118   :  { %v359_v55 = vadd.f32 %v5823_v42, %v305_v48  ;;  %732 = vmatmul.mubr.bf16.gmra.mrb[24].mxu1 %v425_v49  ;;  %v399_v14 = vmax.f32 %v357_v53, 0.0 }
 0x119   :  { %v360_v56 = vadd.f32 %v5815_v39, %v306_v52  ;;  %v236_v61 = vpop.f32.mrb[32].mxu0  ;;  %v400_v5 = vmax.f32 %v358_v50, 0.0 }
 0x11a   :  { %v401_v62 = vmax.f32 %v359_v55, 0.0  ;;  %v6040_v0 = vadd.f32 %v236_v61, %v5788_v27  ;;  %v238_v2 = vpop.f32.mrb[33].mxu0 }
 0x11b   :  { %v402_v6 = vmax.f32 %v360_v56, 0.0  ;;  %v6043_v10 = vadd.f32 %v238_v2, %v5791_v28  ;;  %v240_v11 = vpop.f32.mrb[34].mxu0 }
 0x11c   :  { %v307_v15 = vmul.f32 %v5797_v30, %v6040_v0  ;;  %v6048_v16 = vadd.f32 %v240_v11, %v5788_v27  ;;  %v242_v18 = vpop.f32.mrb[35].mxu0  ;;  %v427_v41 = vpack.c.bf16 %v401_v62, %v399_v14 }
 0x11d   :  { %v308_v22 = vmul.f32 %v5806_v34, %v6043_v10  ;;  %v6053_v24 = vadd.f32 %v242_v18, %v5791_v28  ;;  %v428_v31 = vpack.c.bf16 %v402_v6, %v400_v5 }
 0x11e   :  { %v309_v33 = vmul.f32 %v5797_v30, %v6048_v16  ;;  %v361_v50 = vadd.f32 %v5823_v42, %v307_v15 }
 0x11f   :  { %v362_v48 = vadd.f32 %v5815_v39, %v308_v22  ;;  %v310_v49 = vmul.f32 %v5806_v34, %v6053_v24  ;;  %741 = vmatprep.mubr.bf16.mxu1 %v428_v31 }
 0x120   :  { %v363_v52 = vadd.f32 %v5823_v42, %v309_v33  ;;  %742 = vmatmul.mubr.bf16.gmra.mrb[28].mxu1 %v427_v41  ;;  %v403_v14 = vmax.f32 %v361_v50, 0.0 }
 0x121   :  { %v364_v53 = vadd.f32 %v5815_v39, %v310_v49  ;;  %v246_v55 = vpop.f32.mrb[36].mxu0  ;;  %v404_v62 = vmax.f32 %v362_v48, 0.0 }
 0x122   :  { %v405_v56 = vmax.f32 %v363_v52, 0.0  ;;  %v6064_v61 = vadd.f32 %v246_v55, %v5788_v27  ;;  %v248_v2 = vpop.f32.mrb[37].mxu0 }
 0x123   :  { %v406_v5 = vmax.f32 %v364_v53, 0.0  ;;  %v6067_v6 = vadd.f32 %v248_v2, %v5791_v28  ;;  %v250_v11 = vpop.f32.mrb[38].mxu0 }
 0x124   :  { %v311_v15 = vmul.f32 %v5797_v30, %v6064_v61  ;;  %v6072_v18 = vadd.f32 %v250_v11, %v5788_v27  ;;  %v252_v22 = vpop.f32.mrb[39].mxu0  ;;  %v429_v49 = vpack.c.bf16 %v405_v56, %v403_v14 }
 0x125   :  { %v312_v31 = vmul.f32 %v5806_v34, %v6067_v6  ;;  %v6077_v33 = vadd.f32 %v252_v22, %v5791_v28  ;;  %v430_v41 = vpack.c.bf16 %v406_v5, %v404_v62 }
 0x126   :  { %v313_v48 = vmul.f32 %v5797_v30, %v6072_v18  ;;  %v365_v53 = vadd.f32 %v5823_v42, %v311_v15 }
 0x127   :  { %8025 = vst [vmem:[#allocation3_spill] sm:$0xff] %v6077_v33  ;;  %v366_v50 = vadd.f32 %v5815_v39, %v312_v31  ;;  %v314_v52 = vmul.f32 %v5806_v34, %v6077_v33  ;;  %751 = vmatprep.mubr.bf16.mxu1 %v430_v41 }
 0x128   :  { %v367_v55 = vadd.f32 %v5823_v42, %v313_v48  ;;  %752 = vmatmul.mubr.bf16.gmra.mrb[32].mxu1 %v429_v49  ;;  %v407_v41 = vmax.f32 %v365_v53, 0.0  ;;  %v5167_v53 = vld [vmem:[%s7991_s5 + $0x214] ss:$8 sps:$4 sm:$0xff]  }
 0x129   :  { %v368_v2 = vadd.f32 %v5815_v39, %v314_v52  ;;  %v256_v11 = vpop.f32.mrb[40].mxu0  ;;  %v408_v56 = vmax.f32 %v366_v50, 0.0 }
 0x12a   :  { %v409_v22 = vmax.f32 %v367_v55, 0.0  ;;  %v6088_v62 = vadd.f32 %v256_v11, %v5788_v27  ;;  %v258_v5 = vpop.f32.mrb[41].mxu0 }
 0x12b   :  { %v410_v14 = vmax.f32 %v368_v2, 0.0  ;;  %v6091_v31 = vadd.f32 %v258_v5, %v5791_v28  ;;  %v260_v33 = vpop.f32.mrb[42].mxu0  ;;  %v5170_v5 = vld [vmem:[%s7991_s5 + $0x224] ss:$8 sps:$4 sm:$0xff]  }
 0x12c   :  { %v315_v15 = vmul.f32 %v5797_v30, %v6088_v62  ;;  %v261_v48 = vpop.f32.mrb[43].mxu0  ;;  %v431_v27 = vpack.c.bf16 %v409_v22, %v407_v41  ;;  %v5161_v30 = vld [vmem:[%s7991_s5 + $0x1f4] ss:$8 sps:$4 sm:$0xff]   ;;  %v5165_v22 = vld [vmem:[%s7991_s5 + $0x210] ss:$8 sps:$4 sm:$0xff]  }
 0x12d   :  { %8026 = vst [vmem:[#allocation4_spill] sm:$0xff] %v6091_v31  ;;  %v432_v49 = vpack.c.bf16 %v410_v14, %v408_v56  ;;  %v316_v52 = vmul.f32 %v5806_v34, %v6091_v31  ;;  %v5159_v34 = vld [vmem:[%s7991_s5 + $0x1f0] ss:$8 sps:$4 sm:$0xff]   ;;  %1080 = vmatprep.subr.bf16.mxu0 %v5161_v30  ;;  %v5168_v56 = vld [vmem:[%s7991_s5 + $0x220] ss:$8 sps:$4 sm:$0xff]  }
 0x12e   :  { %v369_v55 = vadd.f32 %v5823_v42, %v315_v15  ;;  %1081 = vmatpush1.bf16.msra.mxu0 %v5159_v34  ;;  %v5164_v42 = vld [vmem:[%s7991_s5 + $0x204] ss:$8 sps:$4 sm:$0xff]   ;;  %v5173_v14 = vld [vmem:[%s7991_s5 + $0x234] ss:$8 sps:$4 sm:$0xff]   ;;  %v5171_v41 = vld [vmem:[%s7991_s5 + $0x230] ss:$8 sps:$4 sm:$0xff]  }
 0x12f   :  { %761 = vmatprep.mubr.bf16.mxu1 %v432_v49  ;;  %v370_v50 = vadd.f32 %v5815_v39, %v316_v52  ;;  %v5162_v39 = vld [vmem:[%s7991_s5 + $0x200] ss:$8 sps:$4 sm:$0xff]   ;;  %1461 = vmatprep.subr.bf16.mxu1 %v5164_v42  ;;  %v5176_v15 = vld [vmem:[%s7991_s5 + $0x244] ss:$8 sps:$4 sm:$0xff]   ;;  %v5179_v49 = vld [vmem:[%s7991_s5 + $0x254] ss:$8 sps:$4 sm:$0xff]  }
 0x130   :  { %762 = vmatmul.mubr.bf16.gmra.mrb[36].mxu1 %v431_v27  ;;  %v411_v2 = vmax.f32 %v369_v55, 0.0  ;;  %v5174_v48 = vld [vmem:[%s7991_s5 + $0x240] ss:$8 sps:$4 sm:$0xff]   ;;  %v5177_v52 = vld [vmem:[%s7991_s5 + $0x250] ss:$8 sps:$4 sm:$0xff]  }
 0x131   :  { %v412_v28 = vmax.f32 %v370_v50, 0.0  ;;  %1462 = vmatpush1.bf16.msra.mxu1 %v5162_v39  ;;  %v5182_v55 = vld [vmem:[%s7991_s5 + $0x264] ss:$8 sps:$4 sm:$0xff]   ;;  %v5180_v27 = vld [vmem:[%s7991_s5 + $0x260] ss:$8 sps:$4 sm:$0xff]  }
 0x132   :  { %v433_v33 = vpack.c.bf16 %v411_v2, %v411_v2  ;;  %1463 = vmatprep.subr.bf16.mxu1 %v5167_v53  ;;  %v5185_v50 = vld [vmem:[%s7991_s5 + $0x274] ss:$8 sps:$4 sm:$0xff]   ;;  %v5183_v2 = vld [vmem:[%s7991_s5 + $0x270] ss:$8 sps:$4 sm:$0xff]   ;;  %v5194_v53 = vld [vmem:[%s7991_s5 + $0x2a4] ss:$8 sps:$4 sm:$0xff]  }
 0x133   :  { %v434_v11 = vpack.c.bf16 %v412_v28, %v412_v28  ;;  %v5188_v28 = vld [vmem:[%s7991_s5 + $0x284] ss:$8 sps:$4 sm:$0xff]   ;;  %v5191_v30 = vld [vmem:[%s7991_s5 + $0x294] ss:$8 sps:$4 sm:$0xff]   ;;  %v5189_v42 = vld [vmem:[%s7991_s5 + $0x290] ss:$8 sps:$4 sm:$0xff]  }
 0x135   :  { %771 = vmatprep.mubr.bf16.mxu1 %v434_v11  ;;  %1464 = vmatpush1.bf16.msra.mxu1 %v5165_v22  ;;  %v467_v11 = vld [vmem:[%s7995_s6] sm:$0x3] }
 0x136   :  { %1465 = vmatprep.subr.bf16.mxu1 %v5170_v5  ;;  %v6166_v34 = vrot.slane %v467_v11, %v5771_v21  ;;  %v6169_v39 = vrot.slane %v467_v11, %v5776_v23  ;;  %v5195_v11 = vld [vmem:[%s7991_s5 + $0x2b0] ss:$8 sps:$4 sm:$0xff]  }
 0x138   :  { %772 = vmatmul.mubr.bf16.gmra.mrb[40].mxu1 %v433_v33  ;;  %v5186_v33 = vld [vmem:[%s7991_s5 + $0x280] ss:$8 sps:$4 sm:$0xff]  }
 0x139   :  { %1466 = vmatpush1.bf16.msra.mxu1 %v5168_v56 }
 0x13a   :  { %1467 = vmatprep.subr.bf16.mxu1 %v5173_v14 }
 0x13d   :  { %1468 = vmatpush1.bf16.msra.mxu1 %v5171_v41 }
 0x13e   :  { %1469 = vmatprep.subr.bf16.mxu1 %v5176_v15  ;;  %v5192_v15 = vld [vmem:[%s7991_s5 + $0x2a0] ss:$8 sps:$4 sm:$0xff]  }
 0x141   :  { %1470 = vmatpush1.bf16.msra.mxu1 %v5174_v48 }
 0x142   :  { %1471 = vmatprep.subr.bf16.mxu1 %v5179_v49 }
 0x145   :  { %1472 = vmatpush1.bf16.msra.mxu1 %v5177_v52  ;;  %v5197_v52 = vld [vmem:[%s7991_s5 + $0x2b4] ss:$8 sps:$4 sm:$0xff]  }
 0x146   :  { %1473 = vmatprep.subr.bf16.mxu1 %v5182_v55 }
 0x149   :  { %1474 = vmatpush1.bf16.msra.mxu1 %v5180_v27 }
 0x14a   :  { %1475 = vmatprep.subr.bf16.mxu1 %v5185_v50 }
 0x14d   :  { %1476 = vmatpush1.bf16.msra.mxu1 %v5183_v2 }
 0x14e   :  { %1477 = vmatprep.subr.bf16.mxu1 %v5188_v28 }
 0x151   :  { %1478 = vmatpush1.bf16.msra.mxu1 %v5186_v33 }
 0x152   :  { %1479 = vmatprep.subr.bf16.mxu1 %v5191_v30  ;;  %v5200_v30 = vld [vmem:[%s7991_s5 + $0x2c4] ss:$8 sps:$4 sm:$0xff]  }
 0x155   :  { %1480 = vmatpush1.bf16.msra.mxu1 %v5189_v42 }
 0x156   :  { %1481 = vmatprep.subr.bf16.mxu1 %v5194_v53 }
 0x159   :  { %1482 = vmatpush1.bf16.msra.mxu1 %v5192_v15 }
 0x15a   :  { %1483 = vmatprep.subr.bf16.mxu1 %v5197_v52 }
 0x15d   :  { %1484 = vmatpush1.bf16.msra.mxu1 %v5195_v11 }
 0x15e   :  { %1485 = vmatprep.subr.bf16.mxu1 %v5200_v30 }
 0x1bb   :  { %v673_v22 = vpop.f32.mrb[0].mxu1 }
 0x1bc   :  { %v674_v5 = vadd.f32 %v673_v22, %v6166_v34  ;;  %v675_v56 = vpop.f32.mrb[1].mxu1 }
 0x1bd   :  { %v676_v14 = vadd.f32 %v675_v56, %v6169_v39  ;;  %v677_v41 = vpop.f32.mrb[2].mxu1 }
 0x1be   :  { %v678_v48 = vadd.f32 %v677_v41, %v6166_v34  ;;  %v679_v49 = vpop.f32.mrb[3].mxu1  ;;  %v780_v27 = vmax.f32 %v674_v5, 0.0  ;;  %v5198_v41 = vld [vmem:[%s7991_s5 + $0x2c0] ss:$8 sps:$4 sm:$0xff]  }
 0x1bf   :  { %v680_v55 = vadd.f32 %v679_v49, %v6169_v39  ;;  %v781_v2 = vmax.f32 %v676_v14, 0.0  ;;  %v5203_v49 = vld [vmem:[%s7991_s5 + $0x2d4] ss:$8 sps:$4 sm:$0xff]   ;;  %1486 = vmatpush1.bf16.msra.mxu1 %v5198_v41 }
 0x1c0   :  { %v782_v50 = vmax.f32 %v678_v48, 0.0  ;;  %1487 = vmatprep.subr.bf16.mxu1 %v5203_v49 }
 0x1c1   :  { %v783_v28 = vmax.f32 %v680_v55, 0.0 }
 0x1c2   :  { %v822_v33 = vpack.c.bf16 %v782_v50, %v780_v27 }
 0x1c3   :  { %v823_v42 = vpack.c.bf16 %v783_v28, %v781_v2  ;;  %v683_v53 = vpop.f32.mrb[4].mxu1  ;;  %v5201_v28 = vld [vmem:[%s7991_s5 + $0x2d0] ss:$8 sps:$4 sm:$0xff]  }
 0x1c4   :  { %v684_v22 = vadd.f32 %v683_v53, %v6166_v34  ;;  %v685_v56 = vpop.f32.mrb[5].mxu1  ;;  %1488 = vmatpush1.bf16.msra.mxu1 %v5201_v28 }
 0x1c5   :  { %v686_v5 = vadd.f32 %v685_v56, %v6169_v39  ;;  %v687_v14 = vpop.f32.mrb[6].mxu1  ;;  %1082 = vmatprep.mubr.bf16.mxu0 %v823_v42 }
 0x1c6   :  { %v688_v15 = vadd.f32 %v687_v14, %v6166_v34  ;;  %v689_v48 = vpop.f32.mrb[7].mxu1  ;;  %1083 = vmatmul.mubr.bf16.vlgmr.msra.gmra.mrb[44].mxu0 %v822_v33  ;;  %v784_v55 = vmax.f32 %v684_v22, 0.0  ;;  %v5206_v33 = vld [vmem:[%s7991_s5 + $0x2e4] ss:$8 sps:$4 sm:$0xff]   ;;  %v5204_v14 = vld [vmem:[%s7991_s5 + $0x2e0] ss:$8 sps:$4 sm:$0xff]  }
 0x1c7   :  { %v690_v52 = vadd.f32 %v689_v48, %v6169_v39  ;;  %v785_v50 = vmax.f32 %v686_v5, 0.0  ;;  %1489 = vmatprep.subr.bf16.mxu1 %v5206_v33 }
 0x1c8   :  { %v786_v27 = vmax.f32 %v688_v15, 0.0  ;;  %1490 = vmatpush1.bf16.msra.mxu1 %v5204_v14 }
 0x1c9   :  { %v787_v2 = vmax.f32 %v690_v52, 0.0 }
 0x1ca   :  { %v824_v11 = vpack.c.bf16 %v786_v27, %v784_v55 }
 0x1cb   :  { %v825_v30 = vpack.c.bf16 %v787_v2, %v785_v50  ;;  %v693_v42 = vpop.f32.mrb[8].mxu1 }
 0x1cc   :  { %v694_v53 = vadd.f32 %v693_v42, %v6166_v34  ;;  %v695_v56 = vpop.f32.mrb[9].mxu1 }
 0x1cd   :  { %v696_v22 = vadd.f32 %v695_v56, %v6169_v39  ;;  %v697_v5 = vpop.f32.mrb[10].mxu1  ;;  %1092 = vmatprep.mubr.bf16.mxu0 %v825_v30 }
 0x1ce   :  { %v698_v41 = vadd.f32 %v697_v5, %v6166_v34  ;;  %v699_v15 = vpop.f32.mrb[11].mxu1  ;;  %1093 = vmatmul.mubr.bf16.gmra.mrb[48].mxu0 %v824_v11  ;;  %v788_v49 = vmax.f32 %v694_v53, 0.0 }
 0x1cf   :  { %v700_v48 = vadd.f32 %v699_v15, %v6169_v39  ;;  %v789_v55 = vmax.f32 %v696_v22, 0.0 }
 0x1d0   :  { %v790_v52 = vmax.f32 %v698_v41, 0.0 }
 0x1d1   :  { %v791_v27 = vmax.f32 %v700_v48, 0.0 }
 0x1d2   :  { %v826_v50 = vpack.c.bf16 %v790_v52, %v788_v49 }
 0x1d3   :  { %v827_v2 = vpack.c.bf16 %v791_v27, %v789_v55  ;;  %v703_v30 = vpop.f32.mrb[12].mxu1 }
 0x1d4   :  { %v704_v28 = vadd.f32 %v703_v30, %v6166_v34  ;;  %v705_v42 = vpop.f32.mrb[13].mxu1 }
 0x1d5   :  { %v706_v56 = vadd.f32 %v705_v42, %v6169_v39  ;;  %v707_v31 = vpop.f32.mrb[14].mxu1  ;;  %1102 = vmatprep.mubr.bf16.mxu0 %v827_v2 }
 0x1d6   :  { %v708_v11 = vadd.f32 %v707_v31, %v6166_v34  ;;  %v709_v33 = vpop.f32.mrb[15].mxu1  ;;  %1103 = vmatmul.mubr.bf16.gmra.mrb[52].mxu0 %v826_v50  ;;  %v792_v5 = vmax.f32 %v704_v28, 0.0 }
 0x1d7   :  { %v710_v53 = vadd.f32 %v709_v33, %v6169_v39  ;;  %v793_v41 = vmax.f32 %v706_v56, 0.0 }
 0x1d8   :  { %v794_v22 = vmax.f32 %v708_v11, 0.0 }
 0x1d9   :  { %v795_v14 = vmax.f32 %v710_v53, 0.0 }
 0x1da   :  { %v828_v15 = vpack.c.bf16 %v794_v22, %v792_v5 }
 0x1db   :  { %v829_v48 = vpack.c.bf16 %v795_v14, %v793_v41  ;;  %v713_v49 = vpop.f32.mrb[16].mxu1 }
 0x1dc   :  { %v714_v52 = vadd.f32 %v713_v49, %v6166_v34  ;;  %v715_v55 = vpop.f32.mrb[17].mxu1 }
 0x1dd   :  { %v716_v27 = vadd.f32 %v715_v55, %v6169_v39  ;;  %v717_v30 = vpop.f32.mrb[18].mxu1  ;;  %1112 = vmatprep.mubr.bf16.mxu0 %v829_v48 }
 0x1de   :  { %v718_v31 = vadd.f32 %v717_v30, %v6166_v34  ;;  %v719_v2 = vpop.f32.mrb[19].mxu1  ;;  %1113 = vmatmul.mubr.bf16.gmra.mrb[56].mxu0 %v828_v15  ;;  %v796_v28 = vmax.f32 %v714_v52, 0.0 }
 0x1df   :  { %v720_v50 = vadd.f32 %v719_v2, %v6169_v39  ;;  %v797_v56 = vmax.f32 %v716_v27, 0.0 }
 0x1e0   :  { %v798_v42 = vmax.f32 %v718_v31, 0.0 }
 0x1e1   :  { %v799_v11 = vmax.f32 %v720_v50, 0.0 }
 0x1e2   :  { %v830_v33 = vpack.c.bf16 %v798_v42, %v796_v28 }
 0x1e3   :  { %v831_v53 = vpack.c.bf16 %v799_v11, %v797_v56  ;;  %v723_v5 = vpop.f32.mrb[20].mxu1 }
 0x1e4   :  { %v724_v22 = vadd.f32 %v723_v5, %v6166_v34  ;;  %v725_v41 = vpop.f32.mrb[21].mxu1 }
 0x1e5   :  { %v726_v14 = vadd.f32 %v725_v41, %v6169_v39  ;;  %v727_v49 = vpop.f32.mrb[22].mxu1  ;;  %1122 = vmatprep.mubr.bf16.mxu0 %v831_v53 }
 0x1e6   :  { %v728_v48 = vadd.f32 %v727_v49, %v6166_v34  ;;  %v729_v55 = vpop.f32.mrb[23].mxu1  ;;  %1123 = vmatmul.mubr.bf16.gmra.mrb[60].mxu0 %v830_v33  ;;  %v800_v52 = vmax.f32 %v724_v22, 0.0 }
 0x1e7   :  { %v730_v15 = vadd.f32 %v729_v55, %v6169_v39  ;;  %v801_v27 = vmax.f32 %v726_v14, 0.0 }
 0x1e8   :  { %v802_v30 = vmax.f32 %v728_v48, 0.0 }
 0x1e9   :  { %v803_v31 = vmax.f32 %v730_v15, 0.0 }
 0x1ea   :  { %v832_v2 = vpack.c.bf16 %v802_v30, %v800_v52 }
 0x1eb   :  { %v833_v50 = vpack.c.bf16 %v803_v31, %v801_v27  ;;  %v733_v28 = vpop.f32.mrb[24].mxu1 }
 0x1ec   :  { %v734_v42 = vadd.f32 %v733_v28, %v6166_v34  ;;  %v735_v56 = vpop.f32.mrb[25].mxu1 }
 0x1ed   :  { %v736_v11 = vadd.f32 %v735_v56, %v6169_v39  ;;  %v737_v5 = vpop.f32.mrb[26].mxu1  ;;  %1132 = vmatprep.mubr.bf16.mxu0 %v833_v50 }
 0x1ee   :  { %v738_v53 = vadd.f32 %v737_v5, %v6166_v34  ;;  %v739_v41 = vpop.f32.mrb[27].mxu1  ;;  %1133 = vmatmul.mubr.bf16.gmra.mrb[64].mxu0 %v832_v2  ;;  %v804_v22 = vmax.f32 %v734_v42, 0.0 }
 0x1ef   :  { %v740_v33 = vadd.f32 %v739_v41, %v6169_v39  ;;  %v805_v14 = vmax.f32 %v736_v11, 0.0 }
 0x1f0   :  { %v806_v49 = vmax.f32 %v738_v53, 0.0 }
 0x1f1   :  { %v807_v48 = vmax.f32 %v740_v33, 0.0 }
 0x1f2   :  { %v834_v55 = vpack.c.bf16 %v806_v49, %v804_v22 }
 0x1f3   :  { %v835_v15 = vpack.c.bf16 %v807_v48, %v805_v14  ;;  %v743_v52 = vpop.f32.mrb[28].mxu1 }
 0x1f4   :  { %v744_v30 = vadd.f32 %v743_v52, %v6166_v34  ;;  %v745_v27 = vpop.f32.mrb[29].mxu1 }
 0x1f5   :  { %v746_v31 = vadd.f32 %v745_v27, %v6169_v39  ;;  %v747_v28 = vpop.f32.mrb[30].mxu1  ;;  %1142 = vmatprep.mubr.bf16.mxu0 %v835_v15 }
 0x1f6   :  { %v748_v50 = vadd.f32 %v747_v28, %v6166_v34  ;;  %v749_v56 = vpop.f32.mrb[31].mxu1  ;;  %1143 = vmatmul.mubr.bf16.gmra.mrb[68].mxu0 %v834_v55  ;;  %v808_v42 = vmax.f32 %v744_v30, 0.0 }
 0x1f7   :  { %v750_v2 = vadd.f32 %v749_v56, %v6169_v39  ;;  %v809_v11 = vmax.f32 %v746_v31, 0.0 }
 0x1f8   :  { %v810_v5 = vmax.f32 %v748_v50, 0.0 }
 0x1f9   :  { %v811_v53 = vmax.f32 %v750_v2, 0.0 }
 0x1fa   :  { %v836_v41 = vpack.c.bf16 %v810_v5, %v808_v42 }
 0x1fb   :  { %v837_v33 = vpack.c.bf16 %v811_v53, %v809_v11  ;;  %v753_v22 = vpop.f32.mrb[32].mxu1 }
 0x1fc   :  { %v754_v49 = vadd.f32 %v753_v22, %v6166_v34  ;;  %v755_v14 = vpop.f32.mrb[33].mxu1 }
 0x1fd   :  { %v756_v48 = vadd.f32 %v755_v14, %v6169_v39  ;;  %v757_v52 = vpop.f32.mrb[34].mxu1  ;;  %1152 = vmatprep.mubr.bf16.mxu0 %v837_v33 }
 0x1fe   :  { %v758_v15 = vadd.f32 %v757_v52, %v6166_v34  ;;  %v759_v27 = vpop.f32.mrb[35].mxu1  ;;  %1153 = vmatmul.mubr.bf16.gmra.mrb[72].mxu0 %v836_v41  ;;  %v812_v30 = vmax.f32 %v754_v49, 0.0 }
 0x1ff   :  { %v760_v55 = vadd.f32 %v759_v27, %v6169_v39  ;;  %v813_v31 = vmax.f32 %v756_v48, 0.0 }
 0x200   :  { %v814_v28 = vmax.f32 %v758_v15, 0.0 }
 0x201   :  { %v815_v50 = vmax.f32 %v760_v55, 0.0 }
 0x202   :  { %v838_v56 = vpack.c.bf16 %v814_v28, %v812_v30 }
 0x203   :  { %v839_v2 = vpack.c.bf16 %v815_v50, %v813_v31  ;;  %v763_v42 = vpop.f32.mrb[36].mxu1 }
 0x204   :  { %v764_v5 = vadd.f32 %v763_v42, %v6166_v34  ;;  %v765_v11 = vpop.f32.mrb[37].mxu1 }
 0x205   :  { %v766_v53 = vadd.f32 %v765_v11, %v6169_v39  ;;  %v767_v22 = vpop.f32.mrb[38].mxu1  ;;  %1162 = vmatprep.mubr.bf16.mxu0 %v839_v2 }
 0x206   :  { %v768_v33 = vadd.f32 %v767_v22, %v6166_v34  ;;  %v769_v14 = vpop.f32.mrb[39].mxu1  ;;  %1163 = vmatmul.mubr.bf16.gmra.mrb[76].mxu0 %v838_v56  ;;  %v816_v49 = vmax.f32 %v764_v5, 0.0  ;;  %v5209_v5 = vld [vmem:[%s7991_s5 + $0x2f4] ss:$8 sps:$4 sm:$0xff]  }
 0x207   :  { %v770_v41 = vadd.f32 %v769_v14, %v6169_v39  ;;  %v817_v48 = vmax.f32 %v766_v53, 0.0  ;;  %1491 = vmatprep.subr.bf16.mxu1 %v5209_v5  ;;  %v5212_v53 = vld [vmem:[%s7991_s5 + $0x304] ss:$8 sps:$4 sm:$0xff]  }
 0x208   :  { %v818_v52 = vmax.f32 %v768_v33, 0.0  ;;  %v5215_v33 = vld [vmem:[%s7991_s5 + $0x314] ss:$8 sps:$4 sm:$0xff]   ;;  %2024 = vmatprep.subr.bf16.mxu0 %v5212_v53  ;;  %v5242_v53 = vld [vmem:[%s7991_s5 + $0x3a4] ss:$8 sps:$4 sm:$0xff]  }
 0x209   :  { %v819_v15 = vmax.f32 %v770_v41, 0.0  ;;  %v5213_v41 = vld [vmem:[%s7991_s5 + $0x310] ss:$8 sps:$4 sm:$0xff]  }
 0x20a   :  { %v840_v27 = vpack.c.bf16 %v818_v52, %v816_v49  ;;  %v5218_v49 = vld [vmem:[%s7991_s5 + $0x324] ss:$8 sps:$4 sm:$0xff]   ;;  %v5216_v52 = vld [vmem:[%s7991_s5 + $0x320] ss:$8 sps:$4 sm:$0xff]  }
 0x20b   :  { %v841_v55 = vpack.c.bf16 %v819_v15, %v817_v48  ;;  %v773_v30 = vpop.f32.mrb[40].mxu1  ;;  %v5221_v48 = vld [vmem:[%s7991_s5 + $0x334] ss:$8 sps:$4 sm:$0xff]   ;;  %v5219_v15 = vld [vmem:[%s7991_s5 + $0x330] ss:$8 sps:$4 sm:$0xff]  }
 0x20c   :  { %v774_v28 = vadd.f32 %v773_v30, %v6166_v34  ;;  %v775_v31 = vpop.f32.mrb[41].mxu1  ;;  %v5207_v34 = vld [vmem:[%s7991_s5 + $0x2f0] ss:$8 sps:$4 sm:$0xff]   ;;  %v5227_v30 = vld [vmem:[%s7991_s5 + $0x354] ss:$8 sps:$4 sm:$0xff]  }
 0x20d   :  { %1172 = vmatprep.mubr.bf16.mxu0 %v841_v55  ;;  %v776_v50 = vadd.f32 %v775_v31, %v6169_v39  ;;  %v777_v2 = vpop.f32.mrb[42].mxu1  ;;  %1492 = vmatpush1.bf16.msra.mxu1 %v5207_v34  ;;  %v5210_v39 = vld [vmem:[%s7991_s5 + $0x300] ss:$8 sps:$4 sm:$0xff]   ;;  %v5230_v31 = vld [vmem:[%s7991_s5 + $0x364] ss:$8 sps:$4 sm:$0xff]  }
 0x20e   :  { %1173 = vmatmul.mubr.bf16.gmra.mrb[80].mxu0 %v840_v27  ;;  %v820_v42 = vmax.f32 %v774_v28, 0.0  ;;  %v778_v11 = vpop.f32.mrb[43].mxu1  ;;  %v5224_v27 = vld [vmem:[%s7991_s5 + $0x344] ss:$8 sps:$4 sm:$0xff]   ;;  %v5222_v55 = vld [vmem:[%s7991_s5 + $0x340] ss:$8 sps:$4 sm:$0xff]  }
 0x20f   :  { %v821_v56 = vmax.f32 %v776_v50, 0.0  ;;  %2025 = vmatpush1.bf16.msra.mxu0 %v5210_v39  ;;  %v5225_v28 = vld [vmem:[%s7991_s5 + $0x350] ss:$8 sps:$4 sm:$0xff]   ;;  %v5228_v50 = vld [vmem:[%s7991_s5 + $0x360] ss:$8 sps:$4 sm:$0xff]  }
 0x210   :  { %v842_v14 = vpack.c.bf16 %v820_v42, %v820_v42  ;;  %2026 = vmatprep.subr.bf16.mxu0 %v5215_v33  ;;  %v5233_v2 = vld [vmem:[%s7991_s5 + $0x374] ss:$8 sps:$4 sm:$0xff]   ;;  %v5231_v42 = vld [vmem:[%s7991_s5 + $0x370] ss:$8 sps:$4 sm:$0xff]   ;;  %v5236_v11 = vld [vmem:[%s7991_s5 + $0x384] ss:$8 sps:$4 sm:$0xff]  }
 0x211   :  { %v843_v22 = vpack.c.bf16 %v821_v56, %v821_v56  ;;  %v4538_v56 = vld [vmem:[%s7995_s6 + $0x2] sm:$0x3]  ;;  %v5237_v39 = vld [vmem:[%s7991_s5 + $0x390] ss:$8 sps:$4 sm:$0xff]  }
 0x212   :  { %v6313_v5 = vrot.slane %v4538_v56, %v5771_v21  ;;  %v6316_v34 = vrot.slane %v4538_v56, %v5776_v23 }
 0x213   :  { %1182 = vmatprep.mubr.bf16.mxu0 %v843_v22  ;;  %2027 = vmatpush1.bf16.msra.mxu0 %v5213_v41  ;;  %v5234_v22 = vld [vmem:[%s7991_s5 + $0x380] ss:$8 sps:$4 sm:$0xff]  }
 0x214   :  { %2028 = vmatprep.subr.bf16.mxu0 %v5218_v49 }
 0x216   :  { %1183 = vmatmul.mubr.bf16.gmra.mrb[84].mxu0 %v842_v14  ;;  %v5239_v14 = vld [vmem:[%s7991_s5 + $0x394] ss:$8 sps:$4 sm:$0xff]  }
 0x217   :  { %2029 = vmatpush1.bf16.msra.mxu0 %v5216_v52 }
 0x218   :  { %2030 = vmatprep.subr.bf16.mxu0 %v5221_v48 }
 0x21b   :  { %2031 = vmatpush1.bf16.msra.mxu0 %v5219_v15  ;;  %v5240_v15 = vld [vmem:[%s7991_s5 + $0x3a0] ss:$8 sps:$4 sm:$0xff]  }
 0x21c   :  { %2032 = vmatprep.subr.bf16.mxu0 %v5224_v27 }
 0x21f   :  { %2033 = vmatpush1.bf16.msra.mxu0 %v5222_v55 }
 0x220   :  { %2034 = vmatprep.subr.bf16.mxu0 %v5227_v30  ;;  %v5245_v30 = vld [vmem:[%s7991_s5 + $0x3b4] ss:$8 sps:$4 sm:$0xff]  }
 0x223   :  { %2035 = vmatpush1.bf16.msra.mxu0 %v5225_v28 }
 0x224   :  { %2036 = vmatprep.subr.bf16.mxu0 %v5230_v31 }
 0x227   :  { %2037 = vmatpush1.bf16.msra.mxu0 %v5228_v50 }
 0x228   :  { %2038 = vmatprep.subr.bf16.mxu0 %v5233_v2 }
 0x22b   :  { %2039 = vmatpush1.bf16.msra.mxu0 %v5231_v42 }
 0x22c   :  { %2040 = vmatprep.subr.bf16.mxu0 %v5236_v11  ;;  %v5243_v11 = vld [vmem:[%s7991_s5 + $0x3b0] ss:$8 sps:$4 sm:$0xff]  }
 0x22f   :  { %2041 = vmatpush1.bf16.msra.mxu0 %v5234_v22  ;;  %v5248_v22 = vld [vmem:[%s7991_s5 + $0x3c4] ss:$8 sps:$4 sm:$0xff]  }
 0x230   :  { %2042 = vmatprep.subr.bf16.mxu0 %v5239_v14 }
 0x233   :  { %2043 = vmatpush1.bf16.msra.mxu0 %v5237_v39 }
 0x234   :  { %2044 = vmatprep.subr.bf16.mxu0 %v5242_v53 }
 0x237   :  { %2045 = vmatpush1.bf16.msra.mxu0 %v5240_v15 }
 0x238   :  { %2046 = vmatprep.subr.bf16.mxu0 %v5245_v30 }
 0x23b   :  { %2047 = vmatpush1.bf16.msra.mxu0 %v5243_v11 }
 0x23c   :  { %2048 = vmatprep.subr.bf16.mxu0 %v5248_v22 }
 0x299   :  { %v1084_v33 = vpop.f32.mrb[44].mxu0 }
 0x29a   :  { %v1085_v41 = vadd.f32 %v1084_v33, %v6313_v5  ;;  %v1086_v49 = vpop.f32.mrb[45].mxu0 }
 0x29b   :  { %v1087_v52 = vadd.f32 %v1086_v49, %v6316_v34  ;;  %v1088_v48 = vpop.f32.mrb[46].mxu0 }
 0x29c   :  { %v1089_v27 = vadd.f32 %v1088_v48, %v6313_v5  ;;  %v1090_v55 = vpop.f32.mrb[47].mxu0  ;;  %v1191_v31 = vmax.f32 %v1085_v41, 0.0 }
 0x29d   :  { %v1091_v28 = vadd.f32 %v1090_v55, %v6316_v34  ;;  %v1192_v2 = vmax.f32 %v1087_v52, 0.0  ;;  %v5246_v52 = vld [vmem:[%s7991_s5 + $0x3c0] ss:$8 sps:$4 sm:$0xff]  }
 0x29e   :  { %v1193_v50 = vmax.f32 %v1089_v27, 0.0  ;;  %2049 = vmatpush1.bf16.msra.mxu0 %v5246_v52 }
 0x29f   :  { %v1194_v42 = vmax.f32 %v1091_v28, 0.0 }
 0x2a0   :  { %v1233_v56 = vpack.c.bf16 %v1193_v50, %v1191_v31 }
 0x2a1   :  { %v1234_v14 = vpack.c.bf16 %v1194_v42, %v1192_v2  ;;  %v1094_v39 = vpop.f32.mrb[48].mxu0 }
 0x2a2   :  { %v1095_v53 = vadd.f32 %v1094_v39, %v6313_v5  ;;  %v1096_v33 = vpop.f32.mrb[49].mxu0 }
 0x2a3   :  { %v1097_v41 = vadd.f32 %v1096_v33, %v6316_v34  ;;  %v1098_v49 = vpop.f32.mrb[50].mxu0  ;;  %1493 = vmatprep.mubr.bf16.mxu1 %v1234_v14 }
 0x2a4   :  { %v1099_v48 = vadd.f32 %v1098_v49, %v6313_v5  ;;  %v1100_v15 = vpop.f32.mrb[51].mxu0  ;;  %1494 = vmatmul.mubr.bf16.vlgmr.msra.gmra.mrb[44].mxu1 %v1233_v56  ;;  %v1195_v55 = vmax.f32 %v1095_v53, 0.0 }
 0x2a5   :  { %v1101_v27 = vadd.f32 %v1100_v15, %v6316_v34  ;;  %v1196_v28 = vmax.f32 %v1097_v41, 0.0 }
 0x2a6   :  { %v1197_v30 = vmax.f32 %v1099_v48, 0.0 }
 0x2a7   :  { %v1198_v31 = vmax.f32 %v1101_v27, 0.0 }
 0x2a8   :  { %v1235_v50 = vpack.c.bf16 %v1197_v30, %v1195_v55 }
 0x2a9   :  { %v1236_v2 = vpack.c.bf16 %v1198_v31, %v1196_v28  ;;  %v1104_v42 = vpop.f32.mrb[52].mxu0 }
 0x2aa   :  { %v1105_v11 = vadd.f32 %v1104_v42, %v6313_v5  ;;  %v1106_v14 = vpop.f32.mrb[53].mxu0 }
 0x2ab   :  { %v1107_v39 = vadd.f32 %v1106_v14, %v6316_v34  ;;  %v1108_v33 = vpop.f32.mrb[54].mxu0  ;;  %1503 = vmatprep.mubr.bf16.mxu1 %v1236_v2 }
 0x2ac   :  { %v1109_v56 = vadd.f32 %v1108_v33, %v6313_v5  ;;  %v1110_v22 = vpop.f32.mrb[55].mxu0  ;;  %1504 = vmatmul.mubr.bf16.gmra.mrb[48].mxu1 %v1235_v50  ;;  %v1199_v49 = vmax.f32 %v1105_v11, 0.0 }
 0x2ad   :  { %v1111_v53 = vadd.f32 %v1110_v22, %v6316_v34  ;;  %v1200_v48 = vmax.f32 %v1107_v39, 0.0 }
 0x2ae   :  { %v1201_v41 = vmax.f32 %v1109_v56, 0.0 }
 0x2af   :  { %v1202_v52 = vmax.f32 %v1111_v53, 0.0 }
 0x2b0   :  { %v1237_v15 = vpack.c.bf16 %v1201_v41, %v1199_v49 }
 0x2b1   :  { %v1238_v27 = vpack.c.bf16 %v1202_v52, %v1200_v48  ;;  %v1114_v55 = vpop.f32.mrb[56].mxu0 }
 0x2b2   :  { %v1115_v30 = vadd.f32 %v1114_v55, %v6313_v5  ;;  %v1116_v28 = vpop.f32.mrb[57].mxu0 }
 0x2b3   :  { %v1117_v31 = vadd.f32 %v1116_v28, %v6316_v34  ;;  %v1118_v42 = vpop.f32.mrb[58].mxu0  ;;  %1513 = vmatprep.mubr.bf16.mxu1 %v1238_v27 }
 0x2b4   :  { %v1119_v2 = vadd.f32 %v1118_v42, %v6313_v5  ;;  %v1120_v14 = vpop.f32.mrb[59].mxu0  ;;  %1514 = vmatmul.mubr.bf16.gmra.mrb[52].mxu1 %v1237_v15  ;;  %v1203_v11 = vmax.f32 %v1115_v30, 0.0 }
 0x2b5   :  { %v1121_v50 = vadd.f32 %v1120_v14, %v6316_v34  ;;  %v1204_v39 = vmax.f32 %v1117_v31, 0.0 }
 0x2b6   :  { %v1205_v33 = vmax.f32 %v1119_v2, 0.0 }
 0x2b7   :  { %v1206_v56 = vmax.f32 %v1121_v50, 0.0 }
 0x2b8   :  { %v1239_v22 = vpack.c.bf16 %v1205_v33, %v1203_v11 }
 0x2b9   :  { %v1240_v53 = vpack.c.bf16 %v1206_v56, %v1204_v39  ;;  %v1124_v49 = vpop.f32.mrb[60].mxu0 }
 0x2ba   :  { %v1125_v41 = vadd.f32 %v1124_v49, %v6313_v5  ;;  %v1126_v48 = vpop.f32.mrb[61].mxu0 }
 0x2bb   :  { %v1127_v52 = vadd.f32 %v1126_v48, %v6316_v34  ;;  %v1128_v55 = vpop.f32.mrb[62].mxu0  ;;  %1523 = vmatprep.mubr.bf16.mxu1 %v1240_v53 }
 0x2bc   :  { %v1129_v27 = vadd.f32 %v1128_v55, %v6313_v5  ;;  %v1130_v28 = vpop.f32.mrb[63].mxu0  ;;  %1524 = vmatmul.mubr.bf16.gmra.mrb[56].mxu1 %v1239_v22  ;;  %v1207_v30 = vmax.f32 %v1125_v41, 0.0 }
 0x2bd   :  { %v1131_v15 = vadd.f32 %v1130_v28, %v6316_v34  ;;  %v1208_v31 = vmax.f32 %v1127_v52, 0.0 }
 0x2be   :  { %v1209_v42 = vmax.f32 %v1129_v27, 0.0 }
 0x2bf   :  { %v1210_v2 = vmax.f32 %v1131_v15, 0.0 }
 0x2c0   :  { %v1241_v14 = vpack.c.bf16 %v1209_v42, %v1207_v30 }
 0x2c1   :  { %v1242_v50 = vpack.c.bf16 %v1210_v2, %v1208_v31  ;;  %v1134_v11 = vpop.f32.mrb[64].mxu0 }
 0x2c2   :  { %v1135_v33 = vadd.f32 %v1134_v11, %v6313_v5  ;;  %v1136_v39 = vpop.f32.mrb[65].mxu0 }
 0x2c3   :  { %v1137_v56 = vadd.f32 %v1136_v39, %v6316_v34  ;;  %v1138_v49 = vpop.f32.mrb[66].mxu0  ;;  %1533 = vmatprep.mubr.bf16.mxu1 %v1242_v50 }
 0x2c4   :  { %v1139_v53 = vadd.f32 %v1138_v49, %v6313_v5  ;;  %v1140_v48 = vpop.f32.mrb[67].mxu0  ;;  %1534 = vmatmul.mubr.bf16.gmra.mrb[60].mxu1 %v1241_v14  ;;  %v1211_v41 = vmax.f32 %v1135_v33, 0.0 }
 0x2c5   :  { %v1141_v22 = vadd.f32 %v1140_v48, %v6316_v34  ;;  %v1212_v52 = vmax.f32 %v1137_v56, 0.0 }
 0x2c6   :  { %v1213_v55 = vmax.f32 %v1139_v53, 0.0 }
 0x2c7   :  { %v1214_v27 = vmax.f32 %v1141_v22, 0.0 }
 0x2c8   :  { %v1243_v28 = vpack.c.bf16 %v1213_v55, %v1211_v41 }
 0x2c9   :  { %v1244_v15 = vpack.c.bf16 %v1214_v27, %v1212_v52  ;;  %v1144_v30 = vpop.f32.mrb[68].mxu0 }
 0x2ca   :  { %v1145_v42 = vadd.f32 %v1144_v30, %v6313_v5  ;;  %v1146_v31 = vpop.f32.mrb[69].mxu0 }
 0x2cb   :  { %v1147_v2 = vadd.f32 %v1146_v31, %v6316_v34  ;;  %v1148_v11 = vpop.f32.mrb[70].mxu0  ;;  %1543 = vmatprep.mubr.bf16.mxu1 %v1244_v15 }
 0x2cc   :  { %v1149_v50 = vadd.f32 %v1148_v11, %v6313_v5  ;;  %v1150_v39 = vpop.f32.mrb[71].mxu0  ;;  %1544 = vmatmul.mubr.bf16.gmra.mrb[64].mxu1 %v1243_v28  ;;  %v1215_v33 = vmax.f32 %v1145_v42, 0.0 }
 0x2cd   :  { %v1151_v14 = vadd.f32 %v1150_v39, %v6316_v34  ;;  %v1216_v56 = vmax.f32 %v1147_v2, 0.0 }
 0x2ce   :  { %v1217_v49 = vmax.f32 %v1149_v50, 0.0 }
 0x2cf   :  { %v1218_v53 = vmax.f32 %v1151_v14, 0.0 }
 0x2d0   :  { %v1245_v48 = vpack.c.bf16 %v1217_v49, %v1215_v33 }
 0x2d1   :  { %v1246_v22 = vpack.c.bf16 %v1218_v53, %v1216_v56  ;;  %v1154_v41 = vpop.f32.mrb[72].mxu0 }
 0x2d2   :  { %v1155_v55 = vadd.f32 %v1154_v41, %v6313_v5  ;;  %v1156_v52 = vpop.f32.mrb[73].mxu0 }
 0x2d3   :  { %v1157_v27 = vadd.f32 %v1156_v52, %v6316_v34  ;;  %v1158_v30 = vpop.f32.mrb[74].mxu0  ;;  %1553 = vmatprep.mubr.bf16.mxu1 %v1246_v22 }
 0x2d4   :  { %v1159_v15 = vadd.f32 %v1158_v30, %v6313_v5  ;;  %v1160_v31 = vpop.f32.mrb[75].mxu0  ;;  %1554 = vmatmul.mubr.bf16.gmra.mrb[68].mxu1 %v1245_v48  ;;  %v1219_v42 = vmax.f32 %v1155_v55, 0.0 }
 0x2d5   :  { %v1161_v28 = vadd.f32 %v1160_v31, %v6316_v34  ;;  %v1220_v2 = vmax.f32 %v1157_v27, 0.0 }
 0x2d6   :  { %v1221_v11 = vmax.f32 %v1159_v15, 0.0 }
 0x2d7   :  { %v1222_v50 = vmax.f32 %v1161_v28, 0.0 }
 0x2d8   :  { %v1247_v39 = vpack.c.bf16 %v1221_v11, %v1219_v42 }
 0x2d9   :  { %v1248_v14 = vpack.c.bf16 %v1222_v50, %v1220_v2  ;;  %v1164_v33 = vpop.f32.mrb[76].mxu0 }
 0x2da   :  { %v1165_v49 = vadd.f32 %v1164_v33, %v6313_v5  ;;  %v1166_v56 = vpop.f32.mrb[77].mxu0 }
 0x2db   :  { %v1167_v53 = vadd.f32 %v1166_v56, %v6316_v34  ;;  %v1168_v41 = vpop.f32.mrb[78].mxu0  ;;  %1563 = vmatprep.mubr.bf16.mxu1 %v1248_v14 }
 0x2dc   :  { %v1169_v22 = vadd.f32 %v1168_v41, %v6313_v5  ;;  %v1170_v52 = vpop.f32.mrb[79].mxu0  ;;  %1564 = vmatmul.mubr.bf16.gmra.mrb[72].mxu1 %v1247_v39  ;;  %v1223_v55 = vmax.f32 %v1165_v49, 0.0 }
 0x2dd   :  { %v1171_v48 = vadd.f32 %v1170_v52, %v6316_v34  ;;  %v1224_v27 = vmax.f32 %v1167_v53, 0.0 }
 0x2de   :  { %v1225_v30 = vmax.f32 %v1169_v22, 0.0 }
 0x2df   :  { %v1226_v15 = vmax.f32 %v1171_v48, 0.0 }
 0x2e0   :  { %v1249_v31 = vpack.c.bf16 %v1225_v30, %v1223_v55 }
 0x2e1   :  { %v1250_v28 = vpack.c.bf16 %v1226_v15, %v1224_v27  ;;  %v1174_v42 = vpop.f32.mrb[80].mxu0 }
 0x2e2   :  { %v1175_v11 = vadd.f32 %v1174_v42, %v6313_v5  ;;  %v1176_v2 = vpop.f32.mrb[81].mxu0 }
 0x2e3   :  { %v1177_v50 = vadd.f32 %v1176_v2, %v6316_v34  ;;  %v1178_v33 = vpop.f32.mrb[82].mxu0  ;;  %1573 = vmatprep.mubr.bf16.mxu1 %v1250_v28 }
 0x2e4   :  { %v1179_v14 = vadd.f32 %v1178_v33, %v6313_v5  ;;  %v1180_v56 = vpop.f32.mrb[83].mxu0  ;;  %1574 = vmatmul.mubr.bf16.gmra.mrb[76].mxu1 %v1249_v31  ;;  %v1227_v49 = vmax.f32 %v1175_v11, 0.0  ;;  %v5251_v11 = vld [vmem:[%s7991_s5 + $0x3d4] ss:$8 sps:$4 sm:$0xff]  }
 0x2e5   :  { %v1181_v39 = vadd.f32 %v1180_v56, %v6316_v34  ;;  %v1228_v53 = vmax.f32 %v1177_v50, 0.0  ;;  %2050 = vmatprep.subr.bf16.mxu0 %v5251_v11  ;;  %v5252_v50 = vld [vmem:[%s7991_s5 + $0x3e0] ss:$8 sps:$4 sm:$0xff]   ;;  %v5279_v11 = vld [vmem:[%s7991_s5 + $0x470] ss:$8 sps:$4 sm:$0xff]  }
 0x2e6   :  { %v1229_v41 = vmax.f32 %v1179_v14, 0.0  ;;  %v5257_v14 = vld [vmem:[%s7991_s5 + $0x3f4] ss:$8 sps:$4 sm:$0xff]  }
 0x2e7   :  { %v1230_v22 = vmax.f32 %v1181_v39, 0.0  ;;  %v5255_v39 = vld [vmem:[%s7991_s5 + $0x3f0] ss:$8 sps:$4 sm:$0xff]  }
 0x2e8   :  { %v1251_v52 = vpack.c.bf16 %v1229_v41, %v1227_v49  ;;  %v5258_v49 = vld [vmem:[%s7991_s5 + $0x400] ss:$8 sps:$4 sm:$0xff]   ;;  %v5260_v41 = vld [vmem:[%s7991_s5 + $0x404] ss:$8 sps:$4 sm:$0xff]  }
 0x2e9   :  { %v1252_v48 = vpack.c.bf16 %v1230_v22, %v1228_v53  ;;  %v1184_v55 = vpop.f32.mrb[84].mxu0  ;;  %v5263_v53 = vld [vmem:[%s7991_s5 + $0x414] ss:$8 sps:$4 sm:$0xff]   ;;  %2435 = vmatprep.subr.bf16.mxu1 %v5260_v41  ;;  %v5261_v22 = vld [vmem:[%s7991_s5 + $0x410] ss:$8 sps:$4 sm:$0xff]  }
 0x2ea   :  { %v1185_v30 = vadd.f32 %v1184_v55, %v6313_v5  ;;  %v1186_v27 = vpop.f32.mrb[85].mxu0  ;;  %v5249_v5 = vld [vmem:[%s7991_s5 + $0x3d0] ss:$8 sps:$4 sm:$0xff]   ;;  %2436 = vmatpush1.bf16.msra.mxu1 %v5258_v49  ;;  %v5269_v55 = vld [vmem:[%s7991_s5 + $0x434] ss:$8 sps:$4 sm:$0xff]  }
 0x2eb   :  { %1583 = vmatprep.mubr.bf16.mxu1 %v1252_v48  ;;  %v1187_v15 = vadd.f32 %v1186_v27, %v6316_v34  ;;  %v1188_v28 = vpop.f32.mrb[86].mxu0  ;;  %2051 = vmatpush1.bf16.msra.mxu0 %v5249_v5  ;;  %v5254_v34 = vld [vmem:[%s7991_s5 + $0x3e4] ss:$8 sps:$4 sm:$0xff]   ;;  %v5264_v48 = vld [vmem:[%s7991_s5 + $0x420] ss:$8 sps:$4 sm:$0xff]  }
 0x2ec   :  { %v1231_v42 = vmax.f32 %v1185_v30, 0.0  ;;  %1584 = vmatmul.mubr.bf16.gmra.mrb[80].mxu1 %v1251_v52  ;;  %v1189_v2 = vpop.f32.mrb[87].mxu0  ;;  %2052 = vmatprep.subr.bf16.mxu0 %v5254_v34  ;;  %v5266_v52 = vld [vmem:[%s7991_s5 + $0x424] ss:$8 sps:$4 sm:$0xff]   ;;  %v5267_v30 = vld [vmem:[%s7991_s5 + $0x430] ss:$8 sps:$4 sm:$0xff]  }
 0x2ed   :  { %v1232_v31 = vmax.f32 %v1187_v15, 0.0  ;;  %2437 = vmatprep.subr.bf16.mxu1 %v5263_v53  ;;  %v5272_v27 = vld [vmem:[%s7991_s5 + $0x444] ss:$8 sps:$4 sm:$0xff]   ;;  %v5270_v15 = vld [vmem:[%s7991_s5 + $0x440] ss:$8 sps:$4 sm:$0xff]  }
 0x2ee   :  { %v1253_v56 = vpack.c.bf16 %v1231_v42, %v1231_v42  ;;  %2438 = vmatpush1.bf16.msra.mxu1 %v5261_v22  ;;  %v5275_v28 = vld [vmem:[%s7991_s5 + $0x454] ss:$8 sps:$4 sm:$0xff]   ;;  %v5273_v42 = vld [vmem:[%s7991_s5 + $0x450] ss:$8 sps:$4 sm:$0xff]   ;;  %v5278_v2 = vld [vmem:[%s7991_s5 + $0x464] ss:$8 sps:$4 sm:$0xff]  }
 0x2ef   :  { %v1254_v33 = vpack.c.bf16 %v1232_v31, %v1232_v31  ;;  %2053 = vmatpush1.bf16.msra.mxu0 %v5252_v50  ;;  %2439 = vmatprep.subr.bf16.mxu1 %v5266_v52  ;;  %v5276_v31 = vld [vmem:[%s7991_s5 + $0x460] ss:$8 sps:$4 sm:$0xff]   ;;  %v5284_v34 = vld [vmem:[%s7991_s5 + $0x484] ss:$8 sps:$4 sm:$0xff]  }
 0x2f0   :  { %2054 = vmatprep.subr.bf16.mxu0 %v5257_v14  ;;  %v4636_v50 = vld [vmem:[%s7993_s3 + $0x2] sm:$0x3] }
 0x2f1   :  { %1593 = vmatprep.mubr.bf16.mxu1 %v1254_v33  ;;  %v5281_v33 = vld [vmem:[%s7991_s5 + $0x474] ss:$8 sps:$4 sm:$0xff]   ;;  %v5282_v49 = vld [vmem:[%s7991_s5 + $0x480] ss:$8 sps:$4 sm:$0xff]   ;;  %v6467_v53 = vrot.slane %v4636_v50, %v5771_v21 }
 0x2f2   :  { %2440 = vmatpush1.bf16.msra.mxu1 %v5264_v48  ;;  %v4637_v22 = vld [vmem:[%s7994_s4 + $0x2] sm:$0x3]  ;;  %v5287_v48 = vld [vmem:[%s7991_s5 + $0x494] ss:$8 sps:$4 sm:$0xff]  }
 0x2f3   :  { %2055 = vmatpush1.bf16.msra.mxu0 %v5255_v39  ;;  %2441 = vmatprep.subr.bf16.mxu1 %v5269_v55 }
 0x2f4   :  { %1594 = vmatmul.mubr.bf16.gmra.mrb[84].mxu1 %v1253_v56  ;;  %v4603_v56 = vld [vmem:[%s7995_s6 + $0x4] sm:$0x3] }
 0x2f5   :  { %v6451_v5 = vrot.slane %v4603_v56, %v5771_v21  ;;  %v6460_v14 = vrot.slane %v4603_v56, %v5776_v23  ;;  %v5285_v56 = vld [vmem:[%s7991_s5 + $0x490] ss:$8 sps:$4 sm:$0xff]  }
 0x2f6   :  { %2442 = vmatpush1.bf16.msra.mxu1 %v5267_v30  ;;  %v6477_v30 = vrot.slane %v4636_v50, %v5776_v23 }
 0x2f7   :  { %2443 = vmatprep.subr.bf16.mxu1 %v5272_v27 }
 0x2fa   :  { %2444 = vmatpush1.bf16.msra.mxu1 %v5270_v15 }
 0x2fb   :  { %2445 = vmatprep.subr.bf16.mxu1 %v5275_v28 }
 0x2fe   :  { %2446 = vmatpush1.bf16.msra.mxu1 %v5273_v42 }
 0x2ff   :  { %2447 = vmatprep.subr.bf16.mxu1 %v5278_v2 }
 0x302   :  { %2448 = vmatpush1.bf16.msra.mxu1 %v5276_v31 }
 0x303   :  { %2449 = vmatprep.subr.bf16.mxu1 %v5281_v33  ;;  %v6488_v33 = vrot.slane %v4637_v22, %v5776_v23 }
 0x306   :  { %2450 = vmatpush1.bf16.msra.mxu1 %v5279_v11  ;;  %v6496_v11 = vrot.slane %v4637_v22, %v5771_v21 }
 0x307   :  { %2451 = vmatprep.subr.bf16.mxu1 %v5284_v34 }
 0x30a   :  { %2452 = vmatpush1.bf16.msra.mxu1 %v5282_v49 }
 0x30b   :  { %2453 = vmatprep.subr.bf16.mxu1 %v5287_v48 }
 0x30e   :  { %2454 = vmatpush1.bf16.msra.mxu1 %v5285_v56 }
 0x377   :  { %v1495_v39 = vpop.f32.mrb[44].mxu1 }
 0x378   :  { %v1496_v41 = vadd.f32 %v1495_v39, %v6451_v5  ;;  %v1497_v52 = vpop.f32.mrb[45].mxu1 }
 0x379   :  { %v1498_v55 = vadd.f32 %v1497_v52, %v6460_v14  ;;  %v1499_v27 = vpop.f32.mrb[46].mxu1  ;;  %v5288_v52 = vld [vmem:[%s7991_s5 + $0x4a0] ss:$8 sps:$4 sm:$0xff]  }
 0x37a   :  { %v6480_v15 = vadd.f32 %v1496_v41, %v5809_v35  ;;  %v1500_v28 = vadd.f32 %v1499_v27, %v6451_v5  ;;  %v1501_v42 = vpop.f32.mrb[47].mxu1 }
 0x37b   :  { %v6484_v2 = vadd.f32 %v1498_v55, %v5812_v37  ;;  %v1502_v31 = vadd.f32 %v1501_v42, %v6460_v14  ;;  %v5290_v37 = vld [vmem:[%s7991_s5 + $0x4a4] ss:$8 sps:$4 sm:$0xff]  }
 0x37c   :  { %v1657_v35 = vmul.f32 %v6467_v53, %v6480_v15  ;;  %v6499_v34 = vadd.f32 %v1500_v28, %v5826_v43  ;;  %2455 = vmatprep.subr.bf16.mxu1 %v5290_v37  ;;  %v5293_v28 = vld [vmem:[%s7991_s5 + $0x4b4] ss:$8 sps:$4 sm:$0xff]  }
 0x37d   :  { %8027 = vst [vmem:[#allocation5_spill] sm:$0xff] %v6484_v2  ;;  %v1658_v50 = vmul.f32 %v6477_v30, %v6484_v2  ;;  %v6507_v39 = vadd.f32 %v1502_v31, %v5834_v47  ;;  %2456 = vmatpush1.bf16.msra.mxu1 %v5288_v52 }
 0x37e   :  { %8028 = vst [vmem:[#allocation6_spill] sm:$0xff] %v6499_v34  ;;  %v1659_v49 = vmul.f32 %v6467_v53, %v6499_v34  ;;  %v1712_v48 = vadd.f32 %v6496_v11, %v1657_v35  ;;  %2457 = vmatprep.subr.bf16.mxu1 %v5293_v28 }
 0x37f   :  { %8029 = vst [vmem:[#allocation7_spill] sm:$0xff] %v6507_v39  ;;  %v1660_v41 = vmul.f32 %v6477_v30, %v6507_v39  ;;  %v1505_v22 = vpop.f32.mrb[48].mxu1  ;;  %v1713_v43 = vadd.f32 %v6488_v33, %v1658_v50 }
 0x380   :  { %v1714_v55 = vadd.f32 %v6496_v11, %v1659_v49  ;;  %v1506_v47 = vadd.f32 %v1505_v22, %v6451_v5  ;;  %v1507_v27 = vpop.f32.mrb[49].mxu1 }
 0x381   :  { %v1508_v42 = vadd.f32 %v1507_v27, %v6460_v14  ;;  %v1509_v31 = vpop.f32.mrb[50].mxu1  ;;  %v1715_v56 = vadd.f32 %v6488_v33, %v1660_v41  ;;  %v1755_v34 = vmax.f32 %v1713_v43, 0.0  ;;  %v5291_v27 = vld [vmem:[%s7991_s5 + $0x4b0] ss:$8 sps:$4 sm:$0xff]   ;;  %v1754_v41 = vmax.f32 %v1712_v48, 0.0 }
 0x382   :  { %v1756_v50 = vmax.f32 %v1714_v55, 0.0  ;;  %v6526_v39 = vadd.f32 %v1506_v47, %v5851_v58  ;;  %v1510_v35 = vadd.f32 %v1509_v31, %v6451_v5  ;;  %v1511_v49 = vpop.f32.mrb[51].mxu1  ;;  %2458 = vmatpush1.bf16.msra.mxu1 %v5291_v27 }
 0x383   :  { %v6530_v22 = vadd.f32 %v1508_v42, %v5854_v60  ;;  %v1512_v37 = vadd.f32 %v1511_v49, %v6460_v14  ;;  %v1757_v2 = vmax.f32 %v1715_v56, 0.0  ;;  %v5296_v60 = vld [vmem:[%s7991_s5 + $0x4c4] ss:$8 sps:$4 sm:$0xff]   ;;  %v5294_v56 = vld [vmem:[%s7991_s5 + $0x4c0] ss:$8 sps:$4 sm:$0xff]  }
 0x384   :  { %v1661_v58 = vmul.f32 %v6467_v53, %v6526_v39  ;;  %v6539_v55 = vadd.f32 %v1510_v35, %v5862_v3  ;;  %v1796_v42 = vpack.c.bf16 %v1756_v50, %v1754_v41  ;;  %2459 = vmatprep.subr.bf16.mxu1 %v5296_v60  ;;  %v5299_v50 = vld [vmem:[%s7991_s5 + $0x4d4] ss:$8 sps:$4 sm:$0xff]  }
 0x385   :  { %v1662_v43 = vmul.f32 %v6477_v30, %v6530_v22  ;;  %v6547_v52 = vadd.f32 %v1512_v37, %v5870_v7  ;;  %v1797_v47 = vpack.c.bf16 %v1757_v2, %v1755_v34 }
 0x386   :  { %v1663_v48 = vmul.f32 %v6467_v53, %v6539_v55  ;;  %v1716_v2 = vadd.f32 %v6496_v11, %v1661_v58  ;;  %2460 = vmatpush1.bf16.msra.mxu1 %v5294_v56 }
 0x387   :  { %v1664_v3 = vmul.f32 %v6477_v30, %v6547_v52  ;;  %v1515_v31 = vpop.f32.mrb[52].mxu1  ;;  %2056 = vmatprep.mubr.bf16.mxu0 %v1797_v47  ;;  %v1717_v28 = vadd.f32 %v6488_v33, %v1662_v43  ;;  %2461 = vmatprep.subr.bf16.mxu1 %v5299_v50 }
 0x388   :  { %v1516_v7 = vadd.f32 %v1515_v31, %v6451_v5  ;;  %v1517_v35 = vpop.f32.mrb[53].mxu1  ;;  %2057 = vmatmul.mubr.bf16.vlgmr.msra.gmra.mrb[88].mxu0 %v1796_v42  ;;  %v1718_v34 = vadd.f32 %v6496_v11, %v1663_v48 }
 0x389   :  { %v1518_v49 = vadd.f32 %v1517_v35, %v6460_v14  ;;  %v1519_v37 = vpop.f32.mrb[54].mxu1  ;;  %v1719_v27 = vadd.f32 %v6488_v33, %v1664_v3  ;;  %v1759_v48 = vmax.f32 %v1717_v28, 0.0  ;;  %v5297_v35 = vld [vmem:[%s7991_s5 + $0x4d0] ss:$8 sps:$4 sm:$0xff]  }
 0x38a   :  { %v6566_v41 = vadd.f32 %v1516_v7, %v5887_v20  ;;  %v1520_v43 = vadd.f32 %v1519_v37, %v6451_v5  ;;  %v1521_v47 = vpop.f32.mrb[55].mxu1  ;;  %v1760_v42 = vmax.f32 %v1718_v34, 0.0  ;;  %v1758_v7 = vmax.f32 %v1716_v2, 0.0  ;;  %2462 = vmatpush1.bf16.msra.mxu1 %v5297_v35 }
 0x38b   :  { %v6570_v58 = vadd.f32 %v1518_v49, %v5890_v26  ;;  %v1522_v60 = vadd.f32 %v1521_v47, %v6460_v14  ;;  %v1761_v31 = vmax.f32 %v1719_v27, 0.0  ;;  %v5302_v26 = vld [vmem:[%s7991_s5 + $0x4e4] ss:$8 sps:$4 sm:$0xff]   ;;  %v5300_v27 = vld [vmem:[%s7991_s5 + $0x4e0] ss:$8 sps:$4 sm:$0xff]  }
 0x38c   :  { %v1665_v20 = vmul.f32 %v6467_v53, %v6566_v41  ;;  %v6579_v3 = vadd.f32 %v1520_v43, %v5898_v36  ;;  %v1798_v37 = vpack.c.bf16 %v1760_v42, %v1758_v7  ;;  %2463 = vmatprep.subr.bf16.mxu1 %v5302_v26 }
 0x38d   :  { %v1666_v28 = vmul.f32 %v6477_v30, %v6570_v58  ;;  %v6587_v56 = vadd.f32 %v1522_v60, %v5906_v44  ;;  %v1799_v34 = vpack.c.bf16 %v1761_v31, %v1759_v48 }
 0x38e   :  { %v1667_v49 = vmul.f32 %v6467_v53, %v6579_v3  ;;  %v1720_v47 = vadd.f32 %v6496_v11, %v1665_v20  ;;  %2464 = vmatpush1.bf16.msra.mxu1 %v5300_v27 }
 0x38f   :  { %v1668_v36 = vmul.f32 %v6477_v30, %v6587_v56  ;;  %v1525_v2 = vpop.f32.mrb[56].mxu1  ;;  %2066 = vmatprep.mubr.bf16.mxu0 %v1799_v34  ;;  %v1721_v50 = vadd.f32 %v6488_v33, %v1666_v28 }
 0x390   :  { %v1526_v44 = vadd.f32 %v1525_v2, %v6451_v5  ;;  %v1527_v43 = vpop.f32.mrb[57].mxu1  ;;  %2067 = vmatmul.mubr.bf16.gmra.mrb[92].mxu0 %v1798_v37  ;;  %v1722_v42 = vadd.f32 %v6496_v11, %v1667_v49 }
 0x391   :  { %v1528_v60 = vadd.f32 %v1527_v43, %v6460_v14  ;;  %v1529_v48 = vpop.f32.mrb[58].mxu1  ;;  %v1723_v31 = vadd.f32 %v6488_v33, %v1668_v36  ;;  %v1763_v37 = vmax.f32 %v1721_v50, 0.0 }
 0x392   :  { %v6603_v35 = vadd.f32 %v1526_v44, %v5920_v57  ;;  %v1530_v7 = vadd.f32 %v1529_v48, %v6451_v5  ;;  %v1531_v28 = vpop.f32.mrb[59].mxu1  ;;  %v1764_v34 = vmax.f32 %v1722_v42, 0.0  ;;  %v1762_v57 = vmax.f32 %v1720_v47, 0.0 }
 0x393   :  { %v6607_v2 = vadd.f32 %v1528_v60, %v5923_v63  ;;  %v1532_v20 = vadd.f32 %v1531_v28, %v6460_v14  ;;  %v1765_v49 = vmax.f32 %v1723_v31, 0.0 }
 0x394   :  { %v1669_v26 = vmul.f32 %v6467_v53, %v6603_v35  ;;  %v6613_v36 = vadd.f32 %v1530_v7, %v5928_v4  ;;  %v1800_v50 = vpack.c.bf16 %v1764_v34, %v1762_v57 }
 0x395   :  { %v1670_v44 = vmul.f32 %v6477_v30, %v6607_v2  ;;  %v6618_v43 = vadd.f32 %v1532_v20, %v5933_v8  ;;  %v1801_v63 = vpack.c.bf16 %v1765_v49, %v1763_v37 }
 0x396   :  { %v1671_v42 = vmul.f32 %v6467_v53, %v6613_v36  ;;  %v1724_v31 = vadd.f32 %v6496_v11, %v1669_v26 }
 0x397   :  { %v1672_v27 = vmul.f32 %v6477_v30, %v6618_v43  ;;  %v1535_v60 = vpop.f32.mrb[60].mxu1  ;;  %2076 = vmatprep.mubr.bf16.mxu0 %v1801_v63  ;;  %v1725_v4 = vadd.f32 %v6488_v33, %v1670_v44 }
 0x398   :  { %v1536_v47 = vadd.f32 %v1535_v60, %v6451_v5  ;;  %v1537_v48 = vpop.f32.mrb[61].mxu1  ;;  %2077 = vmatmul.mubr.bf16.gmra.mrb[96].mxu0 %v1800_v50  ;;  %v1726_v8 = vadd.f32 %v6496_v11, %v1671_v42 }
 0x399   :  { %v1538_v7 = vadd.f32 %v1537_v48, %v6460_v14  ;;  %v1539_v28 = vpop.f32.mrb[62].mxu1  ;;  %v1727_v34 = vadd.f32 %v6488_v33, %v1672_v27  ;;  %v1767_v26 = vmax.f32 %v1725_v4, 0.0  ;;  %v1766_v27 = vmax.f32 %v1724_v31, 0.0 }
 0x39a   :  { %v6631_v20 = vadd.f32 %v1536_v47, %v5944_v19  ;;  %v1540_v37 = vadd.f32 %v1539_v28, %v6451_v5  ;;  %v1541_v49 = vpop.f32.mrb[63].mxu1  ;;  %v1768_v57 = vmax.f32 %v1726_v8, 0.0 }
 0x39b   :  { %v6635_v44 = vadd.f32 %v1538_v7, %v5947_v29  ;;  %v1542_v63 = vadd.f32 %v1541_v49, %v6460_v14  ;;  %v1769_v50 = vmax.f32 %v1727_v34, 0.0 }
 0x39c   :  { %v1673_v42 = vmul.f32 %v6467_v53, %v6631_v20  ;;  %v6641_v60 = vadd.f32 %v1540_v37, %v5952_v38  ;;  %v1802_v8 = vpack.c.bf16 %v1768_v57, %v1766_v27 }
 0x39d   :  { %v1674_v19 = vmul.f32 %v6477_v30, %v6635_v44  ;;  %v6646_v47 = vadd.f32 %v1542_v63, %v5957_v45  ;;  %v1803_v48 = vpack.c.bf16 %v1769_v50, %v1767_v26 }
 0x39e   :  { %v1675_v29 = vmul.f32 %v6467_v53, %v6641_v60  ;;  %v1728_v34 = vadd.f32 %v6496_v11, %v1673_v42 }
 0x39f   :  { %v1676_v4 = vmul.f32 %v6477_v30, %v6646_v47  ;;  %v1545_v7 = vpop.f32.mrb[64].mxu1  ;;  %2086 = vmatprep.mubr.bf16.mxu0 %v1803_v48  ;;  %v1729_v38 = vadd.f32 %v6488_v33, %v1674_v19 }
 0x3a0   :  { %v1546_v31 = vadd.f32 %v1545_v7, %v6451_v5  ;;  %v1547_v28 = vpop.f32.mrb[65].mxu1  ;;  %2087 = vmatmul.mubr.bf16.gmra.mrb[100].mxu0 %v1802_v8  ;;  %v1730_v45 = vadd.f32 %v6496_v11, %v1675_v29 }
 0x3a1   :  { %v1548_v37 = vadd.f32 %v1547_v28, %v6460_v14  ;;  %v1549_v49 = vpop.f32.mrb[66].mxu1  ;;  %v1731_v57 = vadd.f32 %v6488_v33, %v1676_v4  ;;  %v1771_v42 = vmax.f32 %v1729_v38, 0.0  ;;  %v1770_v4 = vmax.f32 %v1728_v34, 0.0 }
 0x3a2   :  { %v6659_v63 = vadd.f32 %v1546_v31, %v5968_v59  ;;  %v1550_v26 = vadd.f32 %v1549_v49, %v6451_v5  ;;  %v1551_v50 = vpop.f32.mrb[67].mxu1  ;;  %v1772_v27 = vmax.f32 %v1730_v45, 0.0 }
 0x3a3   :  { %v6663_v19 = vadd.f32 %v1548_v37, %v5971_v1  ;;  %v1552_v48 = vadd.f32 %v1551_v50, %v6460_v14  ;;  %v1773_v8 = vmax.f32 %v1731_v57, 0.0 }
 0x3a4   :  { %v1677_v29 = vmul.f32 %v6467_v53, %v6659_v63  ;;  %v6669_v7 = vadd.f32 %v1550_v26, %v5976_v9  ;;  %v1804_v45 = vpack.c.bf16 %v1772_v27, %v1770_v4 }
 0x3a5   :  { %v1678_v59 = vmul.f32 %v6477_v30, %v6663_v19  ;;  %v6674_v31 = vadd.f32 %v1552_v48, %v5981_v12  ;;  %v1805_v28 = vpack.c.bf16 %v1773_v8, %v1771_v42 }
 0x3a6   :  { %v1679_v1 = vmul.f32 %v6467_v53, %v6669_v7  ;;  %v1732_v57 = vadd.f32 %v6496_v11, %v1677_v29 }
 0x3a7   :  { %v1680_v38 = vmul.f32 %v6477_v30, %v6674_v31  ;;  %v1555_v37 = vpop.f32.mrb[68].mxu1  ;;  %2096 = vmatprep.mubr.bf16.mxu0 %v1805_v28  ;;  %v1733_v9 = vadd.f32 %v6488_v33, %v1678_v59 }
 0x3a8   :  { %v1556_v34 = vadd.f32 %v1555_v37, %v6451_v5  ;;  %v1557_v49 = vpop.f32.mrb[69].mxu1  ;;  %2097 = vmatmul.mubr.bf16.gmra.mrb[104].mxu0 %v1804_v45  ;;  %v1734_v12 = vadd.f32 %v6496_v11, %v1679_v1 }
 0x3a9   :  { %v1558_v26 = vadd.f32 %v1557_v49, %v6460_v14  ;;  %v1559_v50 = vpop.f32.mrb[70].mxu1  ;;  %v1735_v27 = vadd.f32 %v6488_v33, %v1680_v38  ;;  %v1775_v29 = vmax.f32 %v1733_v9, 0.0  ;;  %v1774_v38 = vmax.f32 %v1732_v57, 0.0 }
 0x3aa   :  { %v6687_v48 = vadd.f32 %v1556_v34, %v5992_v32  ;;  %v1560_v42 = vadd.f32 %v1559_v50, %v6451_v5  ;;  %v1561_v8 = vpop.f32.mrb[71].mxu1  ;;  %v1776_v4 = vmax.f32 %v1734_v12, 0.0 }
 0x3ab   :  { %v6691_v59 = vadd.f32 %v1558_v26, %v5995_v46  ;;  %v1562_v28 = vadd.f32 %v1561_v8, %v6460_v14  ;;  %v1777_v45 = vmax.f32 %v1735_v27, 0.0 }
 0x3ac   :  { %v1681_v1 = vmul.f32 %v6467_v53, %v6687_v48  ;;  %v6697_v37 = vadd.f32 %v1560_v42, %v6000_v51  ;;  %v1806_v12 = vpack.c.bf16 %v1776_v4, %v1774_v38 }
 0x3ad   :  { %v1682_v32 = vmul.f32 %v6477_v30, %v6691_v59  ;;  %v6702_v34 = vadd.f32 %v1562_v28, %v6005_v54  ;;  %v1807_v49 = vpack.c.bf16 %v1777_v45, %v1775_v29 }
 0x3ae   :  { %v1683_v46 = vmul.f32 %v6467_v53, %v6697_v37  ;;  %v1736_v27 = vadd.f32 %v6496_v11, %v1681_v1 }
 0x3af   :  { %v1684_v9 = vmul.f32 %v6477_v30, %v6702_v34  ;;  %v1565_v26 = vpop.f32.mrb[72].mxu1  ;;  %2106 = vmatprep.mubr.bf16.mxu0 %v1807_v49  ;;  %v1737_v51 = vadd.f32 %v6488_v33, %v1682_v32 }
 0x3b0   :  { %v1566_v57 = vadd.f32 %v1565_v26, %v6451_v5  ;;  %v1567_v50 = vpop.f32.mrb[73].mxu1  ;;  %2107 = vmatmul.mubr.bf16.gmra.mrb[108].mxu0 %v1806_v12  ;;  %v1738_v54 = vadd.f32 %v6496_v11, %v1683_v46 }
 0x3b1   :  { %v1568_v42 = vadd.f32 %v1567_v50, %v6460_v14  ;;  %v1569_v8 = vpop.f32.mrb[74].mxu1  ;;  %v1739_v4 = vadd.f32 %v6488_v33, %v1684_v9  ;;  %v1779_v1 = vmax.f32 %v1737_v51, 0.0  ;;  %v1778_v9 = vmax.f32 %v1736_v27, 0.0 }
 0x3b2   :  { %v6715_v28 = vadd.f32 %v1566_v57, %v6016_v13  ;;  %v1570_v29 = vadd.f32 %v1569_v8, %v6451_v5  ;;  %v1571_v45 = vpop.f32.mrb[75].mxu1  ;;  %v1780_v38 = vmax.f32 %v1738_v54, 0.0 }
 0x3b3   :  { %v6719_v32 = vadd.f32 %v1568_v42, %v6019_v17  ;;  %v1572_v49 = vadd.f32 %v1571_v45, %v6460_v14  ;;  %v1781_v12 = vmax.f32 %v1739_v4, 0.0 }
 0x3b4   :  { %v1685_v46 = vmul.f32 %v6467_v53, %v6715_v28  ;;  %v6725_v26 = vadd.f32 %v1570_v29, %v6024_v25  ;;  %v1808_v54 = vpack.c.bf16 %v1780_v38, %v1778_v9 }
 0x3b5   :  { %v1686_v13 = vmul.f32 %v6477_v30, %v6719_v32  ;;  %v6730_v57 = vadd.f32 %v1572_v49, %v6029_v40  ;;  %v1809_v50 = vpack.c.bf16 %v1781_v12, %v1779_v1 }
 0x3b6   :  { %v1687_v17 = vmul.f32 %v6467_v53, %v6725_v26  ;;  %v1740_v4 = vadd.f32 %v6496_v11, %v1685_v46 }
 0x3b7   :  { %v1688_v51 = vmul.f32 %v6477_v30, %v6730_v57  ;;  %v1575_v42 = vpop.f32.mrb[76].mxu1  ;;  %2116 = vmatprep.mubr.bf16.mxu0 %v1809_v50  ;;  %v1741_v25 = vadd.f32 %v6488_v33, %v1686_v13 }
 0x3b8   :  { %v1576_v27 = vadd.f32 %v1575_v42, %v6451_v5  ;;  %v1577_v8 = vpop.f32.mrb[77].mxu1  ;;  %2117 = vmatmul.mubr.bf16.gmra.mrb[112].mxu0 %v1808_v54  ;;  %v1742_v40 = vadd.f32 %v6496_v11, %v1687_v17 }
 0x3b9   :  { %v1578_v29 = vadd.f32 %v1577_v8, %v6460_v14  ;;  %v1579_v45 = vpop.f32.mrb[78].mxu1  ;;  %v1743_v38 = vadd.f32 %v6488_v33, %v1688_v51  ;;  %v1783_v46 = vmax.f32 %v1741_v25, 0.0  ;;  %v1782_v51 = vmax.f32 %v1740_v4, 0.0 }
 0x3ba   :  { %v6743_v49 = vadd.f32 %v1576_v27, %v6040_v0  ;;  %v1580_v1 = vadd.f32 %v1579_v45, %v6451_v5  ;;  %v1581_v12 = vpop.f32.mrb[79].mxu1  ;;  %v1784_v9 = vmax.f32 %v1742_v40, 0.0 }
 0x3bb   :  { %v6747_v13 = vadd.f32 %v1578_v29, %v6043_v10  ;;  %v1582_v50 = vadd.f32 %v1581_v12, %v6460_v14  ;;  %v1785_v54 = vmax.f32 %v1743_v38, 0.0 }
 0x3bc   :  { %v1689_v17 = vmul.f32 %v6467_v53, %v6743_v49  ;;  %v6753_v42 = vadd.f32 %v1580_v1, %v6048_v16  ;;  %v1810_v40 = vpack.c.bf16 %v1784_v9, %v1782_v51 }
 0x3bd   :  { %v1690_v0 = vmul.f32 %v6477_v30, %v6747_v13  ;;  %v6758_v27 = vadd.f32 %v1582_v50, %v6053_v24  ;;  %v1811_v8 = vpack.c.bf16 %v1785_v54, %v1783_v46 }
 0x3be   :  { %v1691_v10 = vmul.f32 %v6467_v53, %v6753_v42  ;;  %v1744_v38 = vadd.f32 %v6496_v11, %v1689_v17 }
 0x3bf   :  { %v1692_v25 = vmul.f32 %v6477_v30, %v6758_v27  ;;  %v1585_v29 = vpop.f32.mrb[80].mxu1  ;;  %2126 = vmatprep.mubr.bf16.mxu0 %v1811_v8  ;;  %v1745_v16 = vadd.f32 %v6488_v33, %v1690_v0 }
 0x3c0   :  { %v1586_v4 = vadd.f32 %v1585_v29, %v6451_v5  ;;  %v1587_v45 = vpop.f32.mrb[81].mxu1  ;;  %2127 = vmatmul.mubr.bf16.gmra.mrb[116].mxu0 %v1810_v40  ;;  %v1746_v24 = vadd.f32 %v6496_v11, %v1691_v10 }
 0x3c1   :  { %v1588_v1 = vadd.f32 %v1587_v45, %v6460_v14  ;;  %v1589_v12 = vpop.f32.mrb[82].mxu1  ;;  %v1747_v9 = vadd.f32 %v6488_v33, %v1692_v25  ;;  %v1787_v17 = vmax.f32 %v1745_v16, 0.0  ;;  %v1786_v25 = vmax.f32 %v1744_v38, 0.0 }
 0x3c2   :  { %v6771_v50 = vadd.f32 %v1586_v4, %v6064_v61  ;;  %v1590_v46 = vadd.f32 %v1589_v12, %v6451_v5  ;;  %v1591_v54 = vpop.f32.mrb[83].mxu1  ;;  %v1788_v51 = vmax.f32 %v1746_v24, 0.0  ;;  %v8030_v4 = vld [vmem:[#allocation3_spill] sm:$0xff] }
 0x3c3   :  { %v6775_v0 = vadd.f32 %v1588_v1, %v6067_v6  ;;  %v1592_v8 = vadd.f32 %v1591_v54, %v6460_v14  ;;  %v1789_v40 = vmax.f32 %v1747_v9, 0.0 }
 0x3c4   :  { %v1693_v10 = vmul.f32 %v6467_v53, %v6771_v50  ;;  %v6781_v29 = vadd.f32 %v1590_v46, %v6072_v18  ;;  %v1812_v1 = vpack.c.bf16 %v1788_v51, %v1786_v25 }
 0x3c5   :  { %v1694_v61 = vmul.f32 %v6477_v30, %v6775_v0  ;;  %v6786_v45 = vadd.f32 %v1592_v8, %v8030_v4  ;;  %v1813_v24 = vpack.c.bf16 %v1789_v40, %v1787_v17 }
 0x3c6   :  { %v1695_v6 = vmul.f32 %v6467_v53, %v6781_v29  ;;  %v1748_v46 = vadd.f32 %v6496_v11, %v1693_v10 }
 0x3c7   :  { %v1696_v16 = vmul.f32 %v6477_v30, %v6786_v45  ;;  %v1595_v12 = vpop.f32.mrb[84].mxu1  ;;  %2136 = vmatprep.mubr.bf16.mxu0 %v1813_v24  ;;  %v1749_v18 = vadd.f32 %v6488_v33, %v1694_v61  ;;  %v8031_v24 = vld [vmem:[#allocation4_spill] sm:$0xff] }
 0x3c8   :  { %v1596_v38 = vadd.f32 %v1595_v12, %v6451_v5  ;;  %v1597_v9 = vpop.f32.mrb[85].mxu1  ;;  %2137 = vmatmul.mubr.bf16.gmra.mrb[120].mxu0 %v1812_v1  ;;  %v1750_v54 = vadd.f32 %v6496_v11, %v1695_v6  ;;  %v1790_v1 = vmax.f32 %v1748_v46, 0.0  ;;  %v5311_v46 = vld [vmem:[%s7991_s5 + $0x514] ss:$8 sps:$4 sm:$0xff]  }
 0x3c9   :  { %v1598_v8 = vadd.f32 %v1597_v9, %v6460_v14  ;;  %v1599_v17 = vpop.f32.mrb[86].mxu1  ;;  %v1751_v51 = vadd.f32 %v6488_v33, %v1696_v16  ;;  %v1791_v5 = vmax.f32 %v1749_v18, 0.0 }
 0x3ca   :  { %v6799_v40 = vadd.f32 %v1596_v38, %v6088_v62  ;;  %v1600_v25 = vpop.f32.mrb[87].mxu1  ;;  %v1792_v4 = vmax.f32 %v1750_v54, 0.0  ;;  %v5309_v17 = vld [vmem:[%s7991_s5 + $0x510] ss:$8 sps:$4 sm:$0xff]  }
 0x3cb   :  { %v6802_v61 = vadd.f32 %v1598_v8, %v8031_v24  ;;  %v1793_v12 = vmax.f32 %v1751_v51, 0.0  ;;  %v5314_v51 = vld [vmem:[%s7991_s5 + $0x524] ss:$8 sps:$4 sm:$0xff]   ;;  %v5312_v25 = vld [vmem:[%s7991_s5 + $0x520] ss:$8 sps:$4 sm:$0xff]  }
 0x3cc   :  { %v1697_v10 = vmul.f32 %v6467_v53, %v6799_v40  ;;  %v1814_v9 = vpack.c.bf16 %v1792_v4, %v1790_v1  ;;  %v5305_v53 = vld [vmem:[%s7991_s5 + $0x4f4] ss:$8 sps:$4 sm:$0xff]   ;;  %v5315_v24 = vld [vmem:[%s7991_s5 + $0x530] ss:$8 sps:$4 sm:$0xff]  }
 0x3cd   :  { %v1698_v14 = vmul.f32 %v6477_v30, %v6802_v61  ;;  %v1815_v6 = vpack.c.bf16 %v1793_v12, %v1791_v5  ;;  %v5303_v30 = vld [vmem:[%s7991_s5 + $0x4f0] ss:$8 sps:$4 sm:$0xff]   ;;  %2465 = vmatprep.subr.bf16.mxu1 %v5305_v53  ;;  %v5317_v4 = vld [vmem:[%s7991_s5 + $0x534] ss:$8 sps:$4 sm:$0xff]   ;;  %v5320_v5 = vld [vmem:[%s7991_s5 + $0x544] ss:$8 sps:$4 sm:$0xff]  }
 0x3ce   :  { %v1752_v16 = vadd.f32 %v6496_v11, %v1697_v10  ;;  %2466 = vmatpush1.bf16.msra.mxu1 %v5303_v30  ;;  %v5308_v11 = vld [vmem:[%s7991_s5 + $0x504] ss:$8 sps:$4 sm:$0xff]   ;;  %v5318_v12 = vld [vmem:[%s7991_s5 + $0x540] ss:$8 sps:$4 sm:$0xff]   ;;  %v5323_v10 = vld [vmem:[%s7991_s5 + $0x554] ss:$8 sps:$4 sm:$0xff]  }
 0x3cf   :  { %2146 = vmatprep.mubr.bf16.mxu0 %v1815_v6  ;;  %v1753_v62 = vadd.f32 %v6488_v33, %v1698_v14  ;;  %v5306_v33 = vld [vmem:[%s7991_s5 + $0x500] ss:$8 sps:$4 sm:$0xff]   ;;  %2846 = vmatprep.subr.bf16.mxu0 %v5308_v11  ;;  %v5321_v1 = vld [vmem:[%s7991_s5 + $0x550] ss:$8 sps:$4 sm:$0xff]   ;;  %v5326_v14 = vld [vmem:[%s7991_s5 + $0x564] ss:$8 sps:$4 sm:$0xff]  }
 0x3d0   :  { %2147 = vmatmul.mubr.bf16.gmra.mrb[124].mxu0 %v1814_v9  ;;  %v1794_v54 = vmax.f32 %v1752_v16, 0.0  ;;  %v5324_v6 = vld [vmem:[%s7991_s5 + $0x560] ss:$8 sps:$4 sm:$0xff]   ;;  %v5329_v9 = vld [vmem:[%s7991_s5 + $0x574] ss:$8 sps:$4 sm:$0xff]  }
 0x3d1   :  { %v1795_v38 = vmax.f32 %v1753_v62, 0.0  ;;  %2847 = vmatpush1.bf16.msra.mxu0 %v5306_v33  ;;  %v5327_v16 = vld [vmem:[%s7991_s5 + $0x570] ss:$8 sps:$4 sm:$0xff]   ;;  %v5332_v62 = vld [vmem:[%s7991_s5 + $0x584] ss:$8 sps:$4 sm:$0xff]  }
 0x3d2   :  { %v1816_v18 = vpack.c.bf16 %v1794_v54, %v1794_v54  ;;  %2848 = vmatprep.subr.bf16.mxu0 %v5311_v46  ;;  %v5330_v54 = vld [vmem:[%s7991_s5 + $0x580] ss:$8 sps:$4 sm:$0xff]   ;;  %v5333_v30 = vld [vmem:[%s7991_s5 + $0x590] ss:$8 sps:$4 sm:$0xff]   ;;  %v5338_v33 = vld [vmem:[%s7991_s5 + $0x5a4] ss:$8 sps:$4 sm:$0xff]  }
 0x3d3   :  { %v1817_v8 = vpack.c.bf16 %v1795_v38, %v1795_v38  ;;  %v4670_v38 = vld [vmem:[%s7995_s6 + $0x6] sm:$0x3] }
 0x3d4   :  { %v6880_v53 = vrot.slane %v4670_v38, %v5776_v23 }
 0x3d5   :  { %2156 = vmatprep.mubr.bf16.mxu0 %v1817_v8  ;;  %2849 = vmatpush1.bf16.msra.mxu0 %v5309_v17  ;;  %v5335_v8 = vld [vmem:[%s7991_s5 + $0x594] ss:$8 sps:$4 sm:$0xff]  }
 0x3d6   :  { %2850 = vmatprep.subr.bf16.mxu0 %v5314_v51 }
 0x3d8   :  { %2157 = vmatmul.mubr.bf16.gmra.mrb[128].mxu0 %v1816_v18  ;;  %v6877_v18 = vrot.slane %v4670_v38, %v5771_v21  ;;  %v5344_v38 = vld [vmem:[%s7991_s5 + $0x5c4] ss:$8 sps:$4 sm:$0xff]  }
 0x3d9   :  { %2851 = vmatpush1.bf16.msra.mxu0 %v5312_v25 }
 0x3da   :  { %2852 = vmatprep.subr.bf16.mxu0 %v5317_v4  ;;  %v5336_v4 = vld [vmem:[%s7991_s5 + $0x5a0] ss:$8 sps:$4 sm:$0xff]  }
 0x3dd   :  { %2853 = vmatpush1.bf16.msra.mxu0 %v5315_v24 }
 0x3de   :  { %2854 = vmatprep.subr.bf16.mxu0 %v5320_v5 }
 0x3e1   :  { %2855 = vmatpush1.bf16.msra.mxu0 %v5318_v12  ;;  %v5341_v12 = vld [vmem:[%s7991_s5 + $0x5b4] ss:$8 sps:$4 sm:$0xff]  }
 0x3e2   :  { %2856 = vmatprep.subr.bf16.mxu0 %v5323_v10 }
 0x3e5   :  { %2857 = vmatpush1.bf16.msra.mxu0 %v5321_v1 }
 0x3e6   :  { %2858 = vmatprep.subr.bf16.mxu0 %v5326_v14 }
 0x3e9   :  { %2859 = vmatpush1.bf16.msra.mxu0 %v5324_v6 }
 0x3ea   :  { %2860 = vmatprep.subr.bf16.mxu0 %v5329_v9 }
 0x3ed   :  { %2861 = vmatpush1.bf16.msra.mxu0 %v5327_v16  ;;  %v5339_v16 = vld [vmem:[%s7991_s5 + $0x5b0] ss:$8 sps:$4 sm:$0xff]  }
 0x3ee   :  { %2862 = vmatprep.subr.bf16.mxu0 %v5332_v62 }
 0x3f1   :  { %2863 = vmatpush1.bf16.msra.mxu0 %v5330_v54 }
 0x3f2   :  { %2864 = vmatprep.subr.bf16.mxu0 %v5335_v8 }
 0x3f5   :  { %2865 = vmatpush1.bf16.msra.mxu0 %v5333_v30 }
 0x3f6   :  { %2866 = vmatprep.subr.bf16.mxu0 %v5338_v33 }
 0x3f9   :  { %2867 = vmatpush1.bf16.msra.mxu0 %v5336_v4  ;;  %v5347_v4 = vld [vmem:[%s7991_s5 + $0x5d4] ss:$8 sps:$4 sm:$0xff]  }
 0x3fa   :  { %2868 = vmatprep.subr.bf16.mxu0 %v5341_v12 }
 0x3fd   :  { %2869 = vmatpush1.bf16.msra.mxu0 %v5339_v16 }
 0x3fe   :  { %2870 = vmatprep.subr.bf16.mxu0 %v5344_v38 }
 0x45b   :  { %v2058_v11 = vpop.f32.mrb[88].mxu0 }
 0x45c   :  { %v2059_v46 = vadd.f32 %v2058_v11, %v6877_v18  ;;  %v2060_v17 = vpop.f32.mrb[89].mxu0 }
 0x45d   :  { %v2061_v51 = vadd.f32 %v2060_v17, %v6880_v53  ;;  %v2062_v25 = vpop.f32.mrb[90].mxu0  ;;  %v5342_v17 = vld [vmem:[%s7991_s5 + $0x5c0] ss:$8 sps:$4 sm:$0xff]  }
 0x45e   :  { %v2063_v24 = vadd.f32 %v2062_v25, %v6877_v18  ;;  %v2064_v5 = vpop.f32.mrb[91].mxu0  ;;  %v2165_v1 = vmax.f32 %v2059_v46, 0.0  ;;  %2871 = vmatpush1.bf16.msra.mxu0 %v5342_v17 }
 0x45f   :  { %v2065_v10 = vadd.f32 %v2064_v5, %v6880_v53  ;;  %v2166_v6 = vmax.f32 %v2061_v51, 0.0  ;;  %2872 = vmatprep.subr.bf16.mxu0 %v5347_v4 }
 0x460   :  { %v2167_v14 = vmax.f32 %v2063_v24, 0.0 }
 0x461   :  { %v2168_v9 = vmax.f32 %v2065_v10, 0.0 }
 0x462   :  { %v2207_v62 = vpack.c.bf16 %v2167_v14, %v2165_v1  ;;  %v5345_v14 = vld [vmem:[%s7991_s5 + $0x5d0] ss:$8 sps:$4 sm:$0xff]  }
 0x463   :  { %v2208_v54 = vpack.c.bf16 %v2168_v9, %v2166_v6  ;;  %v2068_v8 = vpop.f32.mrb[92].mxu0  ;;  %v5350_v9 = vld [vmem:[%s7991_s5 + $0x5e4] ss:$8 sps:$4 sm:$0xff]   ;;  %2873 = vmatpush1.bf16.msra.mxu0 %v5345_v14 }
 0x464   :  { %v2069_v30 = vadd.f32 %v2068_v8, %v6877_v18  ;;  %v2070_v33 = vpop.f32.mrb[93].mxu0  ;;  %2874 = vmatprep.subr.bf16.mxu0 %v5350_v9 }
 0x465   :  { %v2071_v11 = vadd.f32 %v2070_v33, %v6880_v53  ;;  %v2072_v46 = vpop.f32.mrb[94].mxu0  ;;  %2467 = vmatprep.mubr.bf16.mxu1 %v2208_v54  ;;  %v5348_v33 = vld [vmem:[%s7991_s5 + $0x5e0] ss:$8 sps:$4 sm:$0xff]  }
 0x466   :  { %v2073_v51 = vadd.f32 %v2072_v46, %v6877_v18  ;;  %v2074_v25 = vpop.f32.mrb[95].mxu0  ;;  %2468 = vmatmul.mubr.bf16.vlgmr.msra.gmra.mrb[88].mxu1 %v2207_v62  ;;  %v2169_v5 = vmax.f32 %v2069_v30, 0.0 }
 0x467   :  { %v2075_v24 = vadd.f32 %v2074_v25, %v6880_v53  ;;  %v2170_v10 = vmax.f32 %v2071_v11, 0.0  ;;  %2875 = vmatpush1.bf16.msra.mxu0 %v5348_v33 }
 0x468   :  { %v2171_v12 = vmax.f32 %v2073_v51, 0.0 }
 0x469   :  { %v2172_v1 = vmax.f32 %v2075_v24, 0.0 }
 0x46a   :  { %v2209_v6 = vpack.c.bf16 %v2171_v12, %v2169_v5 }
 0x46b   :  { %v2210_v16 = vpack.c.bf16 %v2172_v1, %v2170_v10  ;;  %v2078_v62 = vpop.f32.mrb[96].mxu0 }
 0x46c   :  { %v2079_v38 = vadd.f32 %v2078_v62, %v6877_v18  ;;  %v2080_v54 = vpop.f32.mrb[97].mxu0 }
 0x46d   :  { %v2081_v8 = vadd.f32 %v2080_v54, %v6880_v53  ;;  %v2082_v30 = vpop.f32.mrb[98].mxu0  ;;  %2477 = vmatprep.mubr.bf16.mxu1 %v2210_v16 }
 0x46e   :  { %v2083_v11 = vadd.f32 %v2082_v30, %v6877_v18  ;;  %v2084_v46 = vpop.f32.mrb[99].mxu0  ;;  %2478 = vmatmul.mubr.bf16.gmra.mrb[92].mxu1 %v2209_v6  ;;  %v2173_v51 = vmax.f32 %v2079_v38, 0.0 }
 0x46f   :  { %v2085_v17 = vadd.f32 %v2084_v46, %v6880_v53  ;;  %v2174_v4 = vmax.f32 %v2081_v8, 0.0 }
 0x470   :  { %v2175_v25 = vmax.f32 %v2083_v11, 0.0 }
 0x471   :  { %v2176_v24 = vmax.f32 %v2085_v17, 0.0 }
 0x472   :  { %v2211_v5 = vpack.c.bf16 %v2175_v25, %v2173_v51 }
 0x473   :  { %v2212_v12 = vpack.c.bf16 %v2176_v24, %v2174_v4  ;;  %v2088_v10 = vpop.f32.mrb[100].mxu0 }
 0x474   :  { %v2089_v1 = vadd.f32 %v2088_v10, %v6877_v18  ;;  %v2090_v14 = vpop.f32.mrb[101].mxu0 }
 0x475   :  { %v2091_v16 = vadd.f32 %v2090_v14, %v6880_v53  ;;  %v2092_v62 = vpop.f32.mrb[102].mxu0  ;;  %2487 = vmatprep.mubr.bf16.mxu1 %v2212_v12 }
 0x476   :  { %v2093_v6 = vadd.f32 %v2092_v62, %v6877_v18  ;;  %v2094_v9 = vpop.f32.mrb[103].mxu0  ;;  %2488 = vmatmul.mubr.bf16.gmra.mrb[96].mxu1 %v2211_v5  ;;  %v2177_v54 = vmax.f32 %v2089_v1, 0.0 }
 0x477   :  { %v2095_v38 = vadd.f32 %v2094_v9, %v6880_v53  ;;  %v2178_v30 = vmax.f32 %v2091_v16, 0.0 }
 0x478   :  { %v2179_v8 = vmax.f32 %v2093_v6, 0.0 }
 0x479   :  { %v2180_v33 = vmax.f32 %v2095_v38, 0.0 }
 0x47a   :  { %v2213_v11 = vpack.c.bf16 %v2179_v8, %v2177_v54 }
 0x47b   :  { %v2214_v46 = vpack.c.bf16 %v2180_v33, %v2178_v30  ;;  %v2098_v17 = vpop.f32.mrb[104].mxu0 }
 0x47c   :  { %v2099_v51 = vadd.f32 %v2098_v17, %v6877_v18  ;;  %v2100_v25 = vpop.f32.mrb[105].mxu0 }
 0x47d   :  { %v2101_v4 = vadd.f32 %v2100_v25, %v6880_v53  ;;  %v2102_v24 = vpop.f32.mrb[106].mxu0  ;;  %2497 = vmatprep.mubr.bf16.mxu1 %v2214_v46 }
 0x47e   :  { %v2103_v12 = vadd.f32 %v2102_v24, %v6877_v18  ;;  %v2104_v10 = vpop.f32.mrb[107].mxu0  ;;  %2498 = vmatmul.mubr.bf16.gmra.mrb[100].mxu1 %v2213_v11  ;;  %v2181_v1 = vmax.f32 %v2099_v51, 0.0 }
 0x47f   :  { %v2105_v5 = vadd.f32 %v2104_v10, %v6880_v53  ;;  %v2182_v16 = vmax.f32 %v2101_v4, 0.0 }
 0x480   :  { %v2183_v14 = vmax.f32 %v2103_v12, 0.0 }
 0x481   :  { %v2184_v62 = vmax.f32 %v2105_v5, 0.0 }
 0x482   :  { %v2215_v6 = vpack.c.bf16 %v2183_v14, %v2181_v1 }
 0x483   :  { %v2216_v9 = vpack.c.bf16 %v2184_v62, %v2182_v16  ;;  %v2108_v38 = vpop.f32.mrb[108].mxu0 }
 0x484   :  { %v2109_v54 = vadd.f32 %v2108_v38, %v6877_v18  ;;  %v2110_v8 = vpop.f32.mrb[109].mxu0 }
 0x485   :  { %v2111_v30 = vadd.f32 %v2110_v8, %v6880_v53  ;;  %v2112_v33 = vpop.f32.mrb[110].mxu0  ;;  %2507 = vmatprep.mubr.bf16.mxu1 %v2216_v9 }
 0x486   :  { %v2113_v46 = vadd.f32 %v2112_v33, %v6877_v18  ;;  %v2114_v17 = vpop.f32.mrb[111].mxu0  ;;  %2508 = vmatmul.mubr.bf16.gmra.mrb[104].mxu1 %v2215_v6  ;;  %v2185_v51 = vmax.f32 %v2109_v54, 0.0 }
 0x487   :  { %v2115_v11 = vadd.f32 %v2114_v17, %v6880_v53  ;;  %v2186_v4 = vmax.f32 %v2111_v30, 0.0 }
 0x488   :  { %v2187_v25 = vmax.f32 %v2113_v46, 0.0 }
 0x489   :  { %v2188_v24 = vmax.f32 %v2115_v11, 0.0 }
 0x48a   :  { %v2217_v12 = vpack.c.bf16 %v2187_v25, %v2185_v51 }
 0x48b   :  { %v2218_v10 = vpack.c.bf16 %v2188_v24, %v2186_v4  ;;  %v2118_v5 = vpop.f32.mrb[112].mxu0 }
 0x48c   :  { %v2119_v1 = vadd.f32 %v2118_v5, %v6877_v18  ;;  %v2120_v14 = vpop.f32.mrb[113].mxu0 }
 0x48d   :  { %v2121_v16 = vadd.f32 %v2120_v14, %v6880_v53  ;;  %v2122_v62 = vpop.f32.mrb[114].mxu0  ;;  %2517 = vmatprep.mubr.bf16.mxu1 %v2218_v10 }
 0x48e   :  { %v2123_v9 = vadd.f32 %v2122_v62, %v6877_v18  ;;  %v2124_v38 = vpop.f32.mrb[115].mxu0  ;;  %2518 = vmatmul.mubr.bf16.gmra.mrb[108].mxu1 %v2217_v12  ;;  %v2189_v54 = vmax.f32 %v2119_v1, 0.0 }
 0x48f   :  { %v2125_v6 = vadd.f32 %v2124_v38, %v6880_v53  ;;  %v2190_v30 = vmax.f32 %v2121_v16, 0.0 }
 0x490   :  { %v2191_v8 = vmax.f32 %v2123_v9, 0.0 }
 0x491   :  { %v2192_v33 = vmax.f32 %v2125_v6, 0.0 }
 0x492   :  { %v2219_v46 = vpack.c.bf16 %v2191_v8, %v2189_v54 }
 0x493   :  { %v2220_v17 = vpack.c.bf16 %v2192_v33, %v2190_v30  ;;  %v2128_v11 = vpop.f32.mrb[116].mxu0 }
 0x494   :  { %v2129_v51 = vadd.f32 %v2128_v11, %v6877_v18  ;;  %v2130_v25 = vpop.f32.mrb[117].mxu0 }
 0x495   :  { %v2131_v4 = vadd.f32 %v2130_v25, %v6880_v53  ;;  %v2132_v24 = vpop.f32.mrb[118].mxu0  ;;  %2527 = vmatprep.mubr.bf16.mxu1 %v2220_v17 }
 0x496   :  { %v2133_v10 = vadd.f32 %v2132_v24, %v6877_v18  ;;  %v2134_v5 = vpop.f32.mrb[119].mxu0  ;;  %2528 = vmatmul.mubr.bf16.gmra.mrb[112].mxu1 %v2219_v46  ;;  %v2193_v1 = vmax.f32 %v2129_v51, 0.0 }
 0x497   :  { %v2135_v12 = vadd.f32 %v2134_v5, %v6880_v53  ;;  %v2194_v16 = vmax.f32 %v2131_v4, 0.0 }
 0x498   :  { %v2195_v14 = vmax.f32 %v2133_v10, 0.0 }
 0x499   :  { %v2196_v62 = vmax.f32 %v2135_v12, 0.0 }
 0x49a   :  { %v2221_v9 = vpack.c.bf16 %v2195_v14, %v2193_v1 }
 0x49b   :  { %v2222_v38 = vpack.c.bf16 %v2196_v62, %v2194_v16  ;;  %v2138_v6 = vpop.f32.mrb[120].mxu0 }
 0x49c   :  { %v2139_v54 = vadd.f32 %v2138_v6, %v6877_v18  ;;  %v2140_v8 = vpop.f32.mrb[121].mxu0 }
 0x49d   :  { %v2141_v30 = vadd.f32 %v2140_v8, %v6880_v53  ;;  %v2142_v33 = vpop.f32.mrb[122].mxu0  ;;  %2537 = vmatprep.mubr.bf16.mxu1 %v2222_v38 }
 0x49e   :  { %v2143_v17 = vadd.f32 %v2142_v33, %v6877_v18  ;;  %v2144_v11 = vpop.f32.mrb[123].mxu0  ;;  %2538 = vmatmul.mubr.bf16.gmra.mrb[116].mxu1 %v2221_v9  ;;  %v2197_v51 = vmax.f32 %v2139_v54, 0.0 }
 0x49f   :  { %v2145_v46 = vadd.f32 %v2144_v11, %v6880_v53  ;;  %v2198_v4 = vmax.f32 %v2141_v30, 0.0 }
 0x4a0   :  { %v2199_v25 = vmax.f32 %v2143_v17, 0.0 }
 0x4a1   :  { %v2200_v24 = vmax.f32 %v2145_v46, 0.0 }
 0x4a2   :  { %v2223_v10 = vpack.c.bf16 %v2199_v25, %v2197_v51 }
 0x4a3   :  { %v2224_v5 = vpack.c.bf16 %v2200_v24, %v2198_v4  ;;  %v2148_v12 = vpop.f32.mrb[124].mxu0 }
 0x4a4   :  { %v2149_v1 = vadd.f32 %v2148_v12, %v6877_v18  ;;  %v2150_v14 = vpop.f32.mrb[125].mxu0 }
 0x4a5   :  { %v2151_v16 = vadd.f32 %v2150_v14, %v6880_v53  ;;  %v2152_v62 = vpop.f32.mrb[126].mxu0  ;;  %2547 = vmatprep.mubr.bf16.mxu1 %v2224_v5 }
 0x4a6   :  { %v2153_v38 = vadd.f32 %v2152_v62, %v6877_v18  ;;  %v2154_v6 = vpop.f32.mrb[127].mxu0  ;;  %2548 = vmatmul.mubr.bf16.gmra.mrb[120].mxu1 %v2223_v10  ;;  %v2201_v54 = vmax.f32 %v2149_v1, 0.0  ;;  %v5356_v62 = vld [vmem:[%s7991_s5 + $0x604] ss:$8 sps:$4 sm:$0xff]  }
 0x4a7   :  { %v2155_v9 = vadd.f32 %v2154_v6, %v6880_v53  ;;  %v2202_v30 = vmax.f32 %v2151_v16, 0.0  ;;  %v5353_v16 = vld [vmem:[%s7991_s5 + $0x5f4] ss:$8 sps:$4 sm:$0xff]   ;;  %3409 = vmatprep.subr.bf16.mxu1 %v5356_v62  ;;  %v5357_v6 = vld [vmem:[%s7991_s5 + $0x610] ss:$8 sps:$4 sm:$0xff]  }
 0x4a8   :  { %v2203_v8 = vmax.f32 %v2153_v38, 0.0  ;;  %2876 = vmatprep.subr.bf16.mxu0 %v5353_v16  ;;  %v5359_v38 = vld [vmem:[%s7991_s5 + $0x614] ss:$8 sps:$4 sm:$0xff]  }
 0x4a9   :  { %v2204_v33 = vmax.f32 %v2155_v9, 0.0  ;;  %v5362_v9 = vld [vmem:[%s7991_s5 + $0x624] ss:$8 sps:$4 sm:$0xff]  }
 0x4aa   :  { %v2225_v17 = vpack.c.bf16 %v2203_v8, %v2201_v54  ;;  %v5360_v54 = vld [vmem:[%s7991_s5 + $0x620] ss:$8 sps:$4 sm:$0xff]   ;;  %v5365_v8 = vld [vmem:[%s7991_s5 + $0x634] ss:$8 sps:$4 sm:$0xff]  }
 0x4ab   :  { %v2226_v11 = vpack.c.bf16 %v2204_v33, %v2202_v30  ;;  %v2158_v46 = vpop.f32.mrb[128].mxu0  ;;  %v5363_v30 = vld [vmem:[%s7991_s5 + $0x630] ss:$8 sps:$4 sm:$0xff]   ;;  %v5368_v33 = vld [vmem:[%s7991_s5 + $0x644] ss:$8 sps:$4 sm:$0xff]  }
 0x4ac   :  { %v2159_v51 = vadd.f32 %v2158_v46, %v6877_v18  ;;  %v2160_v25 = vpop.f32.mrb[129].mxu0  ;;  %v5351_v18 = vld [vmem:[%s7991_s5 + $0x5f0] ss:$8 sps:$4 sm:$0xff]  }
 0x4ad   :  { %v2161_v4 = vadd.f32 %v2160_v25, %v6880_v53  ;;  %v2162_v24 = vpop.f32.mrb[130].mxu0  ;;  %2557 = vmatprep.mubr.bf16.mxu1 %v2226_v11  ;;  %2877 = vmatpush1.bf16.msra.mxu0 %v5351_v18  ;;  %v5354_v53 = vld [vmem:[%s7991_s5 + $0x600] ss:$8 sps:$4 sm:$0xff]   ;;  %v5371_v11 = vld [vmem:[%s7991_s5 + $0x654] ss:$8 sps:$4 sm:$0xff]  }
 0x4ae   :  { %v2163_v5 = vpop.f32.mrb[131].mxu0  ;;  %2558 = vmatmul.mubr.bf16.gmra.mrb[124].mxu1 %v2225_v17  ;;  %v2205_v10 = vmax.f32 %v2159_v51, 0.0  ;;  %v5366_v17 = vld [vmem:[%s7991_s5 + $0x640] ss:$8 sps:$4 sm:$0xff]   ;;  %v5369_v46 = vld [vmem:[%s7991_s5 + $0x650] ss:$8 sps:$4 sm:$0xff]  }
 0x4af   :  { %v2206_v12 = vmax.f32 %v2161_v4, 0.0  ;;  %3410 = vmatpush1.bf16.msra.mxu1 %v5354_v53  ;;  %v5374_v51 = vld [vmem:[%s7991_s5 + $0x664] ss:$8 sps:$4 sm:$0xff]   ;;  %v5372_v25 = vld [vmem:[%s7991_s5 + $0x660] ss:$8 sps:$4 sm:$0xff]  }
 0x4b0   :  { %v2227_v1 = vpack.c.bf16 %v2205_v10, %v2205_v10  ;;  %3411 = vmatprep.subr.bf16.mxu1 %v5359_v38  ;;  %v5377_v4 = vld [vmem:[%s7991_s5 + $0x674] ss:$8 sps:$4 sm:$0xff]   ;;  %v5375_v24 = vld [vmem:[%s7991_s5 + $0x670] ss:$8 sps:$4 sm:$0xff]   ;;  %v5380_v5 = vld [vmem:[%s7991_s5 + $0x684] ss:$8 sps:$4 sm:$0xff]  }
 0x4b1   :  { %v2228_v14 = vpack.c.bf16 %v2206_v12, %v2206_v12  ;;  %v4735_v12 = vld [vmem:[%s7995_s6 + $0x8] sm:$0x3]  ;;  %v5381_v18 = vld [vmem:[%s7991_s5 + $0x690] ss:$8 sps:$4 sm:$0xff]   ;;  %v5386_v53 = vld [vmem:[%s7991_s5 + $0x6a4] ss:$8 sps:$4 sm:$0xff]  }
 0x4b2   :  { %v5378_v10 = vld [vmem:[%s7991_s5 + $0x680] ss:$8 sps:$4 sm:$0xff]   ;;  %v7027_v16 = vrot.slane %v4735_v12, %v5776_v23 }
 0x4b3   :  { %2567 = vmatprep.mubr.bf16.mxu1 %v2228_v14  ;;  %3412 = vmatpush1.bf16.msra.mxu1 %v5357_v6  ;;  %v5383_v14 = vld [vmem:[%s7991_s5 + $0x694] ss:$8 sps:$4 sm:$0xff]  }
 0x4b4   :  { %3413 = vmatprep.subr.bf16.mxu1 %v5362_v9 }
 0x4b6   :  { %2568 = vmatmul.mubr.bf16.gmra.mrb[128].mxu1 %v2227_v1  ;;  %v7024_v1 = vrot.slane %v4735_v12, %v5771_v21  ;;  %v5392_v12 = vld [vmem:[%s7991_s5 + $0x6c4] ss:$8 sps:$4 sm:$0xff]  }
 0x4b7   :  { %3414 = vmatpush1.bf16.msra.mxu1 %v5360_v54 }
 0x4b8   :  { %3415 = vmatprep.subr.bf16.mxu1 %v5365_v8  ;;  %v5384_v8 = vld [vmem:[%s7991_s5 + $0x6a0] ss:$8 sps:$4 sm:$0xff]  }
 0x4bb   :  { %3416 = vmatpush1.bf16.msra.mxu1 %v5363_v30 }
 0x4bc   :  { %3417 = vmatprep.subr.bf16.mxu1 %v5368_v33 }
 0x4bf   :  { %3418 = vmatpush1.bf16.msra.mxu1 %v5366_v17  ;;  %v5389_v17 = vld [vmem:[%s7991_s5 + $0x6b4] ss:$8 sps:$4 sm:$0xff]  }
 0x4c0   :  { %3419 = vmatprep.subr.bf16.mxu1 %v5371_v11 }
 0x4c3   :  { %3420 = vmatpush1.bf16.msra.mxu1 %v5369_v46 }
 0x4c4   :  { %3421 = vmatprep.subr.bf16.mxu1 %v5374_v51 }
 0x4c7   :  { %3422 = vmatpush1.bf16.msra.mxu1 %v5372_v25 }
 0x4c8   :  { %3423 = vmatprep.subr.bf16.mxu1 %v5377_v4 }
 0x4cb   :  { %3424 = vmatpush1.bf16.msra.mxu1 %v5375_v24  ;;  %v5387_v24 = vld [vmem:[%s7991_s5 + $0x6b0] ss:$8 sps:$4 sm:$0xff]  }
 0x4cc   :  { %3425 = vmatprep.subr.bf16.mxu1 %v5380_v5 }
 0x4cf   :  { %3426 = vmatpush1.bf16.msra.mxu1 %v5378_v10 }
 0x4d0   :  { %3427 = vmatprep.subr.bf16.mxu1 %v5383_v14 }
 0x4d3   :  { %3428 = vmatpush1.bf16.msra.mxu1 %v5381_v18 }
 0x4d4   :  { %3429 = vmatprep.subr.bf16.mxu1 %v5386_v53 }
 0x4d7   :  { %3430 = vmatpush1.bf16.msra.mxu1 %v5384_v8 }
 0x4d8   :  { %3431 = vmatprep.subr.bf16.mxu1 %v5389_v17 }
 0x4db   :  { %3432 = vmatpush1.bf16.msra.mxu1 %v5387_v24 }
 0x4dc   :  { %3433 = vmatprep.subr.bf16.mxu1 %v5392_v12 }
 0x539   :  { %v2469_v62 = vpop.f32.mrb[88].mxu1 }
 0x53a   :  { %v2470_v38 = vadd.f32 %v2469_v62, %v7024_v1  ;;  %v2471_v6 = vpop.f32.mrb[89].mxu1 }
 0x53b   :  { %v2472_v9 = vadd.f32 %v2471_v6, %v7027_v16  ;;  %v2473_v54 = vpop.f32.mrb[90].mxu1  ;;  %v5390_v6 = vld [vmem:[%s7991_s5 + $0x6c0] ss:$8 sps:$4 sm:$0xff]  }
 0x53c   :  { %v2474_v30 = vadd.f32 %v2473_v54, %v7024_v1  ;;  %v2475_v33 = vpop.f32.mrb[91].mxu1  ;;  %v2576_v46 = vmax.f32 %v2470_v38, 0.0  ;;  %3434 = vmatpush1.bf16.msra.mxu1 %v5390_v6 }
 0x53d   :  { %v2476_v11 = vadd.f32 %v2475_v33, %v7027_v16  ;;  %v2577_v25 = vmax.f32 %v2472_v9, 0.0 }
 0x53e   :  { %v2578_v51 = vmax.f32 %v2474_v30, 0.0 }
 0x53f   :  { %v2579_v4 = vmax.f32 %v2476_v11, 0.0 }
 0x540   :  { %v2618_v5 = vpack.c.bf16 %v2578_v51, %v2576_v46 }
 0x541   :  { %v2619_v10 = vpack.c.bf16 %v2579_v4, %v2577_v25  ;;  %v2479_v14 = vpop.f32.mrb[92].mxu1 }
 0x542   :  { %v2480_v18 = vadd.f32 %v2479_v14, %v7024_v1  ;;  %v2481_v53 = vpop.f32.mrb[93].mxu1 }
 0x543   :  { %v2482_v62 = vadd.f32 %v2481_v53, %v7027_v16  ;;  %v2483_v38 = vpop.f32.mrb[94].mxu1  ;;  %2878 = vmatprep.mubr.bf16.mxu0 %v2619_v10 }
 0x544   :  { %v2484_v9 = vadd.f32 %v2483_v38, %v7024_v1  ;;  %v2485_v54 = vpop.f32.mrb[95].mxu1  ;;  %2879 = vmatmul.mubr.bf16.vlgmr.msra.gmra.mrb[132].mxu0 %v2618_v5  ;;  %v2580_v30 = vmax.f32 %v2480_v18, 0.0 }
 0x545   :  { %v2486_v8 = vadd.f32 %v2485_v54, %v7027_v16  ;;  %v2581_v17 = vmax.f32 %v2482_v62, 0.0 }
 0x546   :  { %v2582_v33 = vmax.f32 %v2484_v9, 0.0 }
 0x547   :  { %v2583_v11 = vmax.f32 %v2486_v8, 0.0 }
 0x548   :  { %v2620_v46 = vpack.c.bf16 %v2582_v33, %v2580_v30 }
 0x549   :  { %v2621_v51 = vpack.c.bf16 %v2583_v11, %v2581_v17  ;;  %v2489_v25 = vpop.f32.mrb[96].mxu1 }
 0x54a   :  { %v2490_v4 = vadd.f32 %v2489_v25, %v7024_v1  ;;  %v2491_v24 = vpop.f32.mrb[97].mxu1 }
 0x54b   :  { %v2492_v10 = vadd.f32 %v2491_v24, %v7027_v16  ;;  %v2493_v14 = vpop.f32.mrb[98].mxu1  ;;  %2888 = vmatprep.mubr.bf16.mxu0 %v2621_v51 }
 0x54c   :  { %v2494_v5 = vadd.f32 %v2493_v14, %v7024_v1  ;;  %v2495_v12 = vpop.f32.mrb[99].mxu1  ;;  %2889 = vmatmul.mubr.bf16.gmra.mrb[136].mxu0 %v2620_v46  ;;  %v2584_v53 = vmax.f32 %v2490_v4, 0.0 }
 0x54d   :  { %v2496_v18 = vadd.f32 %v2495_v12, %v7027_v16  ;;  %v2585_v38 = vmax.f32 %v2492_v10, 0.0 }
 0x54e   :  { %v2586_v62 = vmax.f32 %v2494_v5, 0.0 }
 0x54f   :  { %v2587_v6 = vmax.f32 %v2496_v18, 0.0 }
 0x550   :  { %v2622_v9 = vpack.c.bf16 %v2586_v62, %v2584_v53 }
 0x551   :  { %v2623_v54 = vpack.c.bf16 %v2587_v6, %v2585_v38  ;;  %v2499_v8 = vpop.f32.mrb[100].mxu1 }
 0x552   :  { %v2500_v30 = vadd.f32 %v2499_v8, %v7024_v1  ;;  %v2501_v33 = vpop.f32.mrb[101].mxu1 }
 0x553   :  { %v2502_v17 = vadd.f32 %v2501_v33, %v7027_v16  ;;  %v2503_v11 = vpop.f32.mrb[102].mxu1  ;;  %2898 = vmatprep.mubr.bf16.mxu0 %v2623_v54 }
 0x554   :  { %v2504_v51 = vadd.f32 %v2503_v11, %v7024_v1  ;;  %v2505_v25 = vpop.f32.mrb[103].mxu1  ;;  %2899 = vmatmul.mubr.bf16.gmra.mrb[140].mxu0 %v2622_v9  ;;  %v2588_v4 = vmax.f32 %v2500_v30, 0.0 }
 0x555   :  { %v2506_v46 = vadd.f32 %v2505_v25, %v7027_v16  ;;  %v2589_v10 = vmax.f32 %v2502_v17, 0.0 }
 0x556   :  { %v2590_v24 = vmax.f32 %v2504_v51, 0.0 }
 0x557   :  { %v2591_v14 = vmax.f32 %v2506_v46, 0.0 }
 0x558   :  { %v2624_v5 = vpack.c.bf16 %v2590_v24, %v2588_v4 }
 0x559   :  { %v2625_v12 = vpack.c.bf16 %v2591_v14, %v2589_v10  ;;  %v2509_v18 = vpop.f32.mrb[104].mxu1 }
 0x55a   :  { %v2510_v53 = vadd.f32 %v2509_v18, %v7024_v1  ;;  %v2511_v62 = vpop.f32.mrb[105].mxu1 }
 0x55b   :  { %v2512_v38 = vadd.f32 %v2511_v62, %v7027_v16  ;;  %v2513_v6 = vpop.f32.mrb[106].mxu1  ;;  %2908 = vmatprep.mubr.bf16.mxu0 %v2625_v12 }
 0x55c   :  { %v2514_v54 = vadd.f32 %v2513_v6, %v7024_v1  ;;  %v2515_v8 = vpop.f32.mrb[107].mxu1  ;;  %2909 = vmatmul.mubr.bf16.gmra.mrb[144].mxu0 %v2624_v5  ;;  %v2592_v30 = vmax.f32 %v2510_v53, 0.0 }
 0x55d   :  { %v2516_v9 = vadd.f32 %v2515_v8, %v7027_v16  ;;  %v2593_v17 = vmax.f32 %v2512_v38, 0.0 }
 0x55e   :  { %v2594_v33 = vmax.f32 %v2514_v54, 0.0 }
 0x55f   :  { %v2595_v11 = vmax.f32 %v2516_v9, 0.0 }
 0x560   :  { %v2626_v51 = vpack.c.bf16 %v2594_v33, %v2592_v30 }
 0x561   :  { %v2627_v25 = vpack.c.bf16 %v2595_v11, %v2593_v17  ;;  %v2519_v46 = vpop.f32.mrb[108].mxu1 }
 0x562   :  { %v2520_v4 = vadd.f32 %v2519_v46, %v7024_v1  ;;  %v2521_v24 = vpop.f32.mrb[109].mxu1 }
 0x563   :  { %v2522_v10 = vadd.f32 %v2521_v24, %v7027_v16  ;;  %v2523_v14 = vpop.f32.mrb[110].mxu1  ;;  %2918 = vmatprep.mubr.bf16.mxu0 %v2627_v25 }
 0x564   :  { %v2524_v12 = vadd.f32 %v2523_v14, %v7024_v1  ;;  %v2525_v18 = vpop.f32.mrb[111].mxu1  ;;  %2919 = vmatmul.mubr.bf16.gmra.mrb[148].mxu0 %v2626_v51  ;;  %v2596_v53 = vmax.f32 %v2520_v4, 0.0 }
 0x565   :  { %v2526_v5 = vadd.f32 %v2525_v18, %v7027_v16  ;;  %v2597_v38 = vmax.f32 %v2522_v10, 0.0 }
 0x566   :  { %v2598_v62 = vmax.f32 %v2524_v12, 0.0 }
 0x567   :  { %v2599_v6 = vmax.f32 %v2526_v5, 0.0 }
 0x568   :  { %v2628_v54 = vpack.c.bf16 %v2598_v62, %v2596_v53 }
 0x569   :  { %v2629_v8 = vpack.c.bf16 %v2599_v6, %v2597_v38  ;;  %v2529_v9 = vpop.f32.mrb[112].mxu1 }
 0x56a   :  { %v2530_v30 = vadd.f32 %v2529_v9, %v7024_v1  ;;  %v2531_v33 = vpop.f32.mrb[113].mxu1 }
 0x56b   :  { %v2532_v17 = vadd.f32 %v2531_v33, %v7027_v16  ;;  %v2533_v11 = vpop.f32.mrb[114].mxu1  ;;  %2928 = vmatprep.mubr.bf16.mxu0 %v2629_v8 }
 0x56c   :  { %v2534_v25 = vadd.f32 %v2533_v11, %v7024_v1  ;;  %v2535_v46 = vpop.f32.mrb[115].mxu1  ;;  %2929 = vmatmul.mubr.bf16.gmra.mrb[152].mxu0 %v2628_v54  ;;  %v2600_v4 = vmax.f32 %v2530_v30, 0.0 }
 0x56d   :  { %v2536_v51 = vadd.f32 %v2535_v46, %v7027_v16  ;;  %v2601_v10 = vmax.f32 %v2532_v17, 0.0 }
 0x56e   :  { %v2602_v24 = vmax.f32 %v2534_v25, 0.0 }
 0x56f   :  { %v2603_v14 = vmax.f32 %v2536_v51, 0.0 }
 0x570   :  { %v2630_v12 = vpack.c.bf16 %v2602_v24, %v2600_v4 }
 0x571   :  { %v2631_v18 = vpack.c.bf16 %v2603_v14, %v2601_v10  ;;  %v2539_v5 = vpop.f32.mrb[116].mxu1 }
 0x572   :  { %v2540_v53 = vadd.f32 %v2539_v5, %v7024_v1  ;;  %v2541_v62 = vpop.f32.mrb[117].mxu1 }
 0x573   :  { %v2542_v38 = vadd.f32 %v2541_v62, %v7027_v16  ;;  %v2543_v6 = vpop.f32.mrb[118].mxu1  ;;  %2938 = vmatprep.mubr.bf16.mxu0 %v2631_v18 }
 0x574   :  { %v2544_v8 = vadd.f32 %v2543_v6, %v7024_v1  ;;  %v2545_v9 = vpop.f32.mrb[119].mxu1  ;;  %2939 = vmatmul.mubr.bf16.gmra.mrb[156].mxu0 %v2630_v12  ;;  %v2604_v30 = vmax.f32 %v2540_v53, 0.0 }
 0x575   :  { %v2546_v54 = vadd.f32 %v2545_v9, %v7027_v16  ;;  %v2605_v17 = vmax.f32 %v2542_v38, 0.0 }
 0x576   :  { %v2606_v33 = vmax.f32 %v2544_v8, 0.0 }
 0x577   :  { %v2607_v11 = vmax.f32 %v2546_v54, 0.0 }
 0x578   :  { %v2632_v25 = vpack.c.bf16 %v2606_v33, %v2604_v30 }
 0x579   :  { %v2633_v46 = vpack.c.bf16 %v2607_v11, %v2605_v17  ;;  %v2549_v51 = vpop.f32.mrb[120].mxu1 }
 0x57a   :  { %v2550_v4 = vadd.f32 %v2549_v51, %v7024_v1  ;;  %v2551_v24 = vpop.f32.mrb[121].mxu1 }
 0x57b   :  { %v2552_v10 = vadd.f32 %v2551_v24, %v7027_v16  ;;  %v2553_v14 = vpop.f32.mrb[122].mxu1  ;;  %2948 = vmatprep.mubr.bf16.mxu0 %v2633_v46 }
 0x57c   :  { %v2554_v18 = vadd.f32 %v2553_v14, %v7024_v1  ;;  %v2555_v5 = vpop.f32.mrb[123].mxu1  ;;  %2949 = vmatmul.mubr.bf16.gmra.mrb[160].mxu0 %v2632_v25  ;;  %v2608_v53 = vmax.f32 %v2550_v4, 0.0 }
 0x57d   :  { %v2556_v12 = vadd.f32 %v2555_v5, %v7027_v16  ;;  %v2609_v38 = vmax.f32 %v2552_v10, 0.0 }
 0x57e   :  { %v2610_v62 = vmax.f32 %v2554_v18, 0.0 }
 0x57f   :  { %v2611_v6 = vmax.f32 %v2556_v12, 0.0 }
 0x580   :  { %v2634_v8 = vpack.c.bf16 %v2610_v62, %v2608_v53 }
 0x581   :  { %v2635_v9 = vpack.c.bf16 %v2611_v6, %v2609_v38  ;;  %v2559_v54 = vpop.f32.mrb[124].mxu1 }
 0x582   :  { %v2560_v30 = vadd.f32 %v2559_v54, %v7024_v1  ;;  %v2561_v33 = vpop.f32.mrb[125].mxu1 }
 0x583   :  { %v2562_v17 = vadd.f32 %v2561_v33, %v7027_v16  ;;  %v2563_v11 = vpop.f32.mrb[126].mxu1  ;;  %2958 = vmatprep.mubr.bf16.mxu0 %v2635_v9 }
 0x584   :  { %v2564_v46 = vadd.f32 %v2563_v11, %v7024_v1  ;;  %v2565_v51 = vpop.f32.mrb[127].mxu1  ;;  %2959 = vmatmul.mubr.bf16.gmra.mrb[164].mxu0 %v2634_v8  ;;  %v2612_v4 = vmax.f32 %v2560_v30, 0.0  ;;  %v5396_v11 = vld [vmem:[%s7991_s5 + $0x6e0] ss:$8 sps:$4 sm:$0xff]  }
 0x585   :  { %v2566_v25 = vadd.f32 %v2565_v51, %v7027_v16  ;;  %v2613_v10 = vmax.f32 %v2562_v17, 0.0  ;;  %v5395_v17 = vld [vmem:[%s7991_s5 + $0x6d4] ss:$8 sps:$4 sm:$0xff]   ;;  %v5399_v51 = vld [vmem:[%s7991_s5 + $0x6f0] ss:$8 sps:$4 sm:$0xff]  }
 0x586   :  { %v2614_v24 = vmax.f32 %v2564_v46, 0.0  ;;  %3435 = vmatprep.subr.bf16.mxu1 %v5395_v17  ;;  %v5401_v46 = vld [vmem:[%s7991_s5 + $0x6f4] ss:$8 sps:$4 sm:$0xff]  }
 0x587   :  { %v2615_v14 = vmax.f32 %v2566_v25, 0.0  ;;  %v5402_v25 = vld [vmem:[%s7991_s5 + $0x700] ss:$8 sps:$4 sm:$0xff]  }
 0x588   :  { %v2636_v18 = vpack.c.bf16 %v2614_v24, %v2612_v4  ;;  %v5404_v4 = vld [vmem:[%s7991_s5 + $0x704] ss:$8 sps:$4 sm:$0xff]   ;;  %v5407_v24 = vld [vmem:[%s7991_s5 + $0x714] ss:$8 sps:$4 sm:$0xff]  }
 0x589   :  { %v2637_v5 = vpack.c.bf16 %v2615_v14, %v2613_v10  ;;  %v2569_v12 = vpop.f32.mrb[128].mxu1  ;;  %3820 = vmatprep.subr.bf16.mxu0 %v5404_v4  ;;  %v5405_v10 = vld [vmem:[%s7991_s5 + $0x710] ss:$8 sps:$4 sm:$0xff]   ;;  %v5410_v14 = vld [vmem:[%s7991_s5 + $0x724] ss:$8 sps:$4 sm:$0xff]  }
 0x58a   :  { %v2570_v53 = vadd.f32 %v2569_v12, %v7024_v1  ;;  %v2571_v62 = vpop.f32.mrb[129].mxu1  ;;  %v5393_v1 = vld [vmem:[%s7991_s5 + $0x6d0] ss:$8 sps:$4 sm:$0xff]   ;;  %3821 = vmatpush1.bf16.msra.mxu0 %v5402_v25 }
 0x58b   :  { %v2572_v38 = vadd.f32 %v2571_v62, %v7027_v16  ;;  %v2573_v6 = vpop.f32.mrb[130].mxu1  ;;  %2968 = vmatprep.mubr.bf16.mxu0 %v2637_v5  ;;  %3436 = vmatpush1.bf16.msra.mxu1 %v5393_v1  ;;  %v5398_v16 = vld [vmem:[%s7991_s5 + $0x6e4] ss:$8 sps:$4 sm:$0xff]   ;;  %v5413_v5 = vld [vmem:[%s7991_s5 + $0x734] ss:$8 sps:$4 sm:$0xff]  }
 0x58c   :  { %v2574_v9 = vpop.f32.mrb[131].mxu1  ;;  %2969 = vmatmul.mubr.bf16.gmra.mrb[168].mxu0 %v2636_v18  ;;  %v2616_v8 = vmax.f32 %v2570_v53, 0.0  ;;  %3437 = vmatprep.subr.bf16.mxu1 %v5398_v16  ;;  %v5408_v18 = vld [vmem:[%s7991_s5 + $0x720] ss:$8 sps:$4 sm:$0xff]   ;;  %v5411_v12 = vld [vmem:[%s7991_s5 + $0x730] ss:$8 sps:$4 sm:$0xff]  }
 0x58d   :  { %v2617_v54 = vmax.f32 %v2572_v38, 0.0  ;;  %3822 = vmatprep.subr.bf16.mxu0 %v5407_v24  ;;  %v5416_v53 = vld [vmem:[%s7991_s5 + $0x744] ss:$8 sps:$4 sm:$0xff]   ;;  %v5414_v62 = vld [vmem:[%s7991_s5 + $0x740] ss:$8 sps:$4 sm:$0xff]  }
 0x58e   :  { %v2638_v30 = vpack.c.bf16 %v2616_v8, %v2616_v8  ;;  %3823 = vmatpush1.bf16.msra.mxu0 %v5405_v10  ;;  %v5419_v38 = vld [vmem:[%s7991_s5 + $0x754] ss:$8 sps:$4 sm:$0xff]   ;;  %v5417_v6 = vld [vmem:[%s7991_s5 + $0x750] ss:$8 sps:$4 sm:$0xff]   ;;  %v5422_v9 = vld [vmem:[%s7991_s5 + $0x764] ss:$8 sps:$4 sm:$0xff]  }
 0x58f   :  { %v2639_v33 = vpack.c.bf16 %v2617_v54, %v2617_v54  ;;  %3438 = vmatpush1.bf16.msra.mxu1 %v5396_v11  ;;  %3824 = vmatprep.subr.bf16.mxu0 %v5410_v14  ;;  %v5420_v54 = vld [vmem:[%s7991_s5 + $0x760] ss:$8 sps:$4 sm:$0xff]   ;;  %v5425_v8 = vld [vmem:[%s7991_s5 + $0x774] ss:$8 sps:$4 sm:$0xff]   ;;  %v5428_v1 = vld [vmem:[%s7991_s5 + $0x784] ss:$8 sps:$4 sm:$0xff]  }
 0x590   :  { %3439 = vmatprep.subr.bf16.mxu1 %v5401_v46  ;;  %v4833_v16 = vld [vmem:[%s7993_s3 + $0x4] sm:$0x3]  ;;  %v5431_v14 = vld [vmem:[%s7991_s5 + $0x794] ss:$8 sps:$4 sm:$0xff]  }
 0x591   :  { %2978 = vmatprep.mubr.bf16.mxu0 %v2639_v33  ;;  %v4800_v33 = vld [vmem:[%s7995_s6 + $0xa] sm:$0x3]  ;;  %v7178_v4 = vrot.slane %v4833_v16, %v5771_v21  ;;  %v4834_v24 = vld [vmem:[%s7994_s4 + $0x4] sm:$0x3] }
 0x592   :  { %3825 = vmatpush1.bf16.msra.mxu0 %v5408_v18  ;;  %v7162_v17 = vrot.slane %v4800_v33, %v5771_v21  ;;  %v7171_v11 = vrot.slane %v4800_v33, %v5776_v23  ;;  %v5429_v33 = vld [vmem:[%s7991_s5 + $0x790] ss:$8 sps:$4 sm:$0xff]  }
 0x593   :  { %3440 = vmatpush1.bf16.msra.mxu1 %v5399_v51  ;;  %3826 = vmatprep.subr.bf16.mxu0 %v5413_v5  ;;  %v5426_v51 = vld [vmem:[%s7991_s5 + $0x780] ss:$8 sps:$4 sm:$0xff]   ;;  %v7188_v5 = vrot.slane %v4833_v16, %v5776_v23 }
 0x594   :  { %2979 = vmatmul.mubr.bf16.gmra.mrb[172].mxu0 %v2638_v30  ;;  %v5423_v30 = vld [vmem:[%s7991_s5 + $0x770] ss:$8 sps:$4 sm:$0xff]  }
 0x596   :  { %3827 = vmatpush1.bf16.msra.mxu0 %v5411_v12 }
 0x597   :  { %3828 = vmatprep.subr.bf16.mxu0 %v5416_v53 }
 0x59a   :  { %3829 = vmatpush1.bf16.msra.mxu0 %v5414_v62 }
 0x59b   :  { %3830 = vmatprep.subr.bf16.mxu0 %v5419_v38 }
 0x59e   :  { %3831 = vmatpush1.bf16.msra.mxu0 %v5417_v6  ;;  %v8033_v6 = vld [vmem:[#allocation5_spill] sm:$0xff] }
 0x59f   :  { %3832 = vmatprep.subr.bf16.mxu0 %v5422_v9 }
 0x5a2   :  { %3833 = vmatpush1.bf16.msra.mxu0 %v5420_v54 }
 0x5a3   :  { %3834 = vmatprep.subr.bf16.mxu0 %v5425_v8  ;;  %v7199_v8 = vrot.slane %v4834_v24, %v5776_v23 }
 0x5a6   :  { %3835 = vmatpush1.bf16.msra.mxu0 %v5423_v30  ;;  %v7207_v30 = vrot.slane %v4834_v24, %v5771_v21 }
 0x5a7   :  { %3836 = vmatprep.subr.bf16.mxu0 %v5428_v1  ;;  %v8035_v1 = vld [vmem:[#allocation6_spill] sm:$0xff] }
 0x5aa   :  { %3837 = vmatpush1.bf16.msra.mxu0 %v5426_v51 }
 0x5ab   :  { %3838 = vmatprep.subr.bf16.mxu0 %v5431_v14  ;;  %v5432_v14 = vld [vmem:[%s7991_s5 + $0x7a0] ss:$8 sps:$4 sm:$0xff]  }
 0x5ae   :  { %3839 = vmatpush1.bf16.msra.mxu0 %v5429_v33 }
 0x617   :  { %v2880_v46 = vpop.f32.mrb[132].mxu0 }
 0x618   :  { %v2881_v25 = vadd.f32 %v2880_v46, %v7162_v17  ;;  %v2882_v10 = vpop.f32.mrb[133].mxu0  ;;  %v5434_v46 = vld [vmem:[%s7991_s5 + $0x7a4] ss:$8 sps:$4 sm:$0xff]  }
 0x619   :  { %v2883_v18 = vadd.f32 %v2882_v10, %v7171_v11  ;;  %v2884_v12 = vpop.f32.mrb[134].mxu0  ;;  %3840 = vmatprep.subr.bf16.mxu0 %v5434_v46 }
 0x61a   :  { %v7191_v53 = vadd.f32 %v2881_v25, %v6480_v15  ;;  %v2885_v62 = vadd.f32 %v2884_v12, %v7162_v17  ;;  %v2886_v38 = vpop.f32.mrb[135].mxu0  ;;  %v8037_v25 = vld [vmem:[#allocation7_spill] sm:$0xff]  ;;  %3841 = vmatpush1.bf16.msra.mxu0 %v5432_v14 }
 0x61b   :  { %v7195_v9 = vadd.f32 %v2883_v18, %v8033_v6  ;;  %v2887_v54 = vadd.f32 %v2886_v38, %v7171_v11 }
 0x61c   :  { %8032 = vst [vmem:[#allocation3_spill] sm:$0xff] %v7191_v53  ;;  %v3042_v15 = vmul.f32 %v7178_v4, %v7191_v53  ;;  %v7210_v16 = vadd.f32 %v2885_v62, %v8035_v1 }
 0x61d   :  { %8034 = vst [vmem:[#allocation4_spill] sm:$0xff] %v7195_v9  ;;  %v3043_v51 = vmul.f32 %v7188_v5, %v7195_v9  ;;  %v7218_v10 = vadd.f32 %v2887_v54, %v8037_v25  ;;  %v5437_v25 = vld [vmem:[%s7991_s5 + $0x7b4] ss:$8 sps:$4 sm:$0xff]  }
 0x61e   :  { %8036 = vst [vmem:[#allocation5_spill] sm:$0xff] %v7210_v16  ;;  %v3044_v18 = vmul.f32 %v7178_v4, %v7210_v16  ;;  %v3097_v38 = vadd.f32 %v7207_v30, %v3042_v15  ;;  %3842 = vmatprep.subr.bf16.mxu0 %v5437_v25 }
 0x61f   :  { %8038 = vst [vmem:[#allocation6_spill] sm:$0xff] %v7218_v10  ;;  %v3045_v24 = vmul.f32 %v7188_v5, %v7218_v10  ;;  %v2890_v12 = vpop.f32.mrb[136].mxu0  ;;  %v3098_v62 = vadd.f32 %v7199_v8, %v3043_v51 }
 0x620   :  { %v3099_v6 = vadd.f32 %v7207_v30, %v3044_v18  ;;  %v2891_v54 = vadd.f32 %v2890_v12, %v7162_v17  ;;  %v2892_v1 = vpop.f32.mrb[137].mxu0 }
 0x621   :  { %v2893_v10 = vadd.f32 %v2892_v1, %v7171_v11  ;;  %v2894_v51 = vpop.f32.mrb[138].mxu0  ;;  %v3100_v33 = vadd.f32 %v7199_v8, %v3045_v24  ;;  %v3140_v53 = vmax.f32 %v3098_v62, 0.0  ;;  %v5435_v1 = vld [vmem:[%s7991_s5 + $0x7b0] ss:$8 sps:$4 sm:$0xff]   ;;  %v3139_v24 = vmax.f32 %v3097_v38, 0.0 }
 0x622   :  { %v3141_v16 = vmax.f32 %v3099_v6, 0.0  ;;  %v7237_v9 = vadd.f32 %v2891_v54, %v6526_v39  ;;  %v2895_v15 = vadd.f32 %v2894_v51, %v7162_v17  ;;  %v2896_v18 = vpop.f32.mrb[139].mxu0  ;;  %3843 = vmatpush1.bf16.msra.mxu0 %v5435_v1 }
 0x623   :  { %v7241_v12 = vadd.f32 %v2893_v10, %v6530_v22  ;;  %v2897_v46 = vadd.f32 %v2896_v18, %v7171_v11  ;;  %v3142_v23 = vmax.f32 %v3100_v33, 0.0  ;;  %v5440_v22 = vld [vmem:[%s7991_s5 + $0x7c4] ss:$8 sps:$4 sm:$0xff]   ;;  %v5438_v33 = vld [vmem:[%s7991_s5 + $0x7c0] ss:$8 sps:$4 sm:$0xff]  }
 0x624   :  { %v3046_v39 = vmul.f32 %v7178_v4, %v7237_v9  ;;  %v7250_v6 = vadd.f32 %v2895_v15, %v6539_v55  ;;  %v3181_v54 = vpack.c.bf16 %v3141_v16, %v3139_v24  ;;  %3844 = vmatprep.subr.bf16.mxu0 %v5440_v22  ;;  %v5443_v16 = vld [vmem:[%s7991_s5 + $0x7d4] ss:$8 sps:$4 sm:$0xff]  }
 0x625   :  { %v3047_v10 = vmul.f32 %v7188_v5, %v7241_v12  ;;  %v7258_v62 = vadd.f32 %v2897_v46, %v6547_v52  ;;  %v3182_v14 = vpack.c.bf16 %v3142_v23, %v3140_v53 }
 0x626   :  { %v3048_v38 = vmul.f32 %v7178_v4, %v7250_v6  ;;  %v3101_v23 = vadd.f32 %v7207_v30, %v3046_v39  ;;  %3845 = vmatpush1.bf16.msra.mxu0 %v5438_v33 }
 0x627   :  { %v3049_v55 = vmul.f32 %v7188_v5, %v7258_v62  ;;  %v2900_v51 = vpop.f32.mrb[140].mxu0  ;;  %3441 = vmatprep.mubr.bf16.mxu1 %v3182_v14  ;;  %v3102_v25 = vadd.f32 %v7199_v8, %v3047_v10  ;;  %3846 = vmatprep.subr.bf16.mxu0 %v5443_v16 }
 0x628   :  { %v2901_v52 = vadd.f32 %v2900_v51, %v7162_v17  ;;  %v2902_v15 = vpop.f32.mrb[141].mxu0  ;;  %3442 = vmatmul.mubr.bf16.vlgmr.msra.gmra.mrb[132].mxu1 %v3181_v54  ;;  %v3103_v53 = vadd.f32 %v7207_v30, %v3048_v38 }
 0x629   :  { %v2903_v18 = vadd.f32 %v2902_v15, %v7171_v11  ;;  %v2904_v46 = vpop.f32.mrb[142].mxu0  ;;  %v3104_v1 = vadd.f32 %v7199_v8, %v3049_v55  ;;  %v3144_v38 = vmax.f32 %v3102_v25, 0.0  ;;  %v5441_v15 = vld [vmem:[%s7991_s5 + $0x7d0] ss:$8 sps:$4 sm:$0xff]  }
 0x62a   :  { %v7277_v24 = vadd.f32 %v2901_v52, %v6566_v41  ;;  %v2905_v10 = vadd.f32 %v2904_v46, %v7162_v17  ;;  %v2906_v14 = vpop.f32.mrb[143].mxu0  ;;  %v3145_v54 = vmax.f32 %v3103_v53, 0.0  ;;  %v3143_v52 = vmax.f32 %v3101_v23, 0.0  ;;  %3847 = vmatpush1.bf16.msra.mxu0 %v5441_v15 }
 0x62b   :  { %v7281_v39 = vadd.f32 %v2903_v18, %v6570_v58  ;;  %v2907_v22 = vadd.f32 %v2906_v14, %v7171_v11  ;;  %v3146_v51 = vmax.f32 %v3104_v1, 0.0  ;;  %v5446_v58 = vld [vmem:[%s7991_s5 + $0x7e4] ss:$8 sps:$4 sm:$0xff]   ;;  %v5444_v1 = vld [vmem:[%s7991_s5 + $0x7e0] ss:$8 sps:$4 sm:$0xff]  }
 0x62c   :  { %v3050_v41 = vmul.f32 %v7178_v4, %v7277_v24  ;;  %v7290_v55 = vadd.f32 %v2905_v10, %v6579_v3  ;;  %v3183_v46 = vpack.c.bf16 %v3145_v54, %v3143_v52  ;;  %3848 = vmatprep.subr.bf16.mxu0 %v5446_v58 }
 0x62d   :  { %v3051_v25 = vmul.f32 %v7188_v5, %v7281_v39  ;;  %v7298_v33 = vadd.f32 %v2907_v22, %v6587_v56  ;;  %v3184_v53 = vpack.c.bf16 %v3146_v51, %v3144_v38 }
 0x62e   :  { %v3052_v18 = vmul.f32 %v7178_v4, %v7290_v55  ;;  %v3105_v14 = vadd.f32 %v7207_v30, %v3050_v41  ;;  %3849 = vmatpush1.bf16.msra.mxu0 %v5444_v1 }
 0x62f   :  { %v3053_v3 = vmul.f32 %v7188_v5, %v7298_v33  ;;  %v2910_v23 = vpop.f32.mrb[144].mxu0  ;;  %3451 = vmatprep.mubr.bf16.mxu1 %v3184_v53  ;;  %v3106_v16 = vadd.f32 %v7199_v8, %v3051_v25 }
 0x630   :  { %v2911_v56 = vadd.f32 %v2910_v23, %v7162_v17  ;;  %v2912_v10 = vpop.f32.mrb[145].mxu0  ;;  %3452 = vmatmul.mubr.bf16.gmra.mrb[136].mxu1 %v3183_v46  ;;  %v3107_v54 = vadd.f32 %v7207_v30, %v3052_v18 }
 0x631   :  { %v2913_v22 = vadd.f32 %v2912_v10, %v7171_v11  ;;  %v2914_v38 = vpop.f32.mrb[146].mxu0  ;;  %v3108_v51 = vadd.f32 %v7199_v8, %v3053_v3  ;;  %v3148_v46 = vmax.f32 %v3106_v16, 0.0 }
 0x632   :  { %v7314_v15 = vadd.f32 %v2911_v56, %v6603_v35  ;;  %v2915_v52 = vadd.f32 %v2914_v38, %v7162_v17  ;;  %v2916_v25 = vpop.f32.mrb[147].mxu0  ;;  %v3149_v53 = vmax.f32 %v3107_v54, 0.0  ;;  %v3147_v35 = vmax.f32 %v3105_v14, 0.0 }
 0x633   :  { %v7318_v23 = vadd.f32 %v2913_v22, %v6607_v2  ;;  %v2917_v41 = vadd.f32 %v2916_v25, %v7171_v11  ;;  %v3150_v18 = vmax.f32 %v3108_v51, 0.0 }
 0x634   :  { %v3054_v58 = vmul.f32 %v7178_v4, %v7314_v15  ;;  %v7324_v3 = vadd.f32 %v2915_v52, %v6613_v36  ;;  %v3185_v16 = vpack.c.bf16 %v3149_v53, %v3147_v35 }
 0x635   :  { %v3055_v56 = vmul.f32 %v7188_v5, %v7318_v23  ;;  %v7329_v10 = vadd.f32 %v2917_v41, %v6618_v43  ;;  %v3186_v2 = vpack.c.bf16 %v3150_v18, %v3148_v46 }
 0x636   :  { %v3056_v54 = vmul.f32 %v7178_v4, %v7324_v3  ;;  %v3109_v51 = vadd.f32 %v7207_v30, %v3054_v58 }
 0x637   :  { %v3057_v1 = vmul.f32 %v7188_v5, %v7329_v10  ;;  %v2920_v22 = vpop.f32.mrb[148].mxu0  ;;  %3461 = vmatprep.mubr.bf16.mxu1 %v3186_v2  ;;  %v3110_v36 = vadd.f32 %v7199_v8, %v3055_v56 }
 0x638   :  { %v2921_v14 = vadd.f32 %v2920_v22, %v7162_v17  ;;  %v2922_v38 = vpop.f32.mrb[149].mxu0  ;;  %3462 = vmatmul.mubr.bf16.gmra.mrb[140].mxu1 %v3185_v16  ;;  %v3111_v43 = vadd.f32 %v7207_v30, %v3056_v54 }
 0x639   :  { %v2923_v52 = vadd.f32 %v2922_v38, %v7171_v11  ;;  %v2924_v25 = vpop.f32.mrb[150].mxu0  ;;  %v3112_v53 = vadd.f32 %v7199_v8, %v3057_v1  ;;  %v3152_v58 = vmax.f32 %v3110_v36, 0.0  ;;  %v3151_v1 = vmax.f32 %v3109_v51, 0.0 }
 0x63a   :  { %v7342_v41 = vadd.f32 %v2921_v14, %v6631_v20  ;;  %v2925_v46 = vadd.f32 %v2924_v25, %v7162_v17  ;;  %v2926_v18 = vpop.f32.mrb[151].mxu0  ;;  %v3153_v35 = vmax.f32 %v3111_v43, 0.0 }
 0x63b   :  { %v7346_v56 = vadd.f32 %v2923_v52, %v6635_v44  ;;  %v2927_v2 = vadd.f32 %v2926_v18, %v7171_v11  ;;  %v3154_v16 = vmax.f32 %v3112_v53, 0.0 }
 0x63c   :  { %v3058_v54 = vmul.f32 %v7178_v4, %v7342_v41  ;;  %v7352_v22 = vadd.f32 %v2925_v46, %v6641_v60  ;;  %v3187_v43 = vpack.c.bf16 %v3153_v35, %v3151_v1 }
 0x63d   :  { %v3059_v20 = vmul.f32 %v7188_v5, %v7346_v56  ;;  %v7357_v14 = vadd.f32 %v2927_v2, %v6646_v47  ;;  %v3188_v38 = vpack.c.bf16 %v3154_v16, %v3152_v58 }
 0x63e   :  { %v3060_v44 = vmul.f32 %v7178_v4, %v7352_v22  ;;  %v3113_v53 = vadd.f32 %v7207_v30, %v3058_v54 }
 0x63f   :  { %v3061_v36 = vmul.f32 %v7188_v5, %v7357_v14  ;;  %v2930_v52 = vpop.f32.mrb[152].mxu0  ;;  %3471 = vmatprep.mubr.bf16.mxu1 %v3188_v38  ;;  %v3114_v60 = vadd.f32 %v7199_v8, %v3059_v20 }
 0x640   :  { %v2931_v51 = vadd.f32 %v2930_v52, %v7162_v17  ;;  %v2932_v25 = vpop.f32.mrb[153].mxu0  ;;  %3472 = vmatmul.mubr.bf16.gmra.mrb[144].mxu1 %v3187_v43  ;;  %v3115_v47 = vadd.f32 %v7207_v30, %v3060_v44 }
 0x641   :  { %v2933_v46 = vadd.f32 %v2932_v25, %v7171_v11  ;;  %v2934_v18 = vpop.f32.mrb[154].mxu0  ;;  %v3116_v35 = vadd.f32 %v7199_v8, %v3061_v36  ;;  %v3156_v54 = vmax.f32 %v3114_v60, 0.0  ;;  %v3155_v36 = vmax.f32 %v3113_v53, 0.0 }
 0x642   :  { %v7370_v2 = vadd.f32 %v2931_v51, %v6659_v63  ;;  %v2935_v58 = vadd.f32 %v2934_v18, %v7162_v17  ;;  %v2936_v16 = vpop.f32.mrb[155].mxu0  ;;  %v3157_v1 = vmax.f32 %v3115_v47, 0.0 }
 0x643   :  { %v7374_v20 = vadd.f32 %v2933_v46, %v6663_v19  ;;  %v2937_v38 = vadd.f32 %v2936_v16, %v7171_v11  ;;  %v3158_v43 = vmax.f32 %v3116_v35, 0.0 }
 0x644   :  { %v3062_v44 = vmul.f32 %v7178_v4, %v7370_v2  ;;  %v7380_v52 = vadd.f32 %v2935_v58, %v6669_v7  ;;  %v3189_v47 = vpack.c.bf16 %v3157_v1, %v3155_v36 }
 0x645   :  { %v3063_v63 = vmul.f32 %v7188_v5, %v7374_v20  ;;  %v7385_v51 = vadd.f32 %v2937_v38, %v6674_v31  ;;  %v3190_v25 = vpack.c.bf16 %v3158_v43, %v3156_v54 }
 0x646   :  { %v3064_v19 = vmul.f32 %v7178_v4, %v7380_v52  ;;  %v3117_v35 = vadd.f32 %v7207_v30, %v3062_v44 }
 0x647   :  { %v3065_v60 = vmul.f32 %v7188_v5, %v7385_v51  ;;  %v2940_v46 = vpop.f32.mrb[156].mxu0  ;;  %3481 = vmatprep.mubr.bf16.mxu1 %v3190_v25  ;;  %v3118_v7 = vadd.f32 %v7199_v8, %v3063_v63 }
 0x648   :  { %v2941_v53 = vadd.f32 %v2940_v46, %v7162_v17  ;;  %v2942_v18 = vpop.f32.mrb[157].mxu0  ;;  %3482 = vmatmul.mubr.bf16.gmra.mrb[148].mxu1 %v3189_v47  ;;  %v3119_v31 = vadd.f32 %v7207_v30, %v3064_v19 }
 0x649   :  { %v2943_v58 = vadd.f32 %v2942_v18, %v7171_v11  ;;  %v2944_v16 = vpop.f32.mrb[158].mxu0  ;;  %v3120_v1 = vadd.f32 %v7199_v8, %v3065_v60  ;;  %v3160_v44 = vmax.f32 %v3118_v7, 0.0  ;;  %v3159_v60 = vmax.f32 %v3117_v35, 0.0 }
 0x64a   :  { %v7398_v38 = vadd.f32 %v2941_v53, %v6687_v48  ;;  %v2945_v54 = vadd.f32 %v2944_v16, %v7162_v17  ;;  %v2946_v43 = vpop.f32.mrb[159].mxu0  ;;  %v3161_v36 = vmax.f32 %v3119_v31, 0.0 }
 0x64b   :  { %v7402_v63 = vadd.f32 %v2943_v58, %v6691_v59  ;;  %v2947_v25 = vadd.f32 %v2946_v43, %v7171_v11  ;;  %v3162_v47 = vmax.f32 %v3120_v1, 0.0 }
 0x64c   :  { %v3066_v19 = vmul.f32 %v7178_v4, %v7398_v38  ;;  %v7408_v46 = vadd.f32 %v2945_v54, %v6697_v37  ;;  %v3191_v31 = vpack.c.bf16 %v3161_v36, %v3159_v60 }
 0x64d   :  { %v3067_v48 = vmul.f32 %v7188_v5, %v7402_v63  ;;  %v7413_v53 = vadd.f32 %v2947_v25, %v6702_v34  ;;  %v3192_v18 = vpack.c.bf16 %v3162_v47, %v3160_v44 }
 0x64e   :  { %8039 = vst [vmem:[#allocation7_spill] sm:$0xff] %v7408_v46  ;;  %v3068_v59 = vmul.f32 %v7178_v4, %v7408_v46  ;;  %v3121_v1 = vadd.f32 %v7207_v30, %v3066_v19 }
 0x64f   :  { %8040 = vst [vmem:[#allocation8_spill] sm:$0xff] %v7413_v53  ;;  %v3069_v7 = vmul.f32 %v7188_v5, %v7413_v53  ;;  %v2950_v58 = vpop.f32.mrb[160].mxu0  ;;  %3491 = vmatprep.mubr.bf16.mxu1 %v3192_v18  ;;  %v3122_v37 = vadd.f32 %v7199_v8, %v3067_v48 }
 0x650   :  { %v2951_v35 = vadd.f32 %v2950_v58, %v7162_v17  ;;  %v2952_v16 = vpop.f32.mrb[161].mxu0  ;;  %3492 = vmatmul.mubr.bf16.gmra.mrb[152].mxu1 %v3191_v31  ;;  %v3123_v34 = vadd.f32 %v7207_v30, %v3068_v59 }
 0x651   :  { %v2953_v54 = vadd.f32 %v2952_v16, %v7171_v11  ;;  %v2954_v43 = vpop.f32.mrb[162].mxu0  ;;  %v3124_v36 = vadd.f32 %v7199_v8, %v3069_v7  ;;  %v3164_v19 = vmax.f32 %v3122_v37, 0.0  ;;  %v3163_v7 = vmax.f32 %v3121_v1, 0.0 }
 0x652   :  { %v7426_v25 = vadd.f32 %v2951_v35, %v6715_v28  ;;  %v2955_v44 = vadd.f32 %v2954_v43, %v7162_v17  ;;  %v2956_v47 = vpop.f32.mrb[163].mxu0  ;;  %v3165_v60 = vmax.f32 %v3123_v34, 0.0 }
 0x653   :  { %v7430_v48 = vadd.f32 %v2953_v54, %v6719_v32  ;;  %v2957_v18 = vadd.f32 %v2956_v47, %v7171_v11  ;;  %v3166_v31 = vmax.f32 %v3124_v36, 0.0 }
 0x654   :  { %8041 = vst [vmem:[#allocation9_spill] sm:$0xff] %v7426_v25  ;;  %v3070_v59 = vmul.f32 %v7178_v4, %v7426_v25  ;;  %v7436_v58 = vadd.f32 %v2955_v44, %v6725_v26  ;;  %v3193_v34 = vpack.c.bf16 %v3165_v60, %v3163_v7 }
 0x655   :  { %8042 = vst [vmem:[#allocation10_spill] sm:$0xff] %v7430_v48  ;;  %v3071_v28 = vmul.f32 %v7188_v5, %v7430_v48  ;;  %v7441_v35 = vadd.f32 %v2957_v18, %v6730_v57  ;;  %v3194_v16 = vpack.c.bf16 %v3166_v31, %v3164_v19 }
 0x656   :  { %8043 = vst [vmem:[#allocation11_spill] sm:$0xff] %v7436_v58  ;;  %v3072_v32 = vmul.f32 %v7178_v4, %v7436_v58  ;;  %v3125_v36 = vadd.f32 %v7207_v30, %v3070_v59  ;;  %v7678_v58 = vld [vmem:[%s7991_s5 + $0x8b0] ss:$8 sps:$4 sm:$0xff]  }
 0x657   :  { %8044 = vst [vmem:[#allocation12_spill] sm:$0xff] %v7441_v35  ;;  %v3073_v37 = vmul.f32 %v7188_v5, %v7441_v35  ;;  %v2960_v54 = vpop.f32.mrb[164].mxu0  ;;  %3501 = vmatprep.mubr.bf16.mxu1 %v3194_v16  ;;  %v3126_v26 = vadd.f32 %v7199_v8, %v3071_v28 }
 0x658   :  { %v2961_v1 = vadd.f32 %v2960_v54, %v7162_v17  ;;  %v2962_v43 = vpop.f32.mrb[165].mxu0  ;;  %3502 = vmatmul.mubr.bf16.gmra.mrb[156].mxu1 %v3193_v34  ;;  %v3127_v57 = vadd.f32 %v7207_v30, %v3072_v32 }
 0x659   :  { %v2963_v44 = vadd.f32 %v2962_v43, %v7171_v11  ;;  %v2964_v47 = vpop.f32.mrb[166].mxu0  ;;  %v3128_v60 = vadd.f32 %v7199_v8, %v3073_v37  ;;  %v3168_v59 = vmax.f32 %v3126_v26, 0.0  ;;  %v3167_v37 = vmax.f32 %v3125_v36, 0.0 }
 0x65a   :  { %v7454_v18 = vadd.f32 %v2961_v1, %v6743_v49  ;;  %v2965_v19 = vadd.f32 %v2964_v47, %v7162_v17  ;;  %v2966_v31 = vpop.f32.mrb[167].mxu0  ;;  %v3169_v7 = vmax.f32 %v3127_v57, 0.0 }
 0x65b   :  { %v7458_v28 = vadd.f32 %v2963_v44, %v6747_v13  ;;  %v2967_v16 = vadd.f32 %v2966_v31, %v7171_v11  ;;  %v3170_v34 = vmax.f32 %v3128_v60, 0.0 }
 0x65c   :  { %8045 = vst [vmem:[#allocation13_spill] sm:$0xff] %v7454_v18  ;;  %v3074_v32 = vmul.f32 %v7178_v4, %v7454_v18  ;;  %v7464_v54 = vadd.f32 %v2965_v19, %v6753_v42  ;;  %v3195_v57 = vpack.c.bf16 %v3169_v7, %v3167_v37 }
 0x65d   :  { %8046 = vst [vmem:[#allocation14_spill] sm:$0xff] %v7458_v28  ;;  %v3075_v49 = vmul.f32 %v7188_v5, %v7458_v28  ;;  %v7469_v1 = vadd.f32 %v2967_v16, %v6758_v27  ;;  %v3196_v43 = vpack.c.bf16 %v3170_v34, %v3168_v59 }
 0x65e   :  { %8047 = vst [vmem:[#allocation15_spill] sm:$0xff] %v7464_v54  ;;  %v3076_v13 = vmul.f32 %v7178_v4, %v7464_v54  ;;  %v3129_v60 = vadd.f32 %v7207_v30, %v3074_v32 }
 0x65f   :  { %8048 = vst [vmem:[#allocation16_spill] sm:$0xff] %v7469_v1  ;;  %v3077_v26 = vmul.f32 %v7188_v5, %v7469_v1  ;;  %v2970_v44 = vpop.f32.mrb[168].mxu0  ;;  %3511 = vmatprep.mubr.bf16.mxu1 %v3196_v43  ;;  %v3130_v42 = vadd.f32 %v7199_v8, %v3075_v49 }
 0x660   :  { %v2971_v36 = vadd.f32 %v2970_v44, %v7162_v17  ;;  %v2972_v47 = vpop.f32.mrb[169].mxu0  ;;  %3512 = vmatmul.mubr.bf16.gmra.mrb[160].mxu1 %v3195_v57  ;;  %v3131_v27 = vadd.f32 %v7207_v30, %v3076_v13 }
 0x661   :  { %v2973_v19 = vadd.f32 %v2972_v47, %v7171_v11  ;;  %v2974_v31 = vpop.f32.mrb[170].mxu0  ;;  %v3132_v7 = vadd.f32 %v7199_v8, %v3077_v26  ;;  %v3172_v32 = vmax.f32 %v3130_v42, 0.0  ;;  %v3171_v26 = vmax.f32 %v3129_v60, 0.0 }
 0x662   :  { %v7482_v16 = vadd.f32 %v2971_v36, %v6771_v50  ;;  %v2975_v59 = vadd.f32 %v2974_v31, %v7162_v17  ;;  %v2976_v34 = vpop.f32.mrb[171].mxu0  ;;  %v3173_v37 = vmax.f32 %v3131_v27, 0.0 }
 0x663   :  { %v7486_v49 = vadd.f32 %v2973_v19, %v6775_v0  ;;  %v2977_v43 = vadd.f32 %v2976_v34, %v7171_v11  ;;  %v3174_v57 = vmax.f32 %v3132_v7, 0.0 }
 0x664   :  { %8049 = vst [vmem:[#allocation17_spill] sm:$0xff] %v7482_v16  ;;  %v3078_v13 = vmul.f32 %v7178_v4, %v7482_v16  ;;  %v7492_v44 = vadd.f32 %v2975_v59, %v6781_v29  ;;  %v3197_v27 = vpack.c.bf16 %v3173_v37, %v3171_v26 }
 0x665   :  { %8050 = vst [vmem:[#allocation18_spill] sm:$0xff] %v7486_v49  ;;  %v3079_v50 = vmul.f32 %v7188_v5, %v7486_v49  ;;  %v7497_v36 = vadd.f32 %v2977_v43, %v6786_v45  ;;  %v3198_v47 = vpack.c.bf16 %v3174_v57, %v3172_v32 }
 0x666   :  { %8051 = vst [vmem:[#allocation19_spill] sm:$0xff] %v7492_v44  ;;  %v3080_v0 = vmul.f32 %v7178_v4, %v7492_v44  ;;  %v3133_v7 = vadd.f32 %v7207_v30, %v3078_v13 }
 0x667   :  { %8052 = vst [vmem:[#allocation20_spill] sm:$0xff] %v7497_v36  ;;  %v3081_v42 = vmul.f32 %v7188_v5, %v7497_v36  ;;  %v2980_v19 = vpop.f32.mrb[172].mxu0  ;;  %3521 = vmatprep.mubr.bf16.mxu1 %v3198_v47  ;;  %v3134_v29 = vadd.f32 %v7199_v8, %v3079_v50 }
 0x668   :  { %v2981_v60 = vadd.f32 %v2980_v19, %v7162_v17  ;;  %v2982_v31 = vpop.f32.mrb[173].mxu0  ;;  %3522 = vmatmul.mubr.bf16.gmra.mrb[164].mxu1 %v3197_v27  ;;  %v3135_v45 = vadd.f32 %v7207_v30, %v3080_v0  ;;  %v3175_v47 = vmax.f32 %v3133_v7, 0.0  ;;  %v7545_v7 = vld [vmem:[%s7991_s5 + $0x810] ss:$8 sps:$4 sm:$0xff]  }
 0x669   :  { %v2983_v59 = vadd.f32 %v2982_v31, %v7171_v11  ;;  %v2984_v34 = vpop.f32.mrb[174].mxu0  ;;  %v3136_v37 = vadd.f32 %v7199_v8, %v3081_v42  ;;  %v3176_v17 = vmax.f32 %v3134_v29, 0.0  ;;  %v7538_v31 = vld [vmem:[%s7991_s5 + $0x814] ss:$8 sps:$4 sm:$0xff]  }
 0x66a   :  { %v7510_v43 = vadd.f32 %v2981_v60, %v6799_v40  ;;  %v2985_v32 = vpop.f32.mrb[175].mxu0  ;;  %v3177_v57 = vmax.f32 %v3135_v45, 0.0  ;;  %v7550_v45 = vld [vmem:[%s7991_s5 + $0x824] ss:$8 sps:$4 sm:$0xff]   ;;  %v7562_v34 = vld [vmem:[%s7991_s5 + $0x834] ss:$8 sps:$4 sm:$0xff]  }
 0x66b   :  { %v7513_v26 = vadd.f32 %v2983_v59, %v6802_v61  ;;  %v3178_v50 = vmax.f32 %v3136_v37, 0.0  ;;  %v7557_v59 = vld [vmem:[%s7991_s5 + $0x820] ss:$8 sps:$4 sm:$0xff]   ;;  %v7569_v37 = vld [vmem:[%s7991_s5 + $0x830] ss:$8 sps:$4 sm:$0xff]  }
 0x66c   :  { %8053 = vst [vmem:[#allocation21_spill] sm:$0xff] %v7510_v43  ;;  %v3082_v13 = vmul.f32 %v7178_v4, %v7510_v43  ;;  %v3199_v27 = vpack.c.bf16 %v3177_v57, %v3175_v47  ;;  %v5449_v4 = vld [vmem:[%s7991_s5 + $0x7f4] ss:$8 sps:$4 sm:$0xff]   ;;  %v7574_v32 = vld [vmem:[%s7991_s5 + $0x844] ss:$8 sps:$4 sm:$0xff]  }
 0x66d   :  { %8054 = vst [vmem:[#allocation22_spill] sm:$0xff] %v7513_v26  ;;  %v3083_v11 = vmul.f32 %v7188_v5, %v7513_v26  ;;  %v3200_v0 = vpack.c.bf16 %v3178_v50, %v3176_v17  ;;  %v5447_v5 = vld [vmem:[%s7991_s5 + $0x7f0] ss:$8 sps:$4 sm:$0xff]   ;;  %3850 = vmatprep.subr.bf16.mxu0 %v5449_v4  ;;  %v7581_v57 = vld [vmem:[%s7991_s5 + $0x840] ss:$8 sps:$4 sm:$0xff]  }
 0x66e   :  { %v3137_v42 = vadd.f32 %v7207_v30, %v3082_v13  ;;  %3851 = vmatpush1.bf16.msra.mxu0 %v5447_v5  ;;  %v7533_v30 = vld [vmem:[%s7991_s5 + $0x800] ss:$8 sps:$4 sm:$0xff]   ;;  %v7586_v17 = vld [vmem:[%s7991_s5 + $0x854] ss:$8 sps:$4 sm:$0xff]   ;;  %v7593_v50 = vld [vmem:[%s7991_s5 + $0x850] ss:$8 sps:$4 sm:$0xff]  }
 0x66f   :  { %3531 = vmatprep.mubr.bf16.mxu1 %v3200_v0  ;;  %v3138_v40 = vadd.f32 %v7199_v8, %v3083_v11  ;;  %v5452_v8 = vld [vmem:[%s7991_s5 + $0x804] ss:$8 sps:$4 sm:$0xff]   ;;  %v7605_v47 = vld [vmem:[%s7991_s5 + $0x860] ss:$8 sps:$4 sm:$0xff]   ;;  %v7610_v11 = vld [vmem:[%s7991_s5 + $0x874] ss:$8 sps:$4 sm:$0xff]  }
 0x670   :  { %3532 = vmatmul.mubr.bf16.gmra.mrb[168].mxu1 %v3199_v27  ;;  %v3179_v61 = vmax.f32 %v3137_v42, 0.0  ;;  %5030 = vmatprep.subr.bf16.mxu1 %v5452_v8  ;;  %v7598_v13 = vld [vmem:[%s7991_s5 + $0x864] ss:$8 sps:$4 sm:$0xff]   ;;  %v7617_v0 = vld [vmem:[%s7991_s5 + $0x870] ss:$8 sps:$4 sm:$0xff]  }
 0x671   :  { %v3180_v19 = vmax.f32 %v3138_v40, 0.0  ;;  %4231 = vmatprep.subr.bf16.mxu0 %v5452_v8  ;;  %5046 = vmatpush1.bf16.msra.mxu1 %v7533_v30  ;;  %v7622_v27 = vld [vmem:[%s7991_s5 + $0x884] ss:$8 sps:$4 sm:$0xff]   ;;  %v7632_v40 = vld [vmem:[%s7991_s5 + $0x880] ss:$8 sps:$4 sm:$0xff]  }
 0x672   :  { %v3201_v29 = vpack.c.bf16 %v3179_v61, %v3179_v61  ;;  %5031 = vmatprep.subr.bf16.mxu1 %v7538_v31  ;;  %v4867_v42 = vld [vmem:[%s7995_s6 + $0xc] sm:$0x3]  ;;  %v7640_v61 = vld [vmem:[%s7991_s5 + $0x894] ss:$8 sps:$4 sm:$0xff]   ;;  %v7650_v5 = vld [vmem:[%s7991_s5 + $0x890] ss:$8 sps:$4 sm:$0xff]  }
 0x673   :  { %v3202_v60 = vpack.c.bf16 %v3180_v19, %v3180_v19  ;;  %v7635_v19 = vrot.slane %v4867_v42, %v5771_v21  ;;  %v7656_v43 = vld [vmem:[%s7991_s5 + $0x8a4] ss:$8 sps:$4 sm:$0xff]  }
 0x675   :  { %3541 = vmatprep.mubr.bf16.mxu1 %v3202_v60  ;;  %5047 = vmatpush1.bf16.msra.mxu1 %v7545_v7  ;;  %v8055_v60 = vld [vmem:[#allocation2_spill] sm:$0xff] }
 0x676   :  { %5032 = vmatprep.subr.bf16.mxu1 %v7550_v45 }
 0x678   :  { %3542 = vmatmul.mubr.bf16.gmra.mrb[172].mxu1 %v3201_v29  ;;  %v7643_v29 = vrot.slane %v4867_v42, %v8055_v60 }
 0x679   :  { %5048 = vmatpush1.bf16.msra.mxu1 %v7557_v59 }
 0x67a   :  { %5033 = vmatprep.subr.bf16.mxu1 %v7562_v34 }
 0x67d   :  { %5049 = vmatpush1.bf16.msra.mxu1 %v7569_v37 }
 0x67e   :  { %5034 = vmatprep.subr.bf16.mxu1 %v7574_v32 }
 0x681   :  { %5050 = vmatpush1.bf16.msra.mxu1 %v7581_v57 }
 0x682   :  { %5035 = vmatprep.subr.bf16.mxu1 %v7586_v17 }
 0x685   :  { %5051 = vmatpush1.bf16.msra.mxu1 %v7593_v50 }
 0x686   :  { %5036 = vmatprep.subr.bf16.mxu1 %v7598_v13 }
 0x689   :  { %5052 = vmatpush1.bf16.msra.mxu1 %v7605_v47 }
 0x68a   :  { %5037 = vmatprep.subr.bf16.mxu1 %v7610_v11 }
 0x68d   :  { %5053 = vmatpush1.bf16.msra.mxu1 %v7617_v0 }
 0x68e   :  { %5038 = vmatprep.subr.bf16.mxu1 %v7622_v27 }
 0x691   :  { %5054 = vmatpush1.bf16.msra.mxu1 %v7632_v40 }
 0x692   :  { %5039 = vmatprep.subr.bf16.mxu1 %v7640_v61 }
 0x695   :  { %5055 = vmatpush1.bf16.msra.mxu1 %v7650_v5 }
 0x696   :  { %5040 = vmatprep.subr.bf16.mxu1 %v7656_v43 }
 0x6fb   :  { %v3443_v4 = vpop.f32.mrb[132].mxu1 }
 0x6fc   :  { %v3444_v8 = vadd.f32 %v3443_v4, %v7635_v19  ;;  %v3445_v26 = vpop.f32.mrb[133].mxu1  ;;  %v7666_v4 = vld [vmem:[%s7991_s5 + $0x8a0] ss:$8 sps:$4 sm:$0xff]  }
 0x6fd   :  { %v3446_v42 = vadd.f32 %v3445_v26, %v7643_v29  ;;  %v3447_v36 = vpop.f32.mrb[134].mxu1  ;;  %v7671_v26 = vld [vmem:[%s7991_s5 + $0x8b4] ss:$8 sps:$4 sm:$0xff]   ;;  %5056 = vmatpush1.bf16.msra.mxu1 %v7666_v4 }
 0x6fe   :  { %v3448_v44 = vadd.f32 %v3447_v36, %v7635_v19  ;;  %v3449_v49 = vpop.f32.mrb[135].mxu1  ;;  %v3550_v1 = vmax.f32 %v3444_v8, 0.0  ;;  %5041 = vmatprep.subr.bf16.mxu1 %v7671_v26 }
 0x6ff   :  { %v3450_v16 = vadd.f32 %v3449_v49, %v7643_v29  ;;  %v3551_v28 = vmax.f32 %v3446_v42, 0.0  ;;  %v7684_v42 = vld [vmem:[%s7991_s5 + $0x8c4] ss:$8 sps:$4 sm:$0xff]  }
 0x700   :  { %v3552_v54 = vmax.f32 %v3448_v44, 0.0 }
 0x701   :  { %v3553_v18 = vmax.f32 %v3450_v16, 0.0  ;;  %5057 = vmatpush1.bf16.msra.mxu1 %v7678_v58 }
 0x702   :  { %v3592_v36 = vpack.c.bf16 %v3552_v54, %v3550_v1  ;;  %5042 = vmatprep.subr.bf16.mxu1 %v7684_v42  ;;  %v7695_v1 = vld [vmem:[%s7991_s5 + $0x8c0] ss:$8 sps:$4 sm:$0xff]  }
 0x703   :  { %v3593_v49 = vpack.c.bf16 %v3553_v18, %v3551_v28  ;;  %v3453_v35 = vpop.f32.mrb[136].mxu1 }
 0x704   :  { %v3454_v44 = vadd.f32 %v3453_v35, %v7635_v19  ;;  %v3455_v8 = vpop.f32.mrb[137].mxu1 }
 0x705   :  { %v3456_v16 = vadd.f32 %v3455_v8, %v7643_v29  ;;  %v3457_v54 = vpop.f32.mrb[138].mxu1  ;;  %3852 = vmatprep.mubr.bf16.mxu0 %v3593_v49  ;;  %v7701_v49 = vld [vmem:[%s7991_s5 + $0x8d4] ss:$8 sps:$4 sm:$0xff]   ;;  %5058 = vmatpush1.bf16.msra.mxu1 %v7695_v1 }
 0x706   :  { %v3458_v18 = vadd.f32 %v3457_v54, %v7635_v19  ;;  %v3459_v28 = vpop.f32.mrb[139].mxu1  ;;  %3853 = vmatmul.mubr.bf16.vlgmr.msra.gmra.mrb[176].mxu0 %v3592_v36  ;;  %v3554_v8 = vmax.f32 %v3454_v44, 0.0  ;;  %5043 = vmatprep.subr.bf16.mxu1 %v7701_v49 }
 0x707   :  { %v3460_v35 = vadd.f32 %v3459_v28, %v7643_v29  ;;  %4232 = vmatpush1.bf16.msra.mxu0 %v7533_v30  ;;  %v3555_v36 = vmax.f32 %v3456_v16, 0.0 }
 0x708   :  { %v3556_v48 = vmax.f32 %v3458_v18, 0.0  ;;  %4233 = vmatprep.subr.bf16.mxu0 %v7538_v31  ;;  %v7709_v31 = vld [vmem:[%s7991_s5 + $0x8d0] ss:$8 sps:$4 sm:$0xff]  }
 0x709   :  { %v3557_v54 = vmax.f32 %v3460_v35, 0.0  ;;  %5059 = vmatpush1.bf16.msra.mxu1 %v7709_v31 }
 0x70a   :  { %v3594_v28 = vpack.c.bf16 %v3556_v48, %v3554_v8 }
 0x70b   :  { %v3595_v30 = vpack.c.bf16 %v3557_v54, %v3555_v36  ;;  %v3463_v25 = vpop.f32.mrb[140].mxu1  ;;  %4234 = vmatpush1.bf16.msra.mxu0 %v7545_v7 }
 0x70c   :  { %v3464_v44 = vadd.f32 %v3463_v25, %v7635_v19  ;;  %v3465_v18 = vpop.f32.mrb[141].mxu1  ;;  %4235 = vmatprep.subr.bf16.mxu0 %v7550_v45 }
 0x70d   :  { %v3466_v16 = vadd.f32 %v3465_v18, %v7643_v29  ;;  %v3467_v35 = vpop.f32.mrb[142].mxu1  ;;  %3862 = vmatprep.mubr.bf16.mxu0 %v3595_v30 }
 0x70e   :  { %v3468_v48 = vadd.f32 %v3467_v35, %v7635_v19  ;;  %v3469_v8 = vpop.f32.mrb[143].mxu1  ;;  %3863 = vmatmul.mubr.bf16.gmra.mrb[180].mxu0 %v3594_v28  ;;  %v3558_v36 = vmax.f32 %v3464_v44, 0.0 }
 0x70f   :  { %v3470_v7 = vadd.f32 %v3469_v8, %v7643_v29  ;;  %4236 = vmatpush1.bf16.msra.mxu0 %v7557_v59  ;;  %v3559_v25 = vmax.f32 %v3466_v16, 0.0 }
 0x710   :  { %v3560_v54 = vmax.f32 %v3468_v48, 0.0  ;;  %4237 = vmatprep.subr.bf16.mxu0 %v7562_v34 }
 0x711   :  { %v3561_v45 = vmax.f32 %v3470_v7, 0.0 }
 0x712   :  { %v3596_v53 = vpack.c.bf16 %v3560_v54, %v3558_v36 }
 0x713   :  { %v3597_v18 = vpack.c.bf16 %v3561_v45, %v3559_v25  ;;  %v3473_v46 = vpop.f32.mrb[144].mxu1  ;;  %4238 = vmatpush1.bf16.msra.mxu0 %v7569_v37 }
 0x714   :  { %v3474_v30 = vadd.f32 %v3473_v46, %v7635_v19  ;;  %v3475_v35 = vpop.f32.mrb[145].mxu1  ;;  %4239 = vmatprep.subr.bf16.mxu0 %v7574_v32 }
 0x715   :  { %v3476_v28 = vadd.f32 %v3475_v35, %v7643_v29  ;;  %v3477_v8 = vpop.f32.mrb[146].mxu1  ;;  %3872 = vmatprep.mubr.bf16.mxu0 %v3597_v18 }
 0x716   :  { %v3478_v59 = vadd.f32 %v3477_v8, %v7635_v19  ;;  %v3479_v44 = vpop.f32.mrb[147].mxu1  ;;  %3873 = vmatmul.mubr.bf16.gmra.mrb[184].mxu0 %v3596_v53  ;;  %v3562_v16 = vmax.f32 %v3474_v30, 0.0 }
 0x717   :  { %v3480_v34 = vadd.f32 %v3479_v44, %v7643_v29  ;;  %4240 = vmatpush1.bf16.msra.mxu0 %v7581_v57  ;;  %v3563_v46 = vmax.f32 %v3476_v28, 0.0 }
 0x718   :  { %v3564_v48 = vmax.f32 %v3478_v59, 0.0  ;;  %4241 = vmatprep.subr.bf16.mxu0 %v7586_v17 }
 0x719   :  { %v3565_v37 = vmax.f32 %v3480_v34, 0.0 }
 0x71a   :  { %v3598_v7 = vpack.c.bf16 %v3564_v48, %v3562_v16 }
 0x71b   :  { %v3599_v32 = vpack.c.bf16 %v3565_v37, %v3563_v46  ;;  %v3483_v36 = vpop.f32.mrb[148].mxu1  ;;  %4242 = vmatpush1.bf16.msra.mxu0 %v7593_v50 }
 0x71c   :  { %v3484_v54 = vadd.f32 %v3483_v36, %v7635_v19  ;;  %v3485_v25 = vpop.f32.mrb[149].mxu1  ;;  %4243 = vmatprep.subr.bf16.mxu0 %v7598_v13 }
 0x71d   :  { %v3486_v53 = vadd.f32 %v3485_v25, %v7643_v29  ;;  %v3487_v45 = vpop.f32.mrb[150].mxu1  ;;  %3882 = vmatprep.mubr.bf16.mxu0 %v3599_v32 }
 0x71e   :  { %v3488_v57 = vadd.f32 %v3487_v45, %v7635_v19  ;;  %v3489_v18 = vpop.f32.mrb[151].mxu1  ;;  %3883 = vmatmul.mubr.bf16.gmra.mrb[188].mxu0 %v3598_v7  ;;  %v3566_v30 = vmax.f32 %v3484_v54, 0.0 }
 0x71f   :  { %v3490_v17 = vadd.f32 %v3489_v18, %v7643_v29  ;;  %4244 = vmatpush1.bf16.msra.mxu0 %v7605_v47  ;;  %v3567_v50 = vmax.f32 %v3486_v53, 0.0 }
 0x720   :  { %v3568_v35 = vmax.f32 %v3488_v57, 0.0  ;;  %4245 = vmatprep.subr.bf16.mxu0 %v7610_v11 }
 0x721   :  { %v3569_v28 = vmax.f32 %v3490_v17, 0.0 }
 0x722   :  { %v3600_v8 = vpack.c.bf16 %v3568_v35, %v3566_v30 }
 0x723   :  { %v3601_v13 = vpack.c.bf16 %v3569_v28, %v3567_v50  ;;  %v3493_v59 = vpop.f32.mrb[152].mxu1  ;;  %4246 = vmatpush1.bf16.msra.mxu0 %v7617_v0 }
 0x724   :  { %v3494_v44 = vadd.f32 %v3493_v59, %v7635_v19  ;;  %v3495_v34 = vpop.f32.mrb[153].mxu1  ;;  %4247 = vmatprep.subr.bf16.mxu0 %v7622_v27 }
 0x725   :  { %v3496_v16 = vadd.f32 %v3495_v34, %v7643_v29  ;;  %v3497_v48 = vpop.f32.mrb[154].mxu1  ;;  %3892 = vmatprep.mubr.bf16.mxu0 %v3601_v13 }
 0x726   :  { %v3498_v47 = vadd.f32 %v3497_v48, %v7635_v19  ;;  %v3499_v46 = vpop.f32.mrb[155].mxu1  ;;  %3893 = vmatmul.mubr.bf16.gmra.mrb[192].mxu0 %v3600_v8  ;;  %v3570_v37 = vmax.f32 %v3494_v44, 0.0 }
 0x727   :  { %v3500_v11 = vadd.f32 %v3499_v46, %v7643_v29  ;;  %4248 = vmatpush1.bf16.msra.mxu0 %v7632_v40  ;;  %v3571_v0 = vmax.f32 %v3496_v16, 0.0 }
 0x728   :  { %v3572_v7 = vmax.f32 %v3498_v47, 0.0  ;;  %4249 = vmatprep.subr.bf16.mxu0 %v7640_v61 }
 0x729   :  { %v3573_v32 = vmax.f32 %v3500_v11, 0.0 }
 0x72a   :  { %v3602_v36 = vpack.c.bf16 %v3572_v7, %v3570_v37 }
 0x72b   :  { %v3603_v27 = vpack.c.bf16 %v3573_v32, %v3571_v0  ;;  %v3503_v54 = vpop.f32.mrb[156].mxu1  ;;  %4250 = vmatpush1.bf16.msra.mxu0 %v7650_v5 }
 0x72c   :  { %v3504_v25 = vadd.f32 %v3503_v54, %v7635_v19  ;;  %v3505_v53 = vpop.f32.mrb[157].mxu1  ;;  %4251 = vmatprep.subr.bf16.mxu0 %v7656_v43 }
 0x72d   :  { %v3506_v45 = vadd.f32 %v3505_v53, %v7643_v29  ;;  %v3507_v57 = vpop.f32.mrb[158].mxu1  ;;  %3902 = vmatprep.mubr.bf16.mxu0 %v3603_v27 }
 0x72e   :  { %v3508_v40 = vadd.f32 %v3507_v57, %v7635_v19  ;;  %v3509_v18 = vpop.f32.mrb[159].mxu1  ;;  %3903 = vmatmul.mubr.bf16.gmra.mrb[196].mxu0 %v3602_v36  ;;  %v3574_v17 = vmax.f32 %v3504_v25, 0.0 }
 0x72f   :  { %v3510_v61 = vadd.f32 %v3509_v18, %v7643_v29  ;;  %4252 = vmatpush1.bf16.msra.mxu0 %v7666_v4  ;;  %v3575_v5 = vmax.f32 %v3506_v45, 0.0 }
 0x730   :  { %v3576_v30 = vmax.f32 %v3508_v40, 0.0  ;;  %4253 = vmatprep.subr.bf16.mxu0 %v7671_v26 }
 0x731   :  { %v3577_v35 = vmax.f32 %v3510_v61, 0.0 }
 0x732   :  { %v3604_v50 = vpack.c.bf16 %v3576_v30, %v3574_v17 }
 0x733   :  { %v3605_v43 = vpack.c.bf16 %v3577_v35, %v3575_v5  ;;  %v3513_v28 = vpop.f32.mrb[160].mxu1  ;;  %4254 = vmatpush1.bf16.msra.mxu0 %v7678_v58 }
 0x734   :  { %v3514_v8 = vadd.f32 %v3513_v28, %v7635_v19  ;;  %v3515_v13 = vpop.f32.mrb[161].mxu1  ;;  %4255 = vmatprep.subr.bf16.mxu0 %v7684_v42 }
 0x735   :  { %v3516_v59 = vadd.f32 %v3515_v13, %v7643_v29  ;;  %v3517_v44 = vpop.f32.mrb[162].mxu1  ;;  %3912 = vmatprep.mubr.bf16.mxu0 %v3605_v43 }
 0x736   :  { %v3518_v4 = vadd.f32 %v3517_v44, %v7635_v19  ;;  %v3519_v34 = vpop.f32.mrb[163].mxu1  ;;  %3913 = vmatmul.mubr.bf16.gmra.mrb[200].mxu0 %v3604_v50  ;;  %v3578_v16 = vmax.f32 %v3514_v8, 0.0 }
 0x737   :  { %v3520_v26 = vadd.f32 %v3519_v34, %v7643_v29  ;;  %4256 = vmatpush1.bf16.msra.mxu0 %v7695_v1  ;;  %v3579_v58 = vmax.f32 %v3516_v59, 0.0 }
 0x738   :  { %v3580_v48 = vmax.f32 %v3518_v4, 0.0  ;;  %4257 = vmatprep.subr.bf16.mxu0 %v7701_v49 }
 0x739   :  { %v3581_v47 = vmax.f32 %v3520_v26, 0.0 }
 0x73a   :  { %v3606_v46 = vpack.c.bf16 %v3580_v48, %v3578_v16 }
 0x73b   :  { %v3607_v42 = vpack.c.bf16 %v3581_v47, %v3579_v58  ;;  %v3523_v11 = vpop.f32.mrb[164].mxu1  ;;  %4258 = vmatpush1.bf16.msra.mxu0 %v7709_v31 }
 0x73c   :  { %v3524_v37 = vadd.f32 %v3523_v11, %v7635_v19  ;;  %v3525_v7 = vpop.f32.mrb[165].mxu1  ;;  %v5494_v11 = vld [vmem:[%s7991_s5 + $0x8e4] ss:$8 sps:$4 sm:$0xff]  }
 0x73d   :  { %v3526_v0 = vadd.f32 %v3525_v7, %v7643_v29  ;;  %v3527_v32 = vpop.f32.mrb[166].mxu1  ;;  %3922 = vmatprep.mubr.bf16.mxu0 %v3607_v42  ;;  %4259 = vmatprep.subr.bf16.mxu0 %v5494_v11  ;;  %v4932_v7 = vld [vmem:[%s7995_s6 + $0xe] sm:$0x3] }
 0x73e   :  { %v3528_v1 = vadd.f32 %v3527_v32, %v7635_v19  ;;  %v3529_v36 = vpop.f32.mrb[167].mxu1  ;;  %3923 = vmatmul.mubr.bf16.gmra.mrb[204].mxu0 %v3606_v46  ;;  %v3582_v27 = vmax.f32 %v3524_v37, 0.0  ;;  %5044 = vmatprep.subr.bf16.mxu1 %v5494_v11  ;;  %v5495_v37 = vld [vmem:[%s7991_s5 + $0x8f0] ss:$8 sps:$4 sm:$0xff]   ;;  %v7789_v32 = vrot.slane %v4932_v7, %v8055_v60 }
 0x73f   :  { %v3530_v49 = vadd.f32 %v3529_v36, %v7643_v29  ;;  %v3583_v25 = vmax.f32 %v3526_v0, 0.0  ;;  %v7786_v0 = vrot.slane %v4932_v7, %v5771_v21 }
 0x740   :  { %v3584_v54 = vmax.f32 %v3528_v1, 0.0 }
 0x741   :  { %v3585_v53 = vmax.f32 %v3530_v49, 0.0 }
 0x742   :  { %v3608_v45 = vpack.c.bf16 %v3584_v54, %v3582_v27 }
 0x743   :  { %v3609_v57 = vpack.c.bf16 %v3585_v53, %v3583_v25  ;;  %v3533_v31 = vpop.f32.mrb[168].mxu1 }
 0x744   :  { %v3534_v40 = vadd.f32 %v3533_v31, %v7635_v19  ;;  %v3535_v18 = vpop.f32.mrb[169].mxu1 }
 0x745   :  { %v3536_v61 = vadd.f32 %v3535_v18, %v7643_v29  ;;  %v3537_v17 = vpop.f32.mrb[170].mxu1  ;;  %3932 = vmatprep.mubr.bf16.mxu0 %v3609_v57 }
 0x746   :  { %v3538_v30 = vadd.f32 %v3537_v17, %v7635_v19  ;;  %v3539_v5 = vpop.f32.mrb[171].mxu1  ;;  %3933 = vmatmul.mubr.bf16.gmra.mrb[208].mxu0 %v3608_v45  ;;  %v3586_v50 = vmax.f32 %v3534_v40, 0.0 }
 0x747   :  { %v3540_v35 = vadd.f32 %v3539_v5, %v7643_v29  ;;  %v3587_v28 = vmax.f32 %v3536_v61, 0.0 }
 0x748   :  { %v3588_v43 = vmax.f32 %v3538_v30, 0.0 }
 0x749   :  { %v3589_v8 = vmax.f32 %v3540_v35, 0.0 }
 0x74a   :  { %v3610_v13 = vpack.c.bf16 %v3588_v43, %v3586_v50 }
 0x74b   :  { %v3611_v59 = vpack.c.bf16 %v3589_v8, %v3587_v28  ;;  %v3543_v44 = vpop.f32.mrb[172].mxu1 }
 0x74c   :  { %v3544_v4 = vadd.f32 %v3543_v44, %v7635_v19  ;;  %v3545_v34 = vpop.f32.mrb[173].mxu1  ;;  %v5492_v19 = vld [vmem:[%s7991_s5 + $0x8e0] ss:$8 sps:$4 sm:$0xff]  }
 0x74d   :  { %v3546_v26 = vadd.f32 %v3545_v34, %v7643_v29  ;;  %v3547_v16 = vpop.f32.mrb[174].mxu1  ;;  %3942 = vmatprep.mubr.bf16.mxu0 %v3611_v59  ;;  %4260 = vmatpush1.bf16.msra.mxu0 %v5492_v19  ;;  %v5497_v29 = vld [vmem:[%s7991_s5 + $0x8f4] ss:$8 sps:$4 sm:$0xff]  }
 0x74e   :  { %v3548_v48 = vpop.f32.mrb[175].mxu1  ;;  %3943 = vmatmul.mubr.bf16.gmra.mrb[212].mxu0 %v3610_v13  ;;  %v3590_v47 = vmax.f32 %v3544_v4, 0.0  ;;  %5060 = vmatpush1.bf16.msra.mxu1 %v5492_v19 }
 0x74f   :  { %v3591_v58 = vmax.f32 %v3546_v26, 0.0  ;;  %4261 = vmatprep.subr.bf16.mxu0 %v5497_v29  ;;  %5045 = vmatprep.subr.bf16.mxu1 %v5497_v29 }
 0x750   :  { %v3612_v42 = vpack.c.bf16 %v3590_v47, %v3590_v47 }
 0x751   :  { %v3613_v46 = vpack.c.bf16 %v3591_v58, %v3591_v58  ;;  %4262 = vmatpush1.bf16.msra.mxu0 %v5495_v37 }
 0x752   :  { %5061 = vmatpush1.bf16.msra.mxu1 %v5495_v37 }
 0x753   :  { %3952 = vmatprep.mubr.bf16.mxu0 %v3613_v46 }
 0x756   :  { %3953 = vmatmul.mubr.bf16.gmra.mrb[216].mxu0 %v3612_v42 }
 0x7d9   :  { %v3854_v1 = vpop.f32.mrb[176].mxu0 }
 0x7da   :  { %v3855_v36 = vadd.f32 %v3854_v1, %v7786_v0  ;;  %v3856_v49 = vpop.f32.mrb[177].mxu0 }
 0x7db   :  { %v3857_v27 = vadd.f32 %v3856_v49, %v7789_v32  ;;  %v3858_v54 = vpop.f32.mrb[178].mxu0 }
 0x7dc   :  { %v3859_v25 = vadd.f32 %v3858_v54, %v7786_v0  ;;  %v3860_v53 = vpop.f32.mrb[179].mxu0  ;;  %v3961_v57 = vmax.f32 %v3855_v36, 0.0 }
 0x7dd   :  { %v3861_v45 = vadd.f32 %v3860_v53, %v7789_v32  ;;  %v3962_v40 = vmax.f32 %v3857_v27, 0.0 }
 0x7de   :  { %v3963_v31 = vmax.f32 %v3859_v25, 0.0 }
 0x7df   :  { %v3964_v18 = vmax.f32 %v3861_v45, 0.0 }
 0x7e0   :  { %v4003_v61 = vpack.c.bf16 %v3963_v31, %v3961_v57 }
 0x7e1   :  { %v4004_v17 = vpack.c.bf16 %v3964_v18, %v3962_v40  ;;  %v3864_v30 = vpop.f32.mrb[180].mxu0 }
 0x7e2   :  { %v3865_v5 = vadd.f32 %v3864_v30, %v7786_v0  ;;  %v3866_v35 = vpop.f32.mrb[181].mxu0 }
 0x7e3   :  { %v3867_v50 = vadd.f32 %v3866_v35, %v7789_v32  ;;  %v3868_v43 = vpop.f32.mrb[182].mxu0  ;;  %4263 = vmatprep.mubr.bf16.mxu0 %v4004_v17 }
 0x7e4   :  { %v3869_v28 = vadd.f32 %v3868_v43, %v7786_v0  ;;  %v3870_v8 = vpop.f32.mrb[183].mxu0  ;;  %4264 = vmatmul.mubr.bf16.vlgmr.msra.gmra.mrb[220].mxu0 %v4003_v61  ;;  %v3965_v59 = vmax.f32 %v3865_v5, 0.0 }
 0x7e5   :  { %v3871_v13 = vadd.f32 %v3870_v8, %v7789_v32  ;;  %v3966_v4 = vmax.f32 %v3867_v50, 0.0 }
 0x7e6   :  { %v3967_v44 = vmax.f32 %v3869_v28, 0.0 }
 0x7e7   :  { %v3968_v34 = vmax.f32 %v3871_v13, 0.0 }
 0x7e8   :  { %v4005_v26 = vpack.c.bf16 %v3967_v44, %v3965_v59 }
 0x7e9   :  { %v4006_v16 = vpack.c.bf16 %v3968_v34, %v3966_v4  ;;  %v3874_v48 = vpop.f32.mrb[184].mxu0 }
 0x7ea   :  { %v3875_v58 = vadd.f32 %v3874_v48, %v7786_v0  ;;  %v3876_v47 = vpop.f32.mrb[185].mxu0 }
 0x7eb   :  { %v3877_v46 = vadd.f32 %v3876_v47, %v7789_v32  ;;  %v3878_v42 = vpop.f32.mrb[186].mxu0  ;;  %4273 = vmatprep.mubr.bf16.mxu0 %v4006_v16 }
 0x7ec   :  { %v3879_v11 = vadd.f32 %v3878_v42, %v7786_v0  ;;  %v3880_v19 = vpop.f32.mrb[187].mxu0  ;;  %4274 = vmatmul.mubr.bf16.gmra.mrb[224].mxu0 %v4005_v26  ;;  %v3969_v37 = vmax.f32 %v3875_v58, 0.0 }
 0x7ed   :  { %v3881_v29 = vadd.f32 %v3880_v19, %v7789_v32  ;;  %v3970_v1 = vmax.f32 %v3877_v46, 0.0 }
 0x7ee   :  { %v3971_v7 = vmax.f32 %v3879_v11, 0.0 }
 0x7ef   :  { %v3972_v36 = vmax.f32 %v3881_v29, 0.0 }
 0x7f0   :  { %v4007_v49 = vpack.c.bf16 %v3971_v7, %v3969_v37 }
 0x7f1   :  { %v4008_v27 = vpack.c.bf16 %v3972_v36, %v3970_v1  ;;  %v3884_v54 = vpop.f32.mrb[188].mxu0 }
 0x7f2   :  { %v3885_v25 = vadd.f32 %v3884_v54, %v7786_v0  ;;  %v3886_v53 = vpop.f32.mrb[189].mxu0 }
 0x7f3   :  { %v3887_v45 = vadd.f32 %v3886_v53, %v7789_v32  ;;  %v3888_v57 = vpop.f32.mrb[190].mxu0  ;;  %4283 = vmatprep.mubr.bf16.mxu0 %v4008_v27 }
 0x7f4   :  { %v3889_v31 = vadd.f32 %v3888_v57, %v7786_v0  ;;  %v3890_v40 = vpop.f32.mrb[191].mxu0  ;;  %4284 = vmatmul.mubr.bf16.gmra.mrb[228].mxu0 %v4007_v49  ;;  %v3973_v61 = vmax.f32 %v3885_v25, 0.0 }
 0x7f5   :  { %v3891_v18 = vadd.f32 %v3890_v40, %v7789_v32  ;;  %v3974_v30 = vmax.f32 %v3887_v45, 0.0 }
 0x7f6   :  { %v3975_v17 = vmax.f32 %v3889_v31, 0.0 }
 0x7f7   :  { %v3976_v5 = vmax.f32 %v3891_v18, 0.0 }
 0x7f8   :  { %v4009_v35 = vpack.c.bf16 %v3975_v17, %v3973_v61 }
 0x7f9   :  { %v4010_v50 = vpack.c.bf16 %v3976_v5, %v3974_v30  ;;  %v3894_v43 = vpop.f32.mrb[192].mxu0 }
 0x7fa   :  { %v3895_v28 = vadd.f32 %v3894_v43, %v7786_v0  ;;  %v3896_v8 = vpop.f32.mrb[193].mxu0 }
 0x7fb   :  { %v3897_v13 = vadd.f32 %v3896_v8, %v7789_v32  ;;  %v3898_v59 = vpop.f32.mrb[194].mxu0  ;;  %4293 = vmatprep.mubr.bf16.mxu1 %v4010_v50 }
 0x7fc   :  { %v3899_v44 = vadd.f32 %v3898_v59, %v7786_v0  ;;  %v3900_v4 = vpop.f32.mrb[195].mxu0  ;;  %4294 = vmatmul.mubr.bf16.vlgmr.msra.gmra.mrb[176].mxu1 %v4009_v35  ;;  %v3977_v26 = vmax.f32 %v3895_v28, 0.0 }
 0x7fd   :  { %v3901_v34 = vadd.f32 %v3900_v4, %v7789_v32  ;;  %v3978_v48 = vmax.f32 %v3897_v13, 0.0 }
 0x7fe   :  { %v3979_v16 = vmax.f32 %v3899_v44, 0.0 }
 0x7ff   :  { %v3980_v58 = vmax.f32 %v3901_v34, 0.0 }
 0x800   :  { %v4011_v47 = vpack.c.bf16 %v3979_v16, %v3977_v26 }
 0x801   :  { %v4012_v46 = vpack.c.bf16 %v3980_v58, %v3978_v48  ;;  %v3904_v42 = vpop.f32.mrb[196].mxu0 }
 0x802   :  { %v3905_v11 = vadd.f32 %v3904_v42, %v7786_v0  ;;  %v3906_v19 = vpop.f32.mrb[197].mxu0 }
 0x803   :  { %v3907_v29 = vadd.f32 %v3906_v19, %v7789_v32  ;;  %v3908_v37 = vpop.f32.mrb[198].mxu0  ;;  %4303 = vmatprep.mubr.bf16.mxu1 %v4012_v46 }
 0x804   :  { %v3909_v7 = vadd.f32 %v3908_v37, %v7786_v0  ;;  %v3910_v1 = vpop.f32.mrb[199].mxu0  ;;  %4304 = vmatmul.mubr.bf16.gmra.mrb[180].mxu1 %v4011_v47  ;;  %v3981_v49 = vmax.f32 %v3905_v11, 0.0 }
 0x805   :  { %v3911_v36 = vadd.f32 %v3910_v1, %v7789_v32  ;;  %v3982_v54 = vmax.f32 %v3907_v29, 0.0 }
 0x806   :  { %v3983_v27 = vmax.f32 %v3909_v7, 0.0 }
 0x807   :  { %v3984_v25 = vmax.f32 %v3911_v36, 0.0 }
 0x808   :  { %v4013_v53 = vpack.c.bf16 %v3983_v27, %v3981_v49 }
 0x809   :  { %v4014_v45 = vpack.c.bf16 %v3984_v25, %v3982_v54  ;;  %v3914_v57 = vpop.f32.mrb[200].mxu0 }
 0x80a   :  { %v3915_v31 = vadd.f32 %v3914_v57, %v7786_v0  ;;  %v3916_v40 = vpop.f32.mrb[201].mxu0 }
 0x80b   :  { %v3917_v18 = vadd.f32 %v3916_v40, %v7789_v32  ;;  %v3918_v61 = vpop.f32.mrb[202].mxu0  ;;  %4313 = vmatprep.mubr.bf16.mxu1 %v4014_v45 }
 0x80c   :  { %v3919_v17 = vadd.f32 %v3918_v61, %v7786_v0  ;;  %v3920_v30 = vpop.f32.mrb[203].mxu0  ;;  %4314 = vmatmul.mubr.bf16.gmra.mrb[184].mxu1 %v4013_v53  ;;  %v3985_v35 = vmax.f32 %v3915_v31, 0.0 }
 0x80d   :  { %v3921_v5 = vadd.f32 %v3920_v30, %v7789_v32  ;;  %v3986_v43 = vmax.f32 %v3917_v18, 0.0 }
 0x80e   :  { %v3987_v50 = vmax.f32 %v3919_v17, 0.0 }
 0x80f   :  { %v3988_v28 = vmax.f32 %v3921_v5, 0.0 }
 0x810   :  { %v4015_v8 = vpack.c.bf16 %v3987_v50, %v3985_v35 }
 0x811   :  { %v4016_v13 = vpack.c.bf16 %v3988_v28, %v3986_v43  ;;  %v3924_v59 = vpop.f32.mrb[204].mxu0 }
 0x812   :  { %v3925_v44 = vadd.f32 %v3924_v59, %v7786_v0  ;;  %v3926_v4 = vpop.f32.mrb[205].mxu0 }
 0x813   :  { %v3927_v34 = vadd.f32 %v3926_v4, %v7789_v32  ;;  %v3928_v26 = vpop.f32.mrb[206].mxu0  ;;  %4323 = vmatprep.mubr.bf16.mxu1 %v4016_v13 }
 0x814   :  { %v3929_v16 = vadd.f32 %v3928_v26, %v7786_v0  ;;  %v3930_v48 = vpop.f32.mrb[207].mxu0  ;;  %4324 = vmatmul.mubr.bf16.gmra.mrb[188].mxu1 %v4015_v8  ;;  %v3989_v47 = vmax.f32 %v3925_v44, 0.0 }
 0x815   :  { %v3931_v58 = vadd.f32 %v3930_v48, %v7789_v32  ;;  %v3990_v42 = vmax.f32 %v3927_v34, 0.0 }
 0x816   :  { %v3991_v46 = vmax.f32 %v3929_v16, 0.0 }
 0x817   :  { %v3992_v11 = vmax.f32 %v3931_v58, 0.0 }
 0x818   :  { %v4017_v19 = vpack.c.bf16 %v3991_v46, %v3989_v47 }
 0x819   :  { %v4018_v29 = vpack.c.bf16 %v3992_v11, %v3990_v42  ;;  %v3934_v37 = vpop.f32.mrb[208].mxu0 }
 0x81a   :  { %v3935_v7 = vadd.f32 %v3934_v37, %v7786_v0  ;;  %v3936_v1 = vpop.f32.mrb[209].mxu0  ;;  %v4997_v37 = vld [vmem:[%s7995_s6 + $0x10] sm:$0x3] }
 0x81b   :  { %v3937_v36 = vadd.f32 %v3936_v1, %v7789_v32  ;;  %v3938_v49 = vpop.f32.mrb[210].mxu0  ;;  %4333 = vmatprep.mubr.bf16.mxu1 %v4018_v29 }
 0x81c   :  { %v3939_v27 = vadd.f32 %v3938_v49, %v7786_v0  ;;  %v3940_v54 = vpop.f32.mrb[211].mxu0  ;;  %4334 = vmatmul.mubr.bf16.gmra.mrb[192].mxu1 %v4017_v19  ;;  %v3993_v53 = vmax.f32 %v3935_v7, 0.0  ;;  %v7837_v7 = vrot.slane %v4997_v37, %v5771_v21 }
 0x81d   :  { %v3941_v25 = vadd.f32 %v3940_v54, %v7789_v32  ;;  %v3994_v57 = vmax.f32 %v3937_v36, 0.0  ;;  %v8056_v54 = vld [vmem:[#allocation3_spill] sm:$0xff] }
 0x81e   :  { %v3995_v45 = vmax.f32 %v3939_v27, 0.0 }
 0x81f   :  { %v3996_v31 = vmax.f32 %v3941_v25, 0.0 }
 0x820   :  { %v4019_v40 = vpack.c.bf16 %v3995_v45, %v3993_v53 }
 0x821   :  { %v4020_v18 = vpack.c.bf16 %v3996_v31, %v3994_v57  ;;  %v3944_v61 = vpop.f32.mrb[212].mxu0  ;;  %v8057_v57 = vld [vmem:[#allocation4_spill] sm:$0xff] }
 0x822   :  { %v3945_v17 = vadd.f32 %v3944_v61, %v7786_v0  ;;  %v3946_v30 = vpop.f32.mrb[213].mxu0  ;;  %v8059_v61 = vld [vmem:[#allocation6_spill] sm:$0xff] }
 0x823   :  { %v3947_v5 = vadd.f32 %v3946_v30, %v7789_v32  ;;  %v3948_v35 = vpop.f32.mrb[214].mxu0  ;;  %4343 = vmatprep.mubr.bf16.mxu1 %v4020_v18 }
 0x824   :  { %v3949_v50 = vadd.f32 %v3948_v35, %v7786_v0  ;;  %v3950_v43 = vpop.f32.mrb[215].mxu0  ;;  %4344 = vmatmul.mubr.bf16.gmra.mrb[196].mxu1 %v4019_v40  ;;  %v3997_v8 = vmax.f32 %v3945_v17, 0.0  ;;  %v8058_v40 = vld [vmem:[#allocation5_spill] sm:$0xff] }
 0x825   :  { %v3951_v28 = vadd.f32 %v3950_v43, %v7789_v32  ;;  %v3998_v59 = vmax.f32 %v3947_v5, 0.0 }
 0x826   :  { %v3999_v13 = vmax.f32 %v3949_v50, 0.0 }
 0x827   :  { %v4000_v44 = vmax.f32 %v3951_v28, 0.0 }
 0x828   :  { %v4021_v4 = vpack.c.bf16 %v3999_v13, %v3997_v8 }
 0x829   :  { %v4022_v34 = vpack.c.bf16 %v4000_v44, %v3998_v59  ;;  %v3954_v26 = vpop.f32.mrb[216].mxu0 }
 0x82a   :  { %v3955_v16 = vadd.f32 %v3954_v26, %v7786_v0  ;;  %v3956_v48 = vpop.f32.mrb[217].mxu0  ;;  %v7840_v0 = vrot.slane %v4997_v37, %v8055_v60 }
 0x82b   :  { %v3957_v58 = vadd.f32 %v3956_v48, %v7789_v32  ;;  %v3958_v47 = vpop.f32.mrb[218].mxu0  ;;  %4353 = vmatprep.mubr.bf16.mxu1 %v4022_v34 }
 0x82c   :  { %v3959_v46 = vpop.f32.mrb[219].mxu0  ;;  %4354 = vmatmul.mubr.bf16.gmra.mrb[200].mxu1 %v4021_v4  ;;  %v4001_v11 = vmax.f32 %v3955_v16, 0.0 }
 0x82d   :  { %v4002_v42 = vmax.f32 %v3957_v58, 0.0 }
 0x82e   :  { %v4023_v29 = vpack.c.bf16 %v4001_v11, %v4001_v11 }
 0x82f   :  { %v4024_v19 = vpack.c.bf16 %v4002_v42, %v4002_v42 }
 0x831   :  { %4363 = vmatprep.mubr.bf16.mxu1 %v4024_v19 }
 0x834   :  { %4364 = vmatmul.mubr.bf16.gmra.mrb[204].mxu1 %v4023_v29 }
 0x8b7   :  { %v4265_v32 = vpop.f32.mrb[220].mxu0 }
 0x8b8   :  { %v4266_v1 = vadd.f32 %v4265_v32, %v7837_v7  ;;  %v4267_v36 = vpop.f32.mrb[221].mxu0 }
 0x8b9   :  { %v4268_v49 = vadd.f32 %v4267_v36, %v7840_v0  ;;  %v4269_v27 = vpop.f32.mrb[222].mxu0 }
 0x8ba   :  { %v4372_v25 = vadd.f32 %v4266_v1, %v8056_v54  ;;  %v4270_v53 = vadd.f32 %v4269_v27, %v7837_v7  ;;  %v4271_v45 = vpop.f32.mrb[223].mxu0 }
 0x8bb   :  { %v4373_v31 = vadd.f32 %v4268_v49, %v8057_v57  ;;  %v4272_v21 = vadd.f32 %v4271_v45, %v7840_v0 }
 0x8bc   :  { %v4374_v18 = vadd.f32 %v4270_v53, %v8058_v40 }
 0x8bd   :  { %v4414_v60 = vadd.f32 %v4373_v31, %v4372_v25  ;;  %v4375_v17 = vadd.f32 %v4272_v21, %v8059_v61 }
 0x8bf   :  { %4435 = vst [vmem:[%s7996_s7] sm:$0xff] %v4414_v60  ;;  %v4415_v30 = vadd.f32 %v4375_v17, %v4374_v18  ;;  %v4275_v5 = vpop.f32.mrb[224].mxu0 }
 0x8c0   :  { %v4276_v35 = vadd.f32 %v4275_v5, %v7837_v7  ;;  %v4277_v50 = vpop.f32.mrb[225].mxu0 }
 0x8c1   :  { %4436 = vst [vmem:[%s7996_s7 + $0x8] sm:$0xff] %v4415_v30  ;;  %v4278_v43 = vadd.f32 %v4277_v50, %v7840_v0  ;;  %v4279_v28 = vpop.f32.mrb[226].mxu0 }
 0x8c2   :  { %v4376_v8 = vadd.f32 %v4276_v35, %v7237_v9  ;;  %v4280_v13 = vadd.f32 %v4279_v28, %v7837_v7  ;;  %v4281_v59 = vpop.f32.mrb[227].mxu0 }
 0x8c3   :  { %v4377_v44 = vadd.f32 %v4278_v43, %v7241_v12  ;;  %v4282_v4 = vadd.f32 %v4281_v59, %v7840_v0 }
 0x8c4   :  { %v4378_v34 = vadd.f32 %v4280_v13, %v7250_v6 }
 0x8c5   :  { %v4416_v26 = vadd.f32 %v4377_v44, %v4376_v8  ;;  %v4379_v16 = vadd.f32 %v4282_v4, %v7258_v62 }
 0x8c7   :  { %4437 = vst [vmem:[%s7996_s7 + $0x10] sm:$0xff] %v4416_v26  ;;  %v4417_v48 = vadd.f32 %v4379_v16, %v4378_v34  ;;  %v4285_v58 = vpop.f32.mrb[228].mxu0 }
 0x8c8   :  { %v4286_v9 = vadd.f32 %v4285_v58, %v7837_v7  ;;  %v4287_v47 = vpop.f32.mrb[229].mxu0 }
 0x8c9   :  { %4438 = vst [vmem:[%s7996_s7 + $0x18] sm:$0xff] %v4417_v48  ;;  %v4288_v12 = vadd.f32 %v4287_v47, %v7840_v0  ;;  %v4289_v46 = vpop.f32.mrb[230].mxu0 }
 0x8ca   :  { %v4380_v6 = vadd.f32 %v4286_v9, %v7277_v24  ;;  %v4290_v62 = vadd.f32 %v4289_v46, %v7837_v7  ;;  %v4291_v42 = vpop.f32.mrb[231].mxu0 }
 0x8cb   :  { %v4381_v11 = vadd.f32 %v4288_v12, %v7281_v39  ;;  %v4292_v19 = vadd.f32 %v4291_v42, %v7840_v0 }
 0x8cc   :  { %v4382_v29 = vadd.f32 %v4290_v62, %v7290_v55  ;;  %v8060_v62 = vld [vmem:[#allocation7_spill] sm:$0xff] }
 0x8cd   :  { %v4418_v37 = vadd.f32 %v4381_v11, %v4380_v6  ;;  %v4383_v32 = vadd.f32 %v4292_v19, %v7298_v33  ;;  %v8061_v19 = vld [vmem:[#allocation8_spill] sm:$0xff] }
 0x8cf   :  { %4439 = vst [vmem:[%s7996_s7 + $0x20] sm:$0xff] %v4418_v37  ;;  %v4419_v1 = vadd.f32 %v4383_v32, %v4382_v29  ;;  %v4295_v36 = vpop.f32.mrb[176].mxu1 }
 0x8d0   :  { %v4296_v24 = vadd.f32 %v4295_v36, %v7837_v7  ;;  %v4297_v49 = vpop.f32.mrb[177].mxu1 }
 0x8d1   :  { %4440 = vst [vmem:[%s7996_s7 + $0x28] sm:$0xff] %v4419_v1  ;;  %v4298_v39 = vadd.f32 %v4297_v49, %v7840_v0  ;;  %v4299_v27 = vpop.f32.mrb[178].mxu1 }
 0x8d2   :  { %v4384_v55 = vadd.f32 %v4296_v24, %v7314_v15  ;;  %v4300_v33 = vadd.f32 %v4299_v27, %v7837_v7  ;;  %v4301_v54 = vpop.f32.mrb[179].mxu1  ;;  %v8062_v24 = vld [vmem:[#allocation9_spill] sm:$0xff] }
 0x8d3   :  { %v4385_v25 = vadd.f32 %v4298_v39, %v7318_v23  ;;  %v4302_v53 = vadd.f32 %v4301_v54, %v7840_v0 }
 0x8d4   :  { %v4386_v45 = vadd.f32 %v4300_v33, %v7324_v3 }
 0x8d5   :  { %v4420_v57 = vadd.f32 %v4385_v25, %v4384_v55  ;;  %v4387_v31 = vadd.f32 %v4302_v53, %v7329_v10  ;;  %v8063_v55 = vld [vmem:[#allocation10_spill] sm:$0xff]  ;;  %v8064_v25 = vld [vmem:[#allocation11_spill] sm:$0xff] }
 0x8d7   :  { %4441 = vst [vmem:[%s7996_s7 + $0x30] sm:$0xff] %v4420_v57  ;;  %v4421_v21 = vadd.f32 %v4387_v31, %v4386_v45  ;;  %v4305_v40 = vpop.f32.mrb[180].mxu1  ;;  %v8065_v57 = vld [vmem:[#allocation12_spill] sm:$0xff] }
 0x8d8   :  { %v4306_v15 = vadd.f32 %v4305_v40, %v7837_v7  ;;  %v4307_v18 = vpop.f32.mrb[181].mxu1 }
 0x8d9   :  { %4442 = vst [vmem:[%s7996_s7 + $0x38] sm:$0xff] %v4421_v21  ;;  %v4308_v23 = vadd.f32 %v4307_v18, %v7840_v0  ;;  %v4309_v60 = vpop.f32.mrb[182].mxu1 }
 0x8da   :  { %v4388_v3 = vadd.f32 %v4306_v15, %v7342_v41  ;;  %v4310_v10 = vadd.f32 %v4309_v60, %v7837_v7  ;;  %v4311_v61 = vpop.f32.mrb[183].mxu1 }
 0x8db   :  { %v4389_v17 = vadd.f32 %v4308_v23, %v7346_v56  ;;  %v4312_v30 = vadd.f32 %v4311_v61, %v7840_v0 }
 0x8dc   :  { %v4390_v5 = vadd.f32 %v4310_v10, %v7352_v22 }
 0x8dd   :  { %v4422_v35 = vadd.f32 %v4389_v17, %v4388_v3  ;;  %v4391_v50 = vadd.f32 %v4312_v30, %v7357_v14  ;;  %v8066_v3 = vld [vmem:[#allocation13_spill] sm:$0xff]  ;;  %v8067_v30 = vld [vmem:[#allocation14_spill] sm:$0xff] }
 0x8df   :  { %4443 = vst [vmem:[%s7996_s7 + $0x40] sm:$0xff] %v4422_v35  ;;  %v4423_v43 = vadd.f32 %v4391_v50, %v4390_v5  ;;  %v4315_v28 = vpop.f32.mrb[184].mxu1  ;;  %v8068_v50 = vld [vmem:[#allocation15_spill] sm:$0xff] }
 0x8e0   :  { %v4316_v41 = vadd.f32 %v4315_v28, %v7837_v7  ;;  %v4317_v8 = vpop.f32.mrb[185].mxu1 }
 0x8e1   :  { %4444 = vst [vmem:[%s7996_s7 + $0x48] sm:$0xff] %v4423_v43  ;;  %v4318_v56 = vadd.f32 %v4317_v8, %v7840_v0  ;;  %v4319_v13 = vpop.f32.mrb[186].mxu1 }
 0x8e2   :  { %v4392_v22 = vadd.f32 %v4316_v41, %v7370_v2  ;;  %v4320_v14 = vadd.f32 %v4319_v13, %v7837_v7  ;;  %v4321_v59 = vpop.f32.mrb[187].mxu1  ;;  %v8069_v41 = vld [vmem:[#allocation16_spill] sm:$0xff] }
 0x8e3   :  { %v4393_v44 = vadd.f32 %v4318_v56, %v7374_v20  ;;  %v4322_v4 = vadd.f32 %v4321_v59, %v7840_v0 }
 0x8e4   :  { %v4394_v34 = vadd.f32 %v4320_v14, %v7380_v52 }
 0x8e5   :  { %v4424_v26 = vadd.f32 %v4393_v44, %v4392_v22  ;;  %v4395_v16 = vadd.f32 %v4322_v4, %v7385_v51  ;;  %v8070_v4 = vld [vmem:[#allocation17_spill] sm:$0xff] }
 0x8e7   :  { %4445 = vst [vmem:[%s7996_s7 + $0x50] sm:$0xff] %v4424_v26  ;;  %v4425_v48 = vadd.f32 %v4395_v16, %v4394_v34  ;;  %v4325_v58 = vpop.f32.mrb[188].mxu1 }
 0x8e8   :  { %v4326_v2 = vadd.f32 %v4325_v58, %v7837_v7  ;;  %v4327_v9 = vpop.f32.mrb[189].mxu1 }
 0x8e9   :  { %4446 = vst [vmem:[%s7996_s7 + $0x58] sm:$0xff] %v4425_v48  ;;  %v4328_v20 = vadd.f32 %v4327_v9, %v7840_v0  ;;  %v4329_v47 = vpop.f32.mrb[190].mxu1  ;;  %v8071_v48 = vld [vmem:[#allocation18_spill] sm:$0xff]  ;;  %v8072_v9 = vld [vmem:[#allocation19_spill] sm:$0xff] }
 0x8ea   :  { %v4396_v52 = vadd.f32 %v4326_v2, %v7398_v38  ;;  %v4330_v51 = vadd.f32 %v4329_v47, %v7837_v7  ;;  %v4331_v12 = vpop.f32.mrb[191].mxu1 }
 0x8eb   :  { %v4397_v46 = vadd.f32 %v4328_v20, %v7402_v63  ;;  %v4332_v6 = vadd.f32 %v4331_v12, %v7840_v0 }
 0x8ec   :  { %v4398_v42 = vadd.f32 %v4330_v51, %v8060_v62 }
 0x8ed   :  { %v4426_v11 = vadd.f32 %v4397_v46, %v4396_v52  ;;  %v4399_v29 = vadd.f32 %v4332_v6, %v8061_v19  ;;  %v8073_v52 = vld [vmem:[#allocation20_spill] sm:$0xff]  ;;  %v8074_v19 = vld [vmem:[#allocation21_spill] sm:$0xff] }
 0x8ef   :  { %4447 = vst [vmem:[%s7996_s7 + $0x60] sm:$0xff] %v4426_v11  ;;  %v4427_v37 = vadd.f32 %v4399_v29, %v4398_v42  ;;  %v4335_v32 = vpop.f32.mrb[192].mxu1 }
 0x8f0   :  { %v4336_v38 = vadd.f32 %v4335_v32, %v7837_v7  ;;  %v4337_v1 = vpop.f32.mrb[193].mxu1  ;;  %v8075_v32 = vld [vmem:[#allocation22_spill] sm:$0xff] }
 0x8f1   :  { %4448 = vst [vmem:[%s7996_s7 + $0x68] sm:$0xff] %v4427_v37  ;;  %v4338_v63 = vadd.f32 %v4337_v1, %v7840_v0  ;;  %v4339_v36 = vpop.f32.mrb[194].mxu1 }
 0x8f2   :  { %v4400_v49 = vadd.f32 %v4336_v38, %v8062_v24  ;;  %v4340_v39 = vadd.f32 %v4339_v36, %v7837_v7  ;;  %v4341_v27 = vpop.f32.mrb[195].mxu1 }
 0x8f3   :  { %v4401_v33 = vadd.f32 %v4338_v63, %v8063_v55  ;;  %v4342_v54 = vadd.f32 %v4341_v27, %v7840_v0 }
 0x8f4   :  { %v4402_v53 = vadd.f32 %v4340_v39, %v8064_v25 }
 0x8f5   :  { %v4428_v45 = vadd.f32 %v4401_v33, %v4400_v49  ;;  %v4403_v31 = vadd.f32 %v4342_v54, %v8065_v57 }
 0x8f7   :  { %4449 = vst [vmem:[%s7996_s7 + $0x70] sm:$0xff] %v4428_v45  ;;  %v4429_v21 = vadd.f32 %v4403_v31, %v4402_v53  ;;  %v4345_v40 = vpop.f32.mrb[196].mxu1 }
 0x8f8   :  { %v4346_v15 = vadd.f32 %v4345_v40, %v7837_v7  ;;  %v4347_v18 = vpop.f32.mrb[197].mxu1 }
 0x8f9   :  { %4450 = vst [vmem:[%s7996_s7 + $0x78] sm:$0xff] %v4429_v21  ;;  %v4348_v23 = vadd.f32 %v4347_v18, %v7840_v0  ;;  %v4349_v60 = vpop.f32.mrb[198].mxu1 }
 0x8fa   :  { %v4404_v10 = vadd.f32 %v4346_v15, %v8066_v3  ;;  %v4350_v61 = vadd.f32 %v4349_v60, %v7837_v7  ;;  %v4351_v17 = vpop.f32.mrb[199].mxu1 }
 0x8fb   :  { %v4405_v5 = vadd.f32 %v4348_v23, %v8067_v30  ;;  %v4352_v35 = vadd.f32 %v4351_v17, %v7840_v0 }
 0x8fc   :  { %v4406_v43 = vadd.f32 %v4350_v61, %v8068_v50 }
 0x8fd   :  { %v4430_v28 = vadd.f32 %v4405_v5, %v4404_v10  ;;  %v4407_v8 = vadd.f32 %v4352_v35, %v8069_v41 }
 0x8ff   :  { %4451 = vst [vmem:[%s7996_s7 + $0x80] sm:$0xff] %v4430_v28  ;;  %v4431_v56 = vadd.f32 %v4407_v8, %v4406_v43  ;;  %v4355_v13 = vpop.f32.mrb[200].mxu1 }
 0x900   :  { %v4356_v22 = vadd.f32 %v4355_v13, %v7837_v7  ;;  %v4357_v14 = vpop.f32.mrb[201].mxu1 }
 0x901   :  { %4452 = vst [vmem:[%s7996_s7 + $0x88] sm:$0xff] %v4431_v56  ;;  %v4358_v59 = vadd.f32 %v4357_v14, %v7840_v0  ;;  %v4359_v44 = vpop.f32.mrb[202].mxu1 }
 0x902   :  { %v4408_v34 = vadd.f32 %v4356_v22, %v8070_v4  ;;  %v4360_v26 = vadd.f32 %v4359_v44, %v7837_v7  ;;  %v4361_v16 = vpop.f32.mrb[203].mxu1 }
 0x903   :  { %v4409_v58 = vadd.f32 %v4358_v59, %v8071_v48  ;;  %v4362_v2 = vadd.f32 %v4361_v16, %v7840_v0 }
 0x904   :  { %v4410_v20 = vadd.f32 %v4360_v26, %v8072_v9 }
 0x905   :  { %v4432_v47 = vadd.f32 %v4409_v58, %v4408_v34  ;;  %v4411_v51 = vadd.f32 %v4362_v2, %v8073_v52 }
 0x907   :  { %4453 = vst [vmem:[%s7996_s7 + $0x90] sm:$0xff] %v4432_v47  ;;  %v4433_v12 = vadd.f32 %v4411_v51, %v4410_v20  ;;  %v4365_v46 = vpop.f32.mrb[204].mxu1 }
 0x908   :  { %v4366_v6 = vadd.f32 %v4365_v46, %v7837_v7  ;;  %v4367_v62 = vpop.f32.mrb[205].mxu1 }
 0x909   :  { %4454 = vst [vmem:[%s7996_s7 + $0x98] sm:$0xff] %v4433_v12  ;;  %v4368_v42 = vadd.f32 %v4367_v62, %v7840_v0  ;;  %v4369_v11 = vpop.f32.mrb[206].mxu1 }
 0x90a   :  { %v4412_v29 = vadd.f32 %v4366_v6, %v8074_v19  ;;  %v4370_v37 = vpop.f32.mrb[207].mxu1 }
 0x90b   :  { %v4413_v38 = vadd.f32 %v4368_v42, %v8075_v32 }
 0x90d   :  { %v4434_v1 = vadd.f32 %v4413_v38, %v4412_v29 }
 0x90f   :  { %4455 = vst [vmem:[%s7996_s7 + $0xa0] sm:$0xff] %v4434_v1 }

</bundles_post_ra>
